<compile_context>
chip_gen: v5e
topology: v5e:2x2
jax: 0.10.0
libtpu: 0.0.40
codegen_flags: <defaults>
</compile_context>

<pallas_src>
import jax
import jax.numpy as jnp
from jax.experimental import pallas as pl
from jax.experimental.pallas import tpu as pltpu


def _leaky_relu(x, slope=0.01):
    return jnp.where(x >= 0, x, slope * x)


def _rel_attn_kernel(vec_ref, kg_ref,
                     wqkv_ref, bqkv_ref, wkg_ref, bkg_ref,
                     wfcq_ref, wfck_ref, wfckg_ref, bfc_ref,
                     gamma_ref, beta_ref,
                     w1_ref, b1_ref, w2_ref, b2_ref,
                     out_ref,
                     v_s, qsc_s, ksc_s, m_s, l_s, acc_s):
    f32 = jnp.float32
    bf16 = jnp.bfloat16

    Bt, N, D = out_ref.shape
    Tj, KGd = kg_ref.shape[2], kg_ref.shape[3]
    n_kt = N // Tj

    jt = pl.program_id(1)

    # ---------------- key-tile 0: fused q/k/v projection (once / batch tile) --
    @pl.when(jt == 0)
    def _init():
        x = vec_ref[...].reshape(Bt * N, D).astype(bf16)
        qkv = jnp.dot(x, wqkv_ref[...], preferred_element_type=f32) + bqkv_ref[...]
        qkv = jnp.maximum(qkv, 0.0)                       # ReLU activation
        q = qkv[:, 0:D]
        k = qkv[:, D:2 * D]
        v = qkv[:, 2 * D:3 * D]
        v_s[...] = v.astype(bf16).reshape(Bt, N, D)       # bf16 scratch (p@V input)
        # fc(concat(q_i, k_j, kg_ij)) decomposed; the 1-wide contractions run on
        # the VPU + lane reduce instead of wasting MXU output lanes.  The scalar
        # fc bias is folded into the per-query score here (once per (i, j)).
        qsc_s[...] = (jnp.sum(q * wfcq_ref[...], axis=-1, keepdims=True)
                      + bfc_ref[0, 0]).reshape(Bt, N, 1)
        ksc_s[...] = jnp.sum(k * wfck_ref[...], axis=-1,
                             keepdims=True).reshape(Bt, n_kt, Tj)
        m_s[...] = jnp.full((Bt, N, 1), -jnp.inf, dtype=f32)
        l_s[...] = jnp.zeros((Bt, N, 1), dtype=f32)
        acc_s[...] = jnp.zeros((Bt, N, D), dtype=f32)

    # -------- every key tile: relation projection + online-softmax update -----
    # kg arrives in its producer dtype (f32 here); cast to bf16 on the VMEM tile.
    kg2 = kg_ref[...].reshape(Bt * N * Tj, KGd).astype(bf16)
    kg_lin = jnp.maximum(
        jnp.dot(kg2, wkg_ref[...], preferred_element_type=f32) + bkg_ref[...], 0.0)
    kg_sc = jnp.sum(kg_lin * wfckg_ref[...], axis=-1, keepdims=True)
    kg_sc = kg_sc.reshape(Bt, N, Tj)                      # per-pair fc contribution

    logits = qsc_s[...] + ksc_s[:, pl.ds(jt, 1), :] + kg_sc
    s = _leaky_relu(logits)                               # (Bt, N, Tj)

    m_prev = m_s[...]
    m_new = jnp.maximum(m_prev, jnp.max(s, axis=-1, keepdims=True))
    alpha = jnp.exp(m_prev - m_new)
    p = jnp.exp(s - m_new)
    l_s[...] = alpha * l_s[...] + jnp.sum(p, axis=-1, keepdims=True)

    j0 = pl.multiple_of(jt * Tj, Tj)
    v_tile = v_s[:, pl.ds(j0, Tj), :]                     # (Bt, Tj, D) bf16
    acc_s[...] = alpha * acc_s[...] + jnp.einsum(
        "bij,bjd->bid", p.astype(bf16), v_tile, preferred_element_type=f32)
    m_s[...] = m_new

    # ------------- last key tile: finalize softmax, residual, LN, FFN --------
    @pl.when(jt == pl.num_programs(1) - 1)
    def _finalize():
        inv_l = 1.0 / l_s[...]                            # exact; cheap at finalize
        src = (v_s[...].astype(f32) + acc_s[...] * inv_l).reshape(Bt * N, D)
        mean = jnp.mean(src, axis=-1, keepdims=True)
        var = jnp.mean((src - mean) ** 2, axis=-1, keepdims=True)
        ln = (src - mean) * jax.lax.rsqrt(var + 1e-5) * gamma_ref[...] + beta_ref[...]
        h = _leaky_relu(jnp.dot(ln.astype(bf16), w1_ref[...],
                                preferred_element_type=f32) + b1_ref[...])
        ffn = jnp.dot(h.astype(bf16), w2_ref[...],
                      preferred_element_type=f32) + b2_ref[...]
        out_ref[...] = (src + ffn).reshape(Bt, N, D).astype(out_ref.dtype)


_WEIGHT_ORDER = ("wqkv", "bqkv", "wkg", "bkg",
                 "wfcq", "wfck", "wfckg", "bfc",
                 "gamma", "beta", "w1", "b1", "w2", "b2")


def _largest_divisor_leq(n, cap):
    cap = max(1, min(n, cap))
    for d in range(cap, 0, -1):
        if n % d == 0:
            return d
    return 1


def _round_up(x, m):
    return ((x + m - 1) // m) * m


def _padded_bytes(shape, itemsize):
    """Rough VMEM footprint of one buffer (last dim padded to 128 lanes,
    second-to-last to 8 sublanes)."""
    if len(shape) == 0:
        return 4 * 8 * 128
    if len(shape) == 1:
        return _round_up(shape[0] * itemsize, 512)
    lead = 1
    for s in shape[:-2]:
        lead *= s
    return lead * _round_up(shape[-2], 8) * _round_up(shape[-1], 128) * itemsize


def _estimate_vmem_bytes(batch_tile, key_tile, N, D, KGd,
                         vec_itemsize, kg_itemsize, weight_arrays):
    """Padded-block VMEM estimate: double-buffered pipelined operands + weights
    (counted double-buffered; see Buffered(1) TODO) + persistent scratch."""
    n_kt = max(1, N // max(1, key_tile))
    total = 0
    total += 2 * _padded_bytes((batch_tile, N, D), vec_itemsize)          # vec in
    total += 2 * _padded_bytes((batch_tile, N, key_tile, KGd), kg_itemsize)  # kg in
    total += 2 * _padded_bytes((batch_tile, N, D), 4)                     # out
    for w in weight_arrays:
        total += 2 * _padded_bytes(w.shape, jnp.dtype(w.dtype).itemsize)
    total += _padded_bytes((batch_tile, N, D), 2)                         # v_s bf16
    total += _padded_bytes((batch_tile, N, D), 4)                         # acc_s
    total += 3 * _padded_bytes((batch_tile, N, 1), 4)                     # qsc/m/l
    total += _padded_bytes((batch_tile, n_kt, key_tile), 4)               # ksc
    return total


def relational_attention_layer(vectors, kg_matrix, params, *,
                               batch_tile=None, key_tile=None,
                               mxu_dtype=jnp.bfloat16,
                               vmem_budget_bytes=48 * 1024 * 1024):
    B, N, D = vectors.shape
    KGd = kg_matrix.shape[-1]
    assert kg_matrix.shape == (B, N, N, KGd)

    f32 = jnp.float32
    wfc = params["wfc"].astype(f32)                       # (2D + KGd, 1)
    # MXU weight operands in bf16 (parameters: tiny, reused); biases / fc /
    # LayerNorm stay f32; accumulation is f32 in-kernel.
    w = {
        "wqkv": jnp.concatenate(
            [params["wq"], params["wk"], params["wv"]], axis=1).astype(mxu_dtype),
        "bqkv": jnp.concatenate(
            [params["bq"], params["bk"], params["bv"]], axis=1).astype(f32),
        "wkg": params["wkg"].astype(mxu_dtype),
        "bkg": params["bkg"].astype(f32),
        "wfcq": wfc[0:D, 0][None, :],                     # (1, D)
        "wfck": wfc[D:2 * D, 0][None, :],                 # (1, D)
        "wfckg": wfc[2 * D:, 0][None, :],                 # (1, KGd)
        "bfc": params["bfc"].reshape(1, 1).astype(f32),
        "gamma": params["gamma"].astype(f32),
        "beta": params["beta"].astype(f32),
        "w1": params["w1"].astype(mxu_dtype), "b1": params["b1"].astype(f32),
        "w2": params["w2"].astype(mxu_dtype), "b2": params["b2"].astype(f32),
    }
    weight_args = [w[k] for k in _WEIGHT_ORDER]

    # ------------------------------ tile selection ---------------------------
    auto_bt, auto_kt = batch_tile is None, key_tile is None
    if auto_bt:
        # Target ~256 projection/FFN rows per step (128 already saturates the
        # v5e MXU), but keep >= 2 batch tiles so both v7x TensorCores get work.
        row_cap = max(1, 256 // max(N, 1))
        bt_cap = max(1, min(row_cap, max(B // 2, 1)))
        batch_tile = _largest_divisor_leq(B, bt_cap)
    if auto_kt:
        if N % 128 == 0:
            key_tile = 128
            while key_tile * 2 <= min(N, 512) and N % (key_tile * 2) == 0:
                key_tile *= 2
        else:
            key_tile = N

    def _vmem_estimate(bt, kt):
        return _estimate_vmem_bytes(bt, kt, N, D, KGd,
                                    jnp.dtype(vectors.dtype).itemsize,
                                    jnp.dtype(kg_matrix.dtype).itemsize,
                                    weight_args)

    # Shrink key_tile before batch_tile when the plan does not fit the budget.
    if auto_kt:
        while (key_tile > 128 and key_tile % 256 == 0
               and _vmem_estimate(batch_tile, key_tile) > vmem_budget_bytes):
            key_tile //= 2
    if auto_bt:
        while batch_tile > 1 and _vmem_estimate(batch_tile, key_tile) > vmem_budget_bytes:
            batch_tile = _largest_divisor_leq(B, max(1, batch_tile // 2))

    assert B % batch_tile == 0, "batch_tile must divide batch"
    assert N % key_tile == 0, "key_tile must divide n_words"
    # keep key tiles 16-row aligned for bf16 sublane packing (or un-tiled)
    assert key_tile == N or key_tile % 16 == 0
    n_bt, n_kt = B // batch_tile, N // key_tile

    vmem_need = _vmem_estimate(batch_tile, key_tile)
    vmem_limit = int(min(max(vmem_need * 3 // 2, 32 * 1024 * 1024),
                         max(vmem_budget_bytes, 1)))

    # ------------------------------ specs ------------------------------------
    def _weight_spec(name, arr):
        if name == "bfc":            # scalar fc bias -> SMEM (scalar path)
            return pl.BlockSpec(memory_space=pltpu.MemorySpace.SMEM)
        nd = arr.ndim
        return pl.BlockSpec(arr.shape, lambda bt, kt, _nd=nd: (0,) * _nd)

    in_specs = (
        [pl.BlockSpec((batch_tile, N, D), lambda bt, kt: (bt, 0, 0)),
         pl.BlockSpec((batch_tile, N, key_tile, KGd),
                      lambda bt, kt: (bt, 0, kt, 0))]
        + [_weight_spec(k, a) for k, a in zip(_WEIGHT_ORDER, weight_args)]
    )
    out_spec = pl.BlockSpec((batch_tile, N, D), lambda bt, kt: (bt, 0, 0))

    scratch_shapes = [
        pltpu.VMEM((batch_tile, N, D), jnp.bfloat16),     # v (bf16, p@V operand)
        pltpu.VMEM((batch_tile, N, 1), f32),              # q . wfc_q + bfc
        pltpu.VMEM((batch_tile, n_kt, key_tile), f32),    # k . wfc_k (key-tile major)
        pltpu.VMEM((batch_tile, N, 1), f32),              # running max
        pltpu.VMEM((batch_tile, N, 1), f32),              # running sum
        pltpu.VMEM((batch_tile, N, D), f32),              # weighted-V accumulator
    ]

    return pl.pallas_call(
        _rel_attn_kernel,
        out_shape=jax.ShapeDtypeStruct((B, N, D), vectors.dtype),
        grid=(n_bt, n_kt),
        in_specs=in_specs,
        out_specs=out_spec,
        scratch_shapes=scratch_shapes,
        compiler_params=pltpu.CompilerParams(
            dimension_semantics=("parallel", "arbitrary"),
            vmem_limit_bytes=vmem_limit),
    )(vectors, kg_matrix, *weight_args)


def reference_forward(vectors, kg_matrix, params):
    """Pure-JAX reference mirroring the PyTorch forward (dropout = identity)."""
    B, N, D = vectors.shape

    def lin(x, wt, b):
        return x @ wt + b

    q = jax.nn.relu(lin(vectors, params["wq"], params["bq"]))
    k = jax.nn.relu(lin(vectors, params["wk"], params["bk"]))
    v = jax.nn.relu(lin(vectors, params["wv"], params["bv"]))
    kg = jax.nn.relu(lin(kg_matrix, params["wkg"], params["bkg"]))

    q_exp = jnp.broadcast_to(q[:, :, None, :], (B, N, N, D))    # q repeated over j
    k_exp = jnp.broadcast_to(k[:, None, :, :], (B, N, N, D))    # k repeated over i
    z = jnp.concatenate([q_exp, k_exp, kg], axis=-1)            # (B, N, N, 2D+KGd)

    logits = (z @ params["wfc"])[..., 0] + params["bfc"][0, 0]
    aw = jnp.where(logits >= 0, logits, 0.01 * logits)
    attn = jax.nn.softmax(aw, axis=-1)
    attn_out = jnp.einsum("bij,bjd->bid", attn, v)

    src = v + attn_out
    mean = jnp.mean(src, axis=-1, keepdims=True)
    var = jnp.mean((src - mean) ** 2, axis=-1, keepdims=True)
    ln = (src - mean) / jnp.sqrt(var + 1e-5) * params["gamma"] + params["beta"]

    h = lin(ln, params["w1"], params["b1"])
    h = jnp.where(h >= 0, h, 0.01 * h)
    src2 = lin(h, params["w2"], params["b2"])
    return src + src2


def init_params(key, d_model, kg_dim):
    """Deterministic synthetic parameter init (PyTorch-Linear-like scales);
    weights stored pre-transposed as (in_features, out_features)."""
    ks = jax.random.split(key, 16)
    u = lambda k, shape, scale: jax.random.uniform(k, shape, jnp.float32, -scale, scale)
    s_d = 1.0 / jnp.sqrt(d_model)
    s_kg = 1.0 / jnp.sqrt(kg_dim)
    s_fc = 1.0 / jnp.sqrt(2 * d_model + kg_dim)
    return {
        "wq": u(ks[0], (d_model, d_model), s_d), "bq": u(ks[1], (1, d_model), s_d),
        "wk": u(ks[2], (d_model, d_model), s_d), "bk": u(ks[3], (1, d_model), s_d),
        "wv": u(ks[4], (d_model, d_model), s_d), "bv": u(ks[5], (1, d_model), s_d),
        "wkg": u(ks[6], (kg_dim, kg_dim), s_kg), "bkg": u(ks[7], (1, kg_dim), s_kg),
        "wfc": u(ks[8], (2 * d_model + kg_dim, 1), s_fc),
        "bfc": u(ks[9], (1, 1), s_fc),
        "gamma": jnp.ones((1, d_model), jnp.float32),
        "beta": jnp.zeros((1, d_model), jnp.float32),
        "w1": u(ks[10], (d_model, d_model), s_d), "b1": u(ks[11], (1, d_model), s_d),
        "w2": u(ks[12], (d_model, d_model), s_d), "b2": u(ks[13], (1, d_model), s_d),
    }


if __name__ == "__main__":
    key = jax.random.PRNGKey(0)
    k_vec, k_kg, k_params, k_vec2, k_kg2 = jax.random.split(key, 5)

    d_model, kg_dim = 32, 16
    params = init_params(k_params, d_model, kg_dim)

    # config 1: 2 batch tiles (megacore split) x 2 key tiles (online softmax)
    bsz, n_words = 4, 32
    vectors = jax.random.normal(k_vec, (bsz, n_words, d_model), jnp.float32)
    kg_matrix = jax.random.normal(k_kg, (bsz, n_words, n_words, kg_dim), jnp.float32)
    out = relational_attention_layer(vectors, kg_matrix, params,
                                     batch_tile=2, key_tile=16)
    out = jax.block_until_ready(out)
    ref = reference_forward(vectors, kg_matrix, params)
    assert out.shape == (bsz, n_words, d_model)
    err = jnp.max(jnp.abs(out - ref))
    # bf16 MXU operands -> ~1e-2 level deviation from the f32 reference.
    assert jnp.allclose(out, ref, atol=5e-2, rtol=5e-2), f"config1 max err {err}"

    # config 2: deeper key streaming (4 key tiles) on a longer sequence
    bsz2, n_words2 = 2, 64
    vectors2 = jax.random.normal(k_vec2, (bsz2, n_words2, d_model), jnp.float32)
    kg_matrix2 = jax.random.normal(
        k_kg2, (bsz2, n_words2, n_words2, kg_dim), jnp.float32)
    out2 = relational_attention_layer(vectors2, kg_matrix2, params,
                                      batch_tile=1, key_tile=16)
    out2 = jax.block_until_ready(out2)
    ref2 = reference_forward(vectors2, kg_matrix2, params)
    err2 = jnp.max(jnp.abs(out2 - ref2))
    assert jnp.allclose(out2, ref2, atol=5e-2, rtol=5e-2), f"config2 max err {err2}"

    print("KERNEL_OK")
</pallas_src>

<mosaic_0001>
module attributes {stable_mosaic.version = 11 : i64} {
  func.func @_rel_attn_kernel(%arg0: i32, %arg1: i32, %arg2: memref<2x32x32xf32, #tpu.memory_space<vmem>>, %arg3: memref<2x32x16x16xf32, #tpu.memory_space<vmem>>, %arg4: memref<32x96xbf16, #tpu.memory_space<vmem>>, %arg5: memref<1x96xf32, #tpu.memory_space<vmem>>, %arg6: memref<16x16xbf16, #tpu.memory_space<vmem>>, %arg7: memref<1x16xf32, #tpu.memory_space<vmem>>, %arg8: memref<1x32xf32, #tpu.memory_space<vmem>>, %arg9: memref<1x32xf32, #tpu.memory_space<vmem>>, %arg10: memref<1x16xf32, #tpu.memory_space<vmem>>, %arg11: memref<1x1xf32, #tpu.memory_space<smem>>, %arg12: memref<1x32xf32, #tpu.memory_space<vmem>>, %arg13: memref<1x32xf32, #tpu.memory_space<vmem>>, %arg14: memref<32x32xbf16, #tpu.memory_space<vmem>>, %arg15: memref<1x32xf32, #tpu.memory_space<vmem>>, %arg16: memref<32x32xbf16, #tpu.memory_space<vmem>>, %arg17: memref<1x32xf32, #tpu.memory_space<vmem>>, %arg18: memref<2x32x32xf32, #tpu.memory_space<vmem>>, %arg19: memref<2x32x32xbf16, #tpu.memory_space<vmem>>, %arg20: memref<2x32x1xf32, #tpu.memory_space<vmem>>, %arg21: memref<2x2x16xf32, #tpu.memory_space<vmem>>, %arg22: memref<2x32x1xf32, #tpu.memory_space<vmem>>, %arg23: memref<2x32x1xf32, #tpu.memory_space<vmem>>, %arg24: memref<2x32x32xf32, #tpu.memory_space<vmem>>) attributes {dimension_semantics = [#tpu.dimension_semantics<parallel>, #tpu.dimension_semantics<arbitrary>], iteration_bounds = array<i64: 2, 2>, scalar_prefetch = 0 : i64, scratch_operands = 6 : i64, tpu.core_type = #tpu.core_type<tc>, window_params = [{transform_indices = @transform_0, window_bounds = array<i64: 2, 32, 32>}, {transform_indices = @transform_1, window_bounds = array<i64: 2, 32, 16, 16>}, {pipeline_mode = #tpu.pipeline_mode<synchronous>, transform_indices = @transform_2, window_bounds = array<i64: 32, 96>}, {pipeline_mode = #tpu.pipeline_mode<synchronous>, transform_indices = @transform_3, window_bounds = array<i64: 1, 96>}, {pipeline_mode = #tpu.pipeline_mode<synchronous>, transform_indices = @transform_4, window_bounds = array<i64: 16, 16>}, {pipeline_mode = #tpu.pipeline_mode<synchronous>, transform_indices = @transform_5, window_bounds = array<i64: 1, 16>}, {pipeline_mode = #tpu.pipeline_mode<synchronous>, transform_indices = @transform_6, window_bounds = array<i64: 1, 32>}, {pipeline_mode = #tpu.pipeline_mode<synchronous>, transform_indices = @transform_7, window_bounds = array<i64: 1, 32>}, {pipeline_mode = #tpu.pipeline_mode<synchronous>, transform_indices = @transform_8, window_bounds = array<i64: 1, 16>}, {transform_indices = @transform_9, window_bounds = array<i64: 1, 1>}, {pipeline_mode = #tpu.pipeline_mode<synchronous>, transform_indices = @transform_10, window_bounds = array<i64: 1, 32>}, {pipeline_mode = #tpu.pipeline_mode<synchronous>, transform_indices = @transform_11, window_bounds = array<i64: 1, 32>}, {pipeline_mode = #tpu.pipeline_mode<synchronous>, transform_indices = @transform_12, window_bounds = array<i64: 32, 32>}, {pipeline_mode = #tpu.pipeline_mode<synchronous>, transform_indices = @transform_13, window_bounds = array<i64: 1, 32>}, {pipeline_mode = #tpu.pipeline_mode<synchronous>, transform_indices = @transform_14, window_bounds = array<i64: 32, 32>}, {pipeline_mode = #tpu.pipeline_mode<synchronous>, transform_indices = @transform_15, window_bounds = array<i64: 1, 32>}, {transform_indices = @transform_16, window_bounds = array<i64: 2, 32, 32>}]} {
    %c0_i32 = arith.constant 0 : i32
    %0 = arith.cmpi eq, %arg1, %c0_i32 : i32
    %1 = arith.extui %0 : i1 to i32
    %c0_i32_0 = arith.constant 0 : i32
    %2 = arith.cmpi ne, %1, %c0_i32_0 : i32
    scf.if %2 {
      %c0_43 = arith.constant 0 : index
      %c0_44 = arith.constant 0 : index
      %c0_45 = arith.constant 0 : index
      %61 = vector.load %arg2[%c0_43, %c0_44, %c0_45] : memref<2x32x32xf32, #tpu.memory_space<vmem>>, vector<2x32x32xf32>
      %62 = vector.shape_cast %61 : vector<2x32x32xf32> to vector<64x32xf32>
      %63 = arith.truncf %62 : vector<64x32xf32> to vector<64x32xbf16>
      %c0_46 = arith.constant 0 : index
      %c0_47 = arith.constant 0 : index
      %64 = vector.load %arg4[%c0_46, %c0_47] : memref<32x96xbf16, #tpu.memory_space<vmem>>, vector<32x96xbf16>
      %cst_48 = arith.constant dense<0.000000e+00> : vector<64x96xf32>
      %65 = tpu.matmul %63, %64, %cst_48 {dimension_numbers = #tpu.dot_dimension_numbers<[1], [0], [0], [1], [0, 0, 1, 1], [], []>} : vector<64x32xbf16>, vector<32x96xbf16>, vector<64x96xf32> -> vector<64x96xf32>
      %c0_49 = arith.constant 0 : index
      %c0_50 = arith.constant 0 : index
      %66 = vector.load %arg5[%c0_49, %c0_50] : memref<1x96xf32, #tpu.memory_space<vmem>>, vector<1x96xf32>
      %67 = vector.broadcast %66 : vector<1x96xf32> to vector<64x96xf32>
      %68 = arith.addf %65, %67 : vector<64x96xf32>
      %cst_51 = arith.constant 0.000000e+00 : f32
      %69 = vector.broadcast %cst_51 : f32 to vector<64x96xf32>
      %70 = arith.maximumf %68, %69 : vector<64x96xf32>
      %71 = vector.extract_strided_slice %70 {offsets = [0, 0], sizes = [64, 32], strides = [1, 1]} : vector<64x96xf32> to vector<64x32xf32>
      %72 = vector.extract_strided_slice %70 {offsets = [0, 32], sizes = [64, 32], strides = [1, 1]} : vector<64x96xf32> to vector<64x32xf32>
      %73 = vector.extract_strided_slice %70 {offsets = [0, 64], sizes = [64, 32], strides = [1, 1]} : vector<64x96xf32> to vector<64x32xf32>
      %74 = arith.truncf %73 : vector<64x32xf32> to vector<64x32xbf16>
      %75 = vector.shape_cast %74 : vector<64x32xbf16> to vector<2x32x32xbf16>
      %c0_52 = arith.constant 0 : index
      %c0_53 = arith.constant 0 : index
      %c0_54 = arith.constant 0 : index
      %76 = vector.load %arg19[%c0_52, %c0_53, %c0_54] : memref<2x32x32xbf16, #tpu.memory_space<vmem>>, vector<2x32x32xbf16>
      tpu.vector_store %arg19[%c0_52, %c0_53, %c0_54], %75 {strides = array<i32>} : memref<2x32x32xbf16, #tpu.memory_space<vmem>>, vector<2x32x32xbf16>,
      %c0_55 = arith.constant 0 : index
      %c0_56 = arith.constant 0 : index
      %77 = vector.load %arg8[%c0_55, %c0_56] : memref<1x32xf32, #tpu.memory_space<vmem>>, vector<1x32xf32>
      %78 = vector.broadcast %77 : vector<1x32xf32> to vector<64x32xf32>
      %79 = arith.mulf %71, %78 : vector<64x32xf32>
      %cst_57 = arith.constant dense<0.000000e+00> : vector<64xf32>
      %80 = vector.multi_reduction <add>, %79, %cst_57 [1] : vector<64x32xf32> to vector<64xf32>
      %81 = vector.shape_cast %80 : vector<64xf32> to vector<64x1xf32>
      %c0_58 = arith.constant 0 : index
      %c0_59 = arith.constant 0 : index
      %82 = memref.load %arg11[%c0_58, %c0_59] : memref<1x1xf32, #tpu.memory_space<smem>>
      %83 = vector.broadcast %82 : f32 to vector<64x1xf32>
      %84 = arith.addf %81, %83 : vector<64x1xf32>
      %85 = vector.shape_cast %84 : vector<64x1xf32> to vector<2x32x1xf32>
      %c0_60 = arith.constant 0 : index
      %c0_61 = arith.constant 0 : index
      %c0_62 = arith.constant 0 : index
      %86 = vector.load %arg20[%c0_60, %c0_61, %c0_62] : memref<2x32x1xf32, #tpu.memory_space<vmem>>, vector<2x32x1xf32>
      tpu.vector_store %arg20[%c0_60, %c0_61, %c0_62], %85 {strides = array<i32>} : memref<2x32x1xf32, #tpu.memory_space<vmem>>, vector<2x32x1xf32>,
      %c0_63 = arith.constant 0 : index
      %c0_64 = arith.constant 0 : index
      %87 = vector.load %arg9[%c0_63, %c0_64] : memref<1x32xf32, #tpu.memory_space<vmem>>, vector<1x32xf32>
      %88 = vector.broadcast %87 : vector<1x32xf32> to vector<64x32xf32>
      %89 = arith.mulf %72, %88 : vector<64x32xf32>
      %cst_65 = arith.constant dense<0.000000e+00> : vector<64xf32>
      %90 = vector.multi_reduction <add>, %89, %cst_65 [1] : vector<64x32xf32> to vector<64xf32>
      %91 = vector.shape_cast %90 : vector<64xf32> to vector<64x1xf32>
      %92 = vector.shape_cast %91 : vector<64x1xf32> to vector<2x2x16xf32>
      %c0_66 = arith.constant 0 : index
      %c0_67 = arith.constant 0 : index
      %c0_68 = arith.constant 0 : index
      %93 = vector.load %arg21[%c0_66, %c0_67, %c0_68] : memref<2x2x16xf32, #tpu.memory_space<vmem>>, vector<2x2x16xf32>
      tpu.vector_store %arg21[%c0_66, %c0_67, %c0_68], %92 {strides = array<i32>} : memref<2x2x16xf32, #tpu.memory_space<vmem>>, vector<2x2x16xf32>,
      %cst_69 = arith.constant 0xFF800000 : f32
      %94 = vector.broadcast %cst_69 : f32 to vector<2x32x1xf32>
      %c0_70 = arith.constant 0 : index
      %c0_71 = arith.constant 0 : index
      %c0_72 = arith.constant 0 : index
      %95 = vector.load %arg22[%c0_70, %c0_71, %c0_72] : memref<2x32x1xf32, #tpu.memory_space<vmem>>, vector<2x32x1xf32>
      tpu.vector_store %arg22[%c0_70, %c0_71, %c0_72], %94 {strides = array<i32>} : memref<2x32x1xf32, #tpu.memory_space<vmem>>, vector<2x32x1xf32>,
      %cst_73 = arith.constant 0.000000e+00 : f32
      %96 = vector.broadcast %cst_73 : f32 to vector<2x32x1xf32>
      %c0_74 = arith.constant 0 : index
      %c0_75 = arith.constant 0 : index
      %c0_76 = arith.constant 0 : index
      %97 = vector.load %arg23[%c0_74, %c0_75, %c0_76] : memref<2x32x1xf32, #tpu.memory_space<vmem>>, vector<2x32x1xf32>
      tpu.vector_store %arg23[%c0_74, %c0_75, %c0_76], %96 {strides = array<i32>} : memref<2x32x1xf32, #tpu.memory_space<vmem>>, vector<2x32x1xf32>,
      %cst_77 = arith.constant 0.000000e+00 : f32
      %98 = vector.broadcast %cst_77 : f32 to vector<2x32x32xf32>
      %c0_78 = arith.constant 0 : index
      %c0_79 = arith.constant 0 : index
      %c0_80 = arith.constant 0 : index
      %99 = vector.load %arg24[%c0_78, %c0_79, %c0_80] : memref<2x32x32xf32, #tpu.memory_space<vmem>>, vector<2x32x32xf32>
      tpu.vector_store %arg24[%c0_78, %c0_79, %c0_80], %98 {strides = array<i32>} : memref<2x32x32xf32, #tpu.memory_space<vmem>>, vector<2x32x32xf32>,
    } else {
    }
    %c0 = arith.constant 0 : index
    %c0_1 = arith.constant 0 : index
    %c0_2 = arith.constant 0 : index
    %c0_3 = arith.constant 0 : index
    %3 = vector.load %arg3[%c0, %c0_1, %c0_2, %c0_3] : memref<2x32x16x16xf32, #tpu.memory_space<vmem>>, vector<2x32x16x16xf32>
    %4 = vector.shape_cast %3 : vector<2x32x16x16xf32> to vector<1024x16xf32>
    %5 = arith.truncf %4 : vector<1024x16xf32> to vector<1024x16xbf16>
    %c0_4 = arith.constant 0 : index
    %c0_5 = arith.constant 0 : index
    %6 = vector.load %arg6[%c0_4, %c0_5] : memref<16x16xbf16, #tpu.memory_space<vmem>>, vector<16x16xbf16>
    %cst = arith.constant dense<0.000000e+00> : vector<1024x16xf32>
    %7 = tpu.matmul %5, %6, %cst {dimension_numbers = #tpu.dot_dimension_numbers<[1], [0], [0], [1], [0, 0, 1, 1], [], []>} : vector<1024x16xbf16>, vector<16x16xbf16>, vector<1024x16xf32> -> vector<1024x16xf32>
    %c0_6 = arith.constant 0 : index
    %c0_7 = arith.constant 0 : index
    %8 = vector.load %arg7[%c0_6, %c0_7] : memref<1x16xf32, #tpu.memory_space<vmem>>, vector<1x16xf32>
    %9 = vector.broadcast %8 : vector<1x16xf32> to vector<1024x16xf32>
    %10 = arith.addf %7, %9 : vector<1024x16xf32>
    %cst_8 = arith.constant 0.000000e+00 : f32
    %11 = vector.broadcast %cst_8 : f32 to vector<1024x16xf32>
    %12 = arith.maximumf %10, %11 : vector<1024x16xf32>
    %c0_9 = arith.constant 0 : index
    %c0_10 = arith.constant 0 : index
    %13 = vector.load %arg10[%c0_9, %c0_10] : memref<1x16xf32, #tpu.memory_space<vmem>>, vector<1x16xf32>
    %14 = vector.broadcast %13 : vector<1x16xf32> to vector<1024x16xf32>
    %15 = arith.mulf %12, %14 : vector<1024x16xf32>
    %cst_11 = arith.constant dense<0.000000e+00> : vector<1024xf32>
    %16 = vector.multi_reduction <add>, %15, %cst_11 [1] : vector<1024x16xf32> to vector<1024xf32>
    %17 = vector.shape_cast %16 : vector<1024xf32> to vector<1024x1xf32>
    %18 = vector.shape_cast %17 : vector<1024x1xf32> to vector<2x32x16xf32>
    %c0_12 = arith.constant 0 : index
    %c0_13 = arith.constant 0 : index
    %c0_14 = arith.constant 0 : index
    %19 = vector.load %arg20[%c0_12, %c0_13, %c0_14] : memref<2x32x1xf32, #tpu.memory_space<vmem>>, vector<2x32x1xf32>
    %c0_15 = arith.constant 0 : index
    %20 = arith.index_cast %arg1 : i32 to index
    %c0_16 = arith.constant 0 : index
    %21 = vector.load %arg21[%c0_15, %20, %c0_16] : memref<2x2x16xf32, #tpu.memory_space<vmem>>, vector<2x1x16xf32>
    %22 = vector.broadcast %19 : vector<2x32x1xf32> to vector<2x32x16xf32>
    %23 = vector.broadcast %21 : vector<2x1x16xf32> to vector<2x32x16xf32>
    %24 = arith.addf %22, %23 : vector<2x32x16xf32>
    %25 = arith.addf %24, %18 : vector<2x32x16xf32>
    %cst_17 = arith.constant 0.000000e+00 : f32
    %26 = vector.broadcast %cst_17 : f32 to vector<2x32x16xf32>
    %27 = arith.cmpf oge, %25, %26 : vector<2x32x16xf32>
    %cst_18 = arith.constant 0.00999999977 : f32
    %28 = vector.broadcast %cst_18 : f32 to vector<2x32x16xf32>
    %29 = arith.mulf %28, %25 : vector<2x32x16xf32>
    %30 = arith.select %27, %25, %29 : vector<2x32x16xi1>, vector<2x32x16xf32>
    %c0_19 = arith.constant 0 : index
    %c0_20 = arith.constant 0 : index
    %c0_21 = arith.constant 0 : index
    %31 = vector.load %arg22[%c0_19, %c0_20, %c0_21] : memref<2x32x1xf32, #tpu.memory_space<vmem>>, vector<2x32x1xf32>
    %cst_22 = arith.constant dense<0xFF800000> : vector<2x32xf32>
    %32 = vector.multi_reduction <maximumf>, %30, %cst_22 [2] : vector<2x32x16xf32> to vector<2x32xf32>
    %33 = vector.shape_cast %32 : vector<2x32xf32> to vector<2x32x1xf32>
    %34 = arith.maximumf %31, %33 : vector<2x32x1xf32>
    %35 = arith.subf %31, %34 : vector<2x32x1xf32>
    %36 = math.exp %35 : vector<2x32x1xf32>
    %37 = vector.broadcast %34 : vector<2x32x1xf32> to vector<2x32x16xf32>
    %38 = arith.subf %30, %37 : vector<2x32x16xf32>
    %39 = math.exp %38 : vector<2x32x16xf32>
    %c0_23 = arith.constant 0 : index
    %c0_24 = arith.constant 0 : index
    %c0_25 = arith.constant 0 : index
    %40 = vector.load %arg23[%c0_23, %c0_24, %c0_25] : memref<2x32x1xf32, #tpu.memory_space<vmem>>, vector<2x32x1xf32>
    %41 = arith.mulf %36, %40 : vector<2x32x1xf32>
    %cst_26 = arith.constant dense<0.000000e+00> : vector<2x32xf32>
    %42 = vector.multi_reduction <add>, %39, %cst_26 [2] : vector<2x32x16xf32> to vector<2x32xf32>
    %43 = vector.shape_cast %42 : vector<2x32xf32> to vector<2x32x1xf32>
    %44 = arith.addf %41, %43 : vector<2x32x1xf32>
    %c0_27 = arith.constant 0 : index
    %c0_28 = arith.constant 0 : index
    %c0_29 = arith.constant 0 : index
    %45 = vector.load %arg23[%c0_27, %c0_28, %c0_29] : memref<2x32x1xf32, #tpu.memory_space<vmem>>, vector<2x32x1xf32>
    tpu.vector_store %arg23[%c0_27, %c0_28, %c0_29], %44 {strides = array<i32>} : memref<2x32x1xf32, #tpu.memory_space<vmem>>, vector<2x32x1xf32>,
    %c16_i32 = arith.constant 16 : i32
    %46 = arith.muli %arg1, %c16_i32 : i32
    %47 = tpu.assume_multiple %46, 16 : i32
    %c0_30 = arith.constant 0 : index
    %48 = arith.index_cast %47 : i32 to index
    %c0_31 = arith.constant 0 : index
    %49 = vector.load %arg19[%c0_30, %48, %c0_31] : memref<2x32x32xbf16, #tpu.memory_space<vmem>>, vector<2x16x32xbf16>
    %c0_32 = arith.constant 0 : index
    %c0_33 = arith.constant 0 : index
    %c0_34 = arith.constant 0 : index
    %50 = vector.load %arg24[%c0_32, %c0_33, %c0_34] : memref<2x32x32xf32, #tpu.memory_space<vmem>>, vector<2x32x32xf32>
    %51 = vector.broadcast %36 : vector<2x32x1xf32> to vector<2x32x32xf32>
    %52 = arith.mulf %51, %50 : vector<2x32x32xf32>
    %53 = arith.truncf %39 : vector<2x32x16xf32> to vector<2x32x16xbf16>
    "tpu.trace_start"() <{level = 10 : i32, message = "bij,bjd->bid"}> : () -> ()
    %cst_35 = arith.constant dense<0.000000e+00> : vector<2x32x32xf32>
    %54 = tpu.matmul %53, %49, %cst_35 {dimension_numbers = #tpu.dot_dimension_numbers<[2], [1], [1], [2], [0, 0, 0, 1, 1, 2], [0], [0]>} : vector<2x32x16xbf16>, vector<2x16x32xbf16>, vector<2x32x32xf32> -> vector<2x32x32xf32>
    "tpu.trace_stop"() : () -> ()
    %55 = arith.addf %52, %54 : vector<2x32x32xf32>
    %c0_36 = arith.constant 0 : index
    %c0_37 = arith.constant 0 : index
    %c0_38 = arith.constant 0 : index
    %56 = vector.load %arg24[%c0_36, %c0_37, %c0_38] : memref<2x32x32xf32, #tpu.memory_space<vmem>>, vector<2x32x32xf32>
    tpu.vector_store %arg24[%c0_36, %c0_37, %c0_38], %55 {strides = array<i32>} : memref<2x32x32xf32, #tpu.memory_space<vmem>>, vector<2x32x32xf32>,
    %c0_39 = arith.constant 0 : index
    %c0_40 = arith.constant 0 : index
    %c0_41 = arith.constant 0 : index
    %57 = vector.load %arg22[%c0_39, %c0_40, %c0_41] : memref<2x32x1xf32, #tpu.memory_space<vmem>>, vector<2x32x1xf32>
    tpu.vector_store %arg22[%c0_39, %c0_40, %c0_41], %34 {strides = array<i32>} : memref<2x32x1xf32, #tpu.memory_space<vmem>>, vector<2x32x1xf32>,
    %c1_i32 = arith.constant 1 : i32
    %58 = arith.cmpi eq, %arg1, %c1_i32 : i32
    %59 = arith.extui %58 : i1 to i32
    %c0_i32_42 = arith.constant 0 : i32
    %60 = arith.cmpi ne, %59, %c0_i32_42 : i32
    scf.if %60 {
      %c0_43 = arith.constant 0 : index
      %c0_44 = arith.constant 0 : index
      %c0_45 = arith.constant 0 : index
      %61 = vector.load %arg23[%c0_43, %c0_44, %c0_45] : memref<2x32x1xf32, #tpu.memory_space<vmem>>, vector<2x32x1xf32>
      %cst_46 = arith.constant 1.000000e+00 : f32
      %62 = vector.broadcast %cst_46 : f32 to vector<2x32x1xf32>
      %63 = arith.divf %62, %61 : vector<2x32x1xf32>
      %c0_47 = arith.constant 0 : index
      %c0_48 = arith.constant 0 : index
      %c0_49 = arith.constant 0 : index
      %64 = vector.load %arg19[%c0_47, %c0_48, %c0_49] : memref<2x32x32xbf16, #tpu.memory_space<vmem>>, vector<2x32x32xbf16>
      %65 = arith.extf %64 : vector<2x32x32xbf16> to vector<2x32x32xf32>
      %c0_50 = arith.constant 0 : index
      %c0_51 = arith.constant 0 : index
      %c0_52 = arith.constant 0 : index
      %66 = vector.load %arg24[%c0_50, %c0_51, %c0_52] : memref<2x32x32xf32, #tpu.memory_space<vmem>>, vector<2x32x32xf32>
      %67 = vector.broadcast %63 : vector<2x32x1xf32> to vector<2x32x32xf32>
      %68 = arith.mulf %66, %67 : vector<2x32x32xf32>
      %69 = arith.addf %65, %68 : vector<2x32x32xf32>
      %70 = vector.shape_cast %69 : vector<2x32x32xf32> to vector<64x32xf32>
      %cst_53 = arith.constant dense<0.000000e+00> : vector<64xf32>
      %71 = vector.multi_reduction <add>, %70, %cst_53 [1] : vector<64x32xf32> to vector<64xf32>
      %72 = vector.shape_cast %71 : vector<64xf32> to vector<64x1xf32>
      %cst_54 = arith.constant 3.200000e+01 : f32
      %73 = vector.broadcast %cst_54 : f32 to vector<64x1xf32>
      %74 = arith.divf %72, %73 : vector<64x1xf32>
      %75 = vector.broadcast %74 : vector<64x1xf32> to vector<64x32xf32>
      %76 = arith.subf %70, %75 : vector<64x32xf32>
      %77 = arith.mulf %76, %76 : vector<64x32xf32>
      %cst_55 = arith.constant dense<0.000000e+00> : vector<64xf32>
      %78 = vector.multi_reduction <add>, %77, %cst_55 [1] : vector<64x32xf32> to vector<64xf32>
      %79 = vector.shape_cast %78 : vector<64xf32> to vector<64x1xf32>
      %cst_56 = arith.constant 3.200000e+01 : f32
      %80 = vector.broadcast %cst_56 : f32 to vector<64x1xf32>
      %81 = arith.divf %79, %80 : vector<64x1xf32>
      %82 = vector.broadcast %74 : vector<64x1xf32> to vector<64x32xf32>
      %83 = arith.subf %70, %82 : vector<64x32xf32>
      %cst_57 = arith.constant 9.99999974E-6 : f32
      %84 = vector.broadcast %cst_57 : f32 to vector<64x1xf32>
      %85 = arith.addf %81, %84 : vector<64x1xf32>
      %86 = math.rsqrt %85 : vector<64x1xf32>
      %87 = vector.broadcast %86 : vector<64x1xf32> to vector<64x32xf32>
      %88 = arith.mulf %83, %87 : vector<64x32xf32>
      %c0_58 = arith.constant 0 : index
      %c0_59 = arith.constant 0 : index
      %89 = vector.load %arg12[%c0_58, %c0_59] : memref<1x32xf32, #tpu.memory_space<vmem>>, vector<1x32xf32>
      %90 = vector.broadcast %89 : vector<1x32xf32> to vector<64x32xf32>
      %91 = arith.mulf %88, %90 : vector<64x32xf32>
      %c0_60 = arith.constant 0 : index
      %c0_61 = arith.constant 0 : index
      %92 = vector.load %arg13[%c0_60, %c0_61] : memref<1x32xf32, #tpu.memory_space<vmem>>, vector<1x32xf32>
      %93 = vector.broadcast %92 : vector<1x32xf32> to vector<64x32xf32>
      %94 = arith.addf %91, %93 : vector<64x32xf32>
      %95 = arith.truncf %94 : vector<64x32xf32> to vector<64x32xbf16>
      %c0_62 = arith.constant 0 : index
      %c0_63 = arith.constant 0 : index
      %96 = vector.load %arg14[%c0_62, %c0_63] : memref<32x32xbf16, #tpu.memory_space<vmem>>, vector<32x32xbf16>
      %cst_64 = arith.constant dense<0.000000e+00> : vector<64x32xf32>
      %97 = tpu.matmul %95, %96, %cst_64 {dimension_numbers = #tpu.dot_dimension_numbers<[1], [0], [0], [1], [0, 0, 1, 1], [], []>} : vector<64x32xbf16>, vector<32x32xbf16>, vector<64x32xf32> -> vector<64x32xf32>
      %c0_65 = arith.constant 0 : index
      %c0_66 = arith.constant 0 : index
      %98 = vector.load %arg15[%c0_65, %c0_66] : memref<1x32xf32, #tpu.memory_space<vmem>>, vector<1x32xf32>
      %99 = vector.broadcast %98 : vector<1x32xf32> to vector<64x32xf32>
      %100 = arith.addf %97, %99 : vector<64x32xf32>
      %cst_67 = arith.constant 0.000000e+00 : f32
      %101 = vector.broadcast %cst_67 : f32 to vector<64x32xf32>
      %102 = arith.cmpf oge, %100, %101 : vector<64x32xf32>
      %cst_68 = arith.constant 0.00999999977 : f32
      %103 = vector.broadcast %cst_68 : f32 to vector<64x32xf32>
      %104 = arith.mulf %103, %100 : vector<64x32xf32>
      %105 = arith.select %102, %100, %104 : vector<64x32xi1>, vector<64x32xf32>
      %106 = arith.truncf %105 : vector<64x32xf32> to vector<64x32xbf16>
      %c0_69 = arith.constant 0 : index
      %c0_70 = arith.constant 0 : index
      %107 = vector.load %arg16[%c0_69, %c0_70] : memref<32x32xbf16, #tpu.memory_space<vmem>>, vector<32x32xbf16>
      %cst_71 = arith.constant dense<0.000000e+00> : vector<64x32xf32>
      %108 = tpu.matmul %106, %107, %cst_71 {dimension_numbers = #tpu.dot_dimension_numbers<[1], [0], [0], [1], [0, 0, 1, 1], [], []>} : vector<64x32xbf16>, vector<32x32xbf16>, vector<64x32xf32> -> vector<64x32xf32>
      %c0_72 = arith.constant 0 : index
      %c0_73 = arith.constant 0 : index
      %109 = vector.load %arg17[%c0_72, %c0_73] : memref<1x32xf32, #tpu.memory_space<vmem>>, vector<1x32xf32>
      %110 = vector.broadcast %109 : vector<1x32xf32> to vector<64x32xf32>
      %111 = arith.addf %108, %110 : vector<64x32xf32>
      %112 = arith.addf %70, %111 : vector<64x32xf32>
      %113 = vector.shape_cast %112 : vector<64x32xf32> to vector<2x32x32xf32>
      %c0_74 = arith.constant 0 : index
      %c0_75 = arith.constant 0 : index
      %c0_76 = arith.constant 0 : index
      %114 = vector.load %arg18[%c0_74, %c0_75, %c0_76] : memref<2x32x32xf32, #tpu.memory_space<vmem>>, vector<2x32x32xf32>
      tpu.vector_store %arg18[%c0_74, %c0_75, %c0_76], %113 {strides = array<i32>} : memref<2x32x32xf32, #tpu.memory_space<vmem>>, vector<2x32x32xf32>,
    } else {
    }
    return
  }
  func.func @transform_0(%arg0: i32, %arg1: i32) -> (i32, i32, i32) {
    %c0_i32 = arith.constant 0 : i32
    %c0_i32_0 = arith.constant 0 : i32
    %c0_i32_1 = arith.constant 0 : i32
    return %arg0, %c0_i32, %c0_i32_0 : i32, i32, i32
  }
  func.func @transform_1(%arg0: i32, %arg1: i32) -> (i32, i32, i32, i32) {
    %c0_i32 = arith.constant 0 : i32
    %c0_i32_0 = arith.constant 0 : i32
    %c0_i32_1 = arith.constant 0 : i32
    return %arg0, %c0_i32, %arg1, %c0_i32_0 : i32, i32, i32, i32
  }
  func.func @transform_2(%arg0: i32, %arg1: i32) -> (i32, i32) {
    %c0_i32 = arith.constant 0 : i32
    %c0_i32_0 = arith.constant 0 : i32
    %c0_i32_1 = arith.constant 0 : i32
    return %c0_i32, %c0_i32_0 : i32, i32
  }
  func.func @transform_3(%arg0: i32, %arg1: i32) -> (i32, i32) {
    %c0_i32 = arith.constant 0 : i32
    %c0_i32_0 = arith.constant 0 : i32
    %c0_i32_1 = arith.constant 0 : i32
    return %c0_i32, %c0_i32_0 : i32, i32
  }
  func.func @transform_4(%arg0: i32, %arg1: i32) -> (i32, i32) {
    %c0_i32 = arith.constant 0 : i32
    %c0_i32_0 = arith.constant 0 : i32
    %c0_i32_1 = arith.constant 0 : i32
    return %c0_i32, %c0_i32_0 : i32, i32
  }
  func.func @transform_5(%arg0: i32, %arg1: i32) -> (i32, i32) {
    %c0_i32 = arith.constant 0 : i32
    %c0_i32_0 = arith.constant 0 : i32
    %c0_i32_1 = arith.constant 0 : i32
    return %c0_i32, %c0_i32_0 : i32, i32
  }
  func.func @transform_6(%arg0: i32, %arg1: i32) -> (i32, i32) {
    %c0_i32 = arith.constant 0 : i32
    %c0_i32_0 = arith.constant 0 : i32
    %c0_i32_1 = arith.constant 0 : i32
    return %c0_i32, %c0_i32_0 : i32, i32
  }
  func.func @transform_7(%arg0: i32, %arg1: i32) -> (i32, i32) {
    %c0_i32 = arith.constant 0 : i32
    %c0_i32_0 = arith.constant 0 : i32
    %c0_i32_1 = arith.constant 0 : i32
    return %c0_i32, %c0_i32_0 : i32, i32
  }
  func.func @transform_8(%arg0: i32, %arg1: i32) -> (i32, i32) {
    %c0_i32 = arith.constant 0 : i32
    %c0_i32_0 = arith.constant 0 : i32
    %c0_i32_1 = arith.constant 0 : i32
    return %c0_i32, %c0_i32_0 : i32, i32
  }
  func.func @transform_9(%arg0: i32, %arg1: i32) -> (i32, i32) {
    %c0_i32 = arith.constant 0 : i32
    %c0_i32_0 = arith.constant 0 : i32
    %c0_i32_1 = arith.constant 0 : i32
    return %c0_i32, %c0_i32_0 : i32, i32
  }
  func.func @transform_10(%arg0: i32, %arg1: i32) -> (i32, i32) {
    %c0_i32 = arith.constant 0 : i32
    %c0_i32_0 = arith.constant 0 : i32
    %c0_i32_1 = arith.constant 0 : i32
    return %c0_i32, %c0_i32_0 : i32, i32
  }
  func.func @transform_11(%arg0: i32, %arg1: i32) -> (i32, i32) {
    %c0_i32 = arith.constant 0 : i32
    %c0_i32_0 = arith.constant 0 : i32
    %c0_i32_1 = arith.constant 0 : i32
    return %c0_i32, %c0_i32_0 : i32, i32
  }
  func.func @transform_12(%arg0: i32, %arg1: i32) -> (i32, i32) {
    %c0_i32 = arith.constant 0 : i32
    %c0_i32_0 = arith.constant 0 : i32
    %c0_i32_1 = arith.constant 0 : i32
    return %c0_i32, %c0_i32_0 : i32, i32
  }
  func.func @transform_13(%arg0: i32, %arg1: i32) -> (i32, i32) {
    %c0_i32 = arith.constant 0 : i32
    %c0_i32_0 = arith.constant 0 : i32
    %c0_i32_1 = arith.constant 0 : i32
    return %c0_i32, %c0_i32_0 : i32, i32
  }
  func.func @transform_14(%arg0: i32, %arg1: i32) -> (i32, i32) {
    %c0_i32 = arith.constant 0 : i32
    %c0_i32_0 = arith.constant 0 : i32
    %c0_i32_1 = arith.constant 0 : i32
    return %c0_i32, %c0_i32_0 : i32, i32
  }
  func.func @transform_15(%arg0: i32, %arg1: i32) -> (i32, i32) {
    %c0_i32 = arith.constant 0 : i32
    %c0_i32_0 = arith.constant 0 : i32
    %c0_i32_1 = arith.constant 0 : i32
    return %c0_i32, %c0_i32_0 : i32, i32
  }
  func.func @transform_16(%arg0: i32, %arg1: i32) -> (i32, i32, i32) {
    %c0_i32 = arith.constant 0 : i32
    %c0_i32_0 = arith.constant 0 : i32
    %c0_i32_1 = arith.constant 0 : i32
    return %arg0, %c0_i32, %c0_i32_0 : i32, i32, i32
  }
}

</mosaic_0001>

<bundles_post_ra>
// kernel: tpu_custom_call.1
= control target key start
LH: loop header
LB: loop body
LE: loop exit
PB: predicated region body
PF: predicated region fallthrough
CT: control target
= control target key end

     0   :  { %s7236_s0 = inlined_call_operand.vmem [shape: f32[4,32,32], index: 0, kind: input, shape index: {}]   ;;  %s7237_s1 = inlined_call_operand.vmem [shape: f32[4,32,32,16], index: 1, kind: input, shape index: {}]   ;;  %s7238_s2 = inlined_call_operand.vmem [shape: bf16[32,96], index: 2, kind: input, shape index: {}]   ;;  %s7239_s3 = inlined_call_operand.vmem [shape: f32[1,96], index: 3, kind: input, shape index: {}]   ;;  %s7240_s4 = inlined_call_operand.vmem [shape: bf16[16,16], index: 4, kind: input, shape index: {}]   ;;  %s7241_s5 = inlined_call_operand.vmem [shape: f32[1,16], index: 5, kind: input, shape index: {}]   ;;  %s7242_s6 = inlined_call_operand.vmem [shape: f32[1,32], index: 6, kind: input, shape index: {}]   ;;  %s7243_s7 = inlined_call_operand.vmem [shape: f32[1,32], index: 7, kind: input, shape index: {}]   ;;  %s7244_s8 = inlined_call_operand.vmem [shape: f32[1,16], index: 8, kind: input, shape index: {}]   ;;  %s7245_s9 = inlined_call_operand.<no memory space> [shape: f32[1,1], index: 9, kind: input, shape index: {}]   ;;  %s7246_s10 = inlined_call_operand.vmem [shape: f32[1,32], index: 10, kind: input, shape index: {}]   ;;  %s7247_s11 = inlined_call_operand.vmem [shape: f32[1,32], index: 11, kind: input, shape index: {}]   ;;  %s7248_s12 = inlined_call_operand.vmem [shape: bf16[32,32], index: 12, kind: input, shape index: {}]   ;;  %s7249_s13 = inlined_call_operand.vmem [shape: f32[1,32], index: 13, kind: input, shape index: {}]   ;;  %s7250_s14 = inlined_call_operand.vmem [shape: bf16[32,32], index: 14, kind: input, shape index: {}]   ;;  %s7251_s15 = inlined_call_operand.vmem [shape: f32[1,32], index: 15, kind: input, shape index: {}]   ;;  %s7252_s16 = inlined_call_operand.hbm [shape: f32[4,32,32], index: 16, kind: output, shape index: {}]  }
   0x1   :  { %7262 = sst [smem:[#allocation19_spill]] %s7236_s0 }
   0x2   :  { %7263 = sst [smem:[#allocation20_spill]] %s7237_s1 }
   0x3   :  { %7264 = sst [smem:[#allocation21_spill]] %s7238_s2 }
   0x4   :  { %7265 = sst [smem:[#allocation22_spill]] %s7246_s10 }
   0x5   :  { %7266 = sst [smem:[#allocation23_spill]] %s7247_s11 }
   0x6   :  { %7267 = sst [smem:[#allocation24_spill]] %s7249_s13 }
   0x7   :  { %7268 = sst [smem:[#allocation25_spill]] %s7250_s14 }
   0x8   :  { %7269 = sst [smem:[#allocation26_spill]] %s7251_s15 }
   0x9   :  { %7270 = sst [smem:[#allocation27_spill]] %s7252_s16 }
   0xa   :  { %21 = sst [smem:[#allocation8]] %s7245_s9 }
   0xb   :  { %22 = vsyncpa [#allocation11], 0 }
   0xc   :  { %24 = vsyncpa [#allocation11 + $0x1], 0  ;;  %s4933_s23 = smov 0   ;;  %s4935_s24 = smov 0  }
   0xd   :  { %s4937_s25 = smov 0   ;;  %s4939_s26 = smov 0  }
   0xe   :  { %s4941_s27 = smov 0   ;;  %s4943_s28 = smov 0  }
   0xf   :  { %s4945_s29 = smov 0   ;;  %s4947_s30 = smov 0  }
  0x10   :  { %s4949_s0 = smov 0   ;;  %s4951_s9 = smov 0  }
  0x11 LB: > { %7271 = sst [smem:[#allocation13_spill]] %s4797_s23  ;;  %s4353_s17 = sadd.s32 4294967295, %s4833_s9   ;;  %s4833_s9 = sphi %s4951_s9, %s30_s9   ;;  %s4829_s0 = sphi %s4949_s0, %s7324_s0   ;;  %s4825_s30 = sphi %s4947_s30, %s7323_s30   ;;  %s4821_s29 = sphi %s4945_s29, %s7322_s29   ;;  %s4817_s28 = sphi %s4943_s28, %s7321_s28   ;;  %s4813_s27 = sphi %s4941_s27, %s7329_s27   ;;  %s4809_s26 = sphi %s4939_s26, %s7328_s26   ;;  %s4805_s25 = sphi %s4937_s25, %s7327_s25   ;;  %s4801_s24 = sphi %s4935_s24, %s7326_s24   ;;  %s4797_s23 = sphi %s4933_s23, %s7325_s23  }
  0x12   : > { %7272 = sst [smem:[#allocation14_spill]] %s4825_s30  ;;  %s4354_s18 = sadd.s32 4294967294, %s4833_s9  }
  0x13   : > { %7273 = sst [smem:[#allocation15_spill]] %s4829_s0  ;;  %s39_s19 = sadd.s32 1, %s4825_s30 }
  0x14   : > { %s42_s20 = sadd.s32 1, %s4829_s0  ;;  %p40_p0 = scmp.ge.s32.totalorder %s39_s19, 2 }
  0x15   : > { %s77_s21 = sadd.s32 1, %s4813_s27  ;;  %p84_p1 = scmp.ne.s32.totalorder %s4813_s27, %s4809_s26 }
  0x16   : > { %p85_p2 = scmp.eq.s32.totalorder %s4833_s9, 0  ;;  %s7331_s19 = smov (%p40_p0, %s39_s19), 0 }
  0x17   : > { %7274 = sst [smem:[#allocation16_spill]] %s7331_s19  ;;  %s7333_s20 = smov (!%p40_p0, %s42_s20), %s4829_s0 }
  0x18   : > { %s73_s22 = ssub.s32 %s4825_s30, %s7331_s19  ;;  %p4996_p3 = por %p85_p2, %p84_p1 }
  0x19   : > { %p44_p4 = scmp.ge.s32.totalorder %s7333_s20, 2  ;;  %s397_s15 = sadd.s32 1, %s4805_s25 }
  0x1a   : > { %p407_p5 = scmp.ne.s32.totalorder %s4805_s25, %s4801_s24  ;;  %p408_p6 = scmp.eq.s32.totalorder %s4353_s17, 3 }
  0x1b   : > { %s7335_s20 = smov (%p44_p4, %s7333_s20), 0  ;;  %p413_p8 = scmp.ne.s32.totalorder %s4801_s24, %s4797_s23 }
  0x1c   : > { %7276 = sst [smem:[#allocation17_spill]] %s7335_s20  ;;  %p5005_p7 = por %p408_p6, %p407_p5 }
  0x1d   : > { %s72_s14 = ssub.s32 %s4829_s0, %s7335_s20  ;;  %p414_p9 = scmp.eq.s32.totalorder %s4354_s18, 3 }
  0x1e   : > { %s74_s19 = sor.u32 %s73_s22, %s72_s14  ;;  %p395_p10 = scmp.eq.s32.totalorder %s72_s14, 0 }
  0x1f   : > { %p75_p11 = scmp.eq.s32.totalorder %s74_s19, 0  ;;  %p5013_p12 = por %p414_p9, %p413_p8 }
  0x20   : > { %s5018_s10 = scalar_select %p395_p10, %s4805_s25, %s397_s15  }
  0x21   : > { %s7278_s11 = scalar_select %p5013_p12, 1, 0 }
  0x22   : > { %s5021_s17 = scalar_select %p75_p11, %s4813_s27, %s77_s21  }
  0x23   : > { %7279 = sst [smem:[#allocation18_spill]] %s7278_s11  ;;  %p4356_p13 = scmp.ge.s32.totalorder %s4833_s9, 4 }
  0x25   : > { %472 = sbr.rel (%p4356_p13) target bundleno = 180 (0xb4), region = 72 }
  0x2a   : > { %485 = sbr.rel (!%p4996_p3) target bundleno = 180 (0xb4), region = 80  ;;  %s487_s18 = sand.u32 (%p4996_p3), 1, %s4813_s27  }
  0x2b   : > { %s4359_s14 = sshll.u32 (%p4996_p3), %s4825_s30, 1  ;;  %s4357_s19 = sshll.u32 (%p4996_p3), %s487_s18, 10 }
  0x2c   : > { %s4494_s22 = sshll.u32 (%p4996_p3), %s4829_s0, 8  ;;  %s7280_s1 = sld [smem:[#allocation20_spill]] (%p4996_p3) }
  0x2d   : > { %s493_s20 = sadd.s32 (%p4996_p3), %s4494_s22, %s4359_s14  ;;  %s5037_s16 = scalar_lea.vmem (%p4996_p3), [#allocation9], %s4357_s19 }
  0x2e   : > { %s4361_s23 = sshll.u32 (%p4996_p3), %s493_s20, 3 }
  0x32   : > { %s5032_s21 = scalar_lea.vmem %s7280_s1, %s4361_s23 }
  0x33   : > { %v778_v0 = vld [vmem:[%s5032_s21] sm:$0xff]  ;;  %v780_v1 = vld [vmem:[%s5032_s21 + $0x8] sm:$0xff] }
  0x34   : > { %v782_v2 = vld [vmem:[%s5032_s21 + $0x20] sm:$0xff]  ;;  %779 = vst [vmem:[%s5037_s16] sm:$0xff] %v778_v0  ;;  %v784_v3 = vld [vmem:[%s5032_s21 + $0x28] sm:$0xff] }
  0x35   : > { %781 = vst [vmem:[%s5037_s16 + $0x8] sm:$0xff] %v780_v1  ;;  %v786_v4 = vld [vmem:[%s5032_s21 + $0x40] sm:$0xff]  ;;  %v788_v5 = vld [vmem:[%s5032_s21 + $0x48] sm:$0xff] }
  0x36   : > { %783 = vst [vmem:[%s5037_s16 + $0x10] sm:$0xff] %v782_v2  ;;  %v790_v6 = vld [vmem:[%s5032_s21 + $0x60] sm:$0xff]  ;;  %v792_v7 = vld [vmem:[%s5032_s21 + $0x68] sm:$0xff] }
  0x37   : > { %785 = vst [vmem:[%s5037_s16 + $0x18] sm:$0xff] %v784_v3  ;;  %v794_v8 = vld [vmem:[%s5032_s21 + $0x80] sm:$0xff]  ;;  %v796_v9 = vld [vmem:[%s5032_s21 + $0x88] sm:$0xff] }
  0x38   : > { %787 = vst [vmem:[%s5037_s16 + $0x20] sm:$0xff] %v786_v4  ;;  %v798_v10 = vld [vmem:[%s5032_s21 + $0xa0] sm:$0xff]  ;;  %v800_v11 = vld [vmem:[%s5032_s21 + $0xa8] sm:$0xff] }
  0x39   : > { %789 = vst [vmem:[%s5037_s16 + $0x28] sm:$0xff] %v788_v5  ;;  %v802_v12 = vld [vmem:[%s5032_s21 + $0xc0] sm:$0xff]  ;;  %v804_v13 = vld [vmem:[%s5032_s21 + $0xc8] sm:$0xff] }
  0x3a   : > { %791 = vst [vmem:[%s5037_s16 + $0x30] sm:$0xff] %v790_v6  ;;  %v806_v14 = vld [vmem:[%s5032_s21 + $0xe0] sm:$0xff]  ;;  %v808_v15 = vld [vmem:[%s5032_s21 + $0xe8] sm:$0xff] }
  0x3b   : > { %793 = vst [vmem:[%s5037_s16 + $0x38] sm:$0xff] %v792_v7  ;;  %v810_v16 = vld [vmem:[%s5032_s21 + $0x100] sm:$0xff]  ;;  %v812_v17 = vld [vmem:[%s5032_s21 + $0x108] sm:$0xff] }
  0x3c   : > { %795 = vst [vmem:[%s5037_s16 + $0x40] sm:$0xff] %v794_v8  ;;  %v814_v18 = vld [vmem:[%s5032_s21 + $0x120] sm:$0xff]  ;;  %v816_v19 = vld [vmem:[%s5032_s21 + $0x128] sm:$0xff] }
  0x3d   : > { %797 = vst [vmem:[%s5037_s16 + $0x48] sm:$0xff] %v796_v9  ;;  %v818_v20 = vld [vmem:[%s5032_s21 + $0x140] sm:$0xff]  ;;  %v820_v21 = vld [vmem:[%s5032_s21 + $0x148] sm:$0xff] }
  0x3e   : > { %799 = vst [vmem:[%s5037_s16 + $0x50] sm:$0xff] %v798_v10  ;;  %v822_v22 = vld [vmem:[%s5032_s21 + $0x160] sm:$0xff]  ;;  %v824_v23 = vld [vmem:[%s5032_s21 + $0x168] sm:$0xff] }
  0x3f   : > { %801 = vst [vmem:[%s5037_s16 + $0x58] sm:$0xff] %v800_v11  ;;  %v826_v24 = vld [vmem:[%s5032_s21 + $0x180] sm:$0xff]  ;;  %v828_v25 = vld [vmem:[%s5032_s21 + $0x188] sm:$0xff] }
  0x40   : > { %803 = vst [vmem:[%s5037_s16 + $0x60] sm:$0xff] %v802_v12  ;;  %v830_v26 = vld [vmem:[%s5032_s21 + $0x1a0] sm:$0xff]  ;;  %v832_v27 = vld [vmem:[%s5032_s21 + $0x1a8] sm:$0xff] }
  0x41   : > { %805 = vst [vmem:[%s5037_s16 + $0x68] sm:$0xff] %v804_v13  ;;  %v834_v28 = vld [vmem:[%s5032_s21 + $0x1c0] sm:$0xff]  ;;  %v836_v29 = vld [vmem:[%s5032_s21 + $0x1c8] sm:$0xff] }
  0x42   : > { %807 = vst [vmem:[%s5037_s16 + $0x70] sm:$0xff] %v806_v14  ;;  %v838_v30 = vld [vmem:[%s5032_s21 + $0x1e0] sm:$0xff]  ;;  %v840_v31 = vld [vmem:[%s5032_s21 + $0x1e8] sm:$0xff] }
  0x43   : > { %809 = vst [vmem:[%s5037_s16 + $0x78] sm:$0xff] %v808_v15  ;;  %v842_v32 = vld [vmem:[%s5032_s21 + $0x200] sm:$0xff]  ;;  %v844_v33 = vld [vmem:[%s5032_s21 + $0x208] sm:$0xff] }
  0x44   : > { %811 = vst [vmem:[%s5037_s16 + $0x80] sm:$0xff] %v810_v16  ;;  %v846_v34 = vld [vmem:[%s5032_s21 + $0x220] sm:$0xff]  ;;  %v848_v35 = vld [vmem:[%s5032_s21 + $0x228] sm:$0xff] }
  0x45   : > { %813 = vst [vmem:[%s5037_s16 + $0x88] sm:$0xff] %v812_v17  ;;  %v850_v36 = vld [vmem:[%s5032_s21 + $0x240] sm:$0xff]  ;;  %v852_v37 = vld [vmem:[%s5032_s21 + $0x248] sm:$0xff] }
  0x46   : > { %815 = vst [vmem:[%s5037_s16 + $0x90] sm:$0xff] %v814_v18  ;;  %v854_v38 = vld [vmem:[%s5032_s21 + $0x260] sm:$0xff]  ;;  %v856_v39 = vld [vmem:[%s5032_s21 + $0x268] sm:$0xff] }
  0x47   : > { %817 = vst [vmem:[%s5037_s16 + $0x98] sm:$0xff] %v816_v19  ;;  %v858_v40 = vld [vmem:[%s5032_s21 + $0x280] sm:$0xff]  ;;  %v860_v41 = vld [vmem:[%s5032_s21 + $0x288] sm:$0xff] }
  0x48   : > { %819 = vst [vmem:[%s5037_s16 + $0xa0] sm:$0xff] %v818_v20  ;;  %v862_v42 = vld [vmem:[%s5032_s21 + $0x2a0] sm:$0xff]  ;;  %v864_v43 = vld [vmem:[%s5032_s21 + $0x2a8] sm:$0xff] }
  0x49   : > { %821 = vst [vmem:[%s5037_s16 + $0xa8] sm:$0xff] %v820_v21  ;;  %v866_v44 = vld [vmem:[%s5032_s21 + $0x2c0] sm:$0xff]  ;;  %v868_v45 = vld [vmem:[%s5032_s21 + $0x2c8] sm:$0xff] }
  0x4a   : > { %823 = vst [vmem:[%s5037_s16 + $0xb0] sm:$0xff] %v822_v22  ;;  %v870_v46 = vld [vmem:[%s5032_s21 + $0x2e0] sm:$0xff]  ;;  %v872_v47 = vld [vmem:[%s5032_s21 + $0x2e8] sm:$0xff] }
  0x4b   : > { %825 = vst [vmem:[%s5037_s16 + $0xb8] sm:$0xff] %v824_v23  ;;  %v874_v48 = vld [vmem:[%s5032_s21 + $0x300] sm:$0xff]  ;;  %v876_v49 = vld [vmem:[%s5032_s21 + $0x308] sm:$0xff] }
  0x4c   : > { %827 = vst [vmem:[%s5037_s16 + $0xc0] sm:$0xff] %v826_v24  ;;  %v878_v50 = vld [vmem:[%s5032_s21 + $0x320] sm:$0xff]  ;;  %v880_v51 = vld [vmem:[%s5032_s21 + $0x328] sm:$0xff] }
  0x4d   : > { %829 = vst [vmem:[%s5037_s16 + $0xc8] sm:$0xff] %v828_v25  ;;  %v882_v52 = vld [vmem:[%s5032_s21 + $0x340] sm:$0xff]  ;;  %v884_v53 = vld [vmem:[%s5032_s21 + $0x348] sm:$0xff] }
  0x4e   : > { %831 = vst [vmem:[%s5037_s16 + $0xd0] sm:$0xff] %v830_v26  ;;  %v886_v54 = vld [vmem:[%s5032_s21 + $0x360] sm:$0xff]  ;;  %v888_v55 = vld [vmem:[%s5032_s21 + $0x368] sm:$0xff] }
  0x4f   : > { %833 = vst [vmem:[%s5037_s16 + $0xd8] sm:$0xff] %v832_v27  ;;  %v890_v56 = vld [vmem:[%s5032_s21 + $0x380] sm:$0xff]  ;;  %v892_v57 = vld [vmem:[%s5032_s21 + $0x388] sm:$0xff] }
  0x50   : > { %835 = vst [vmem:[%s5037_s16 + $0xe0] sm:$0xff] %v834_v28  ;;  %v894_v58 = vld [vmem:[%s5032_s21 + $0x3a0] sm:$0xff]  ;;  %v896_v59 = vld [vmem:[%s5032_s21 + $0x3a8] sm:$0xff] }
  0x51   : > { %837 = vst [vmem:[%s5037_s16 + $0xe8] sm:$0xff] %v836_v29  ;;  %v898_v60 = vld [vmem:[%s5032_s21 + $0x3c0] sm:$0xff]  ;;  %v900_v61 = vld [vmem:[%s5032_s21 + $0x3c8] sm:$0xff] }
  0x52   : > { %839 = vst [vmem:[%s5037_s16 + $0xf0] sm:$0xff] %v838_v30  ;;  %v902_v62 = vld [vmem:[%s5032_s21 + $0x3e0] sm:$0xff]  ;;  %v904_v63 = vld [vmem:[%s5032_s21 + $0x3e8] sm:$0xff] }
  0x53   : > { %841 = vst [vmem:[%s5037_s16 + $0xf8] sm:$0xff] %v840_v31  ;;  %v906_v0 = vld [vmem:[%s5032_s21 + $0x400] sm:$0xff]  ;;  %v908_v1 = vld [vmem:[%s5032_s21 + $0x408] sm:$0xff] }
  0x54   : > { %843 = vst [vmem:[%s5037_s16 + $0x100] sm:$0xff] %v842_v32  ;;  %v910_v2 = vld [vmem:[%s5032_s21 + $0x420] sm:$0xff]  ;;  %v912_v3 = vld [vmem:[%s5032_s21 + $0x428] sm:$0xff] }
  0x55   : > { %845 = vst [vmem:[%s5037_s16 + $0x108] sm:$0xff] %v844_v33  ;;  %v914_v4 = vld [vmem:[%s5032_s21 + $0x440] sm:$0xff]  ;;  %v916_v5 = vld [vmem:[%s5032_s21 + $0x448] sm:$0xff] }
  0x56   : > { %847 = vst [vmem:[%s5037_s16 + $0x110] sm:$0xff] %v846_v34  ;;  %v918_v6 = vld [vmem:[%s5032_s21 + $0x460] sm:$0xff]  ;;  %v920_v7 = vld [vmem:[%s5032_s21 + $0x468] sm:$0xff] }
  0x57   : > { %849 = vst [vmem:[%s5037_s16 + $0x118] sm:$0xff] %v848_v35  ;;  %v922_v8 = vld [vmem:[%s5032_s21 + $0x480] sm:$0xff]  ;;  %v924_v9 = vld [vmem:[%s5032_s21 + $0x488] sm:$0xff] }
  0x58   : > { %851 = vst [vmem:[%s5037_s16 + $0x120] sm:$0xff] %v850_v36  ;;  %v926_v10 = vld [vmem:[%s5032_s21 + $0x4a0] sm:$0xff]  ;;  %v928_v11 = vld [vmem:[%s5032_s21 + $0x4a8] sm:$0xff] }
  0x59   : > { %853 = vst [vmem:[%s5037_s16 + $0x128] sm:$0xff] %v852_v37  ;;  %v930_v12 = vld [vmem:[%s5032_s21 + $0x4c0] sm:$0xff]  ;;  %v932_v13 = vld [vmem:[%s5032_s21 + $0x4c8] sm:$0xff] }
  0x5a   : > { %855 = vst [vmem:[%s5037_s16 + $0x130] sm:$0xff] %v854_v38  ;;  %v934_v14 = vld [vmem:[%s5032_s21 + $0x4e0] sm:$0xff]  ;;  %v936_v15 = vld [vmem:[%s5032_s21 + $0x4e8] sm:$0xff] }
  0x5b   : > { %857 = vst [vmem:[%s5037_s16 + $0x138] sm:$0xff] %v856_v39  ;;  %v938_v16 = vld [vmem:[%s5032_s21 + $0x500] sm:$0xff]  ;;  %v940_v17 = vld [vmem:[%s5032_s21 + $0x508] sm:$0xff] }
  0x5c   : > { %859 = vst [vmem:[%s5037_s16 + $0x140] sm:$0xff] %v858_v40  ;;  %v942_v18 = vld [vmem:[%s5032_s21 + $0x520] sm:$0xff]  ;;  %v944_v19 = vld [vmem:[%s5032_s21 + $0x528] sm:$0xff] }
  0x5d   : > { %861 = vst [vmem:[%s5037_s16 + $0x148] sm:$0xff] %v860_v41  ;;  %v946_v20 = vld [vmem:[%s5032_s21 + $0x540] sm:$0xff]  ;;  %v948_v21 = vld [vmem:[%s5032_s21 + $0x548] sm:$0xff] }
  0x5e   : > { %863 = vst [vmem:[%s5037_s16 + $0x150] sm:$0xff] %v862_v42  ;;  %v950_v22 = vld [vmem:[%s5032_s21 + $0x560] sm:$0xff]  ;;  %v952_v23 = vld [vmem:[%s5032_s21 + $0x568] sm:$0xff] }
  0x5f   : > { %865 = vst [vmem:[%s5037_s16 + $0x158] sm:$0xff] %v864_v43  ;;  %v954_v24 = vld [vmem:[%s5032_s21 + $0x580] sm:$0xff]  ;;  %v956_v25 = vld [vmem:[%s5032_s21 + $0x588] sm:$0xff] }
  0x60   : > { %867 = vst [vmem:[%s5037_s16 + $0x160] sm:$0xff] %v866_v44  ;;  %v958_v26 = vld [vmem:[%s5032_s21 + $0x5a0] sm:$0xff]  ;;  %v960_v27 = vld [vmem:[%s5032_s21 + $0x5a8] sm:$0xff] }
  0x61   : > { %869 = vst [vmem:[%s5037_s16 + $0x168] sm:$0xff] %v868_v45  ;;  %v962_v28 = vld [vmem:[%s5032_s21 + $0x5c0] sm:$0xff]  ;;  %v964_v29 = vld [vmem:[%s5032_s21 + $0x5c8] sm:$0xff] }
  0x62   : > { %871 = vst [vmem:[%s5037_s16 + $0x170] sm:$0xff] %v870_v46  ;;  %v966_v30 = vld [vmem:[%s5032_s21 + $0x5e0] sm:$0xff]  ;;  %v968_v31 = vld [vmem:[%s5032_s21 + $0x5e8] sm:$0xff] }
  0x63   : > { %873 = vst [vmem:[%s5037_s16 + $0x178] sm:$0xff] %v872_v47  ;;  %v970_v32 = vld [vmem:[%s5032_s21 + $0x600] sm:$0xff]  ;;  %v972_v33 = vld [vmem:[%s5032_s21 + $0x608] sm:$0xff] }
  0x64   : > { %875 = vst [vmem:[%s5037_s16 + $0x180] sm:$0xff] %v874_v48  ;;  %v974_v34 = vld [vmem:[%s5032_s21 + $0x620] sm:$0xff]  ;;  %v976_v35 = vld [vmem:[%s5032_s21 + $0x628] sm:$0xff] }
  0x65   : > { %877 = vst [vmem:[%s5037_s16 + $0x188] sm:$0xff] %v876_v49  ;;  %v978_v36 = vld [vmem:[%s5032_s21 + $0x640] sm:$0xff]  ;;  %v980_v37 = vld [vmem:[%s5032_s21 + $0x648] sm:$0xff] }
  0x66   : > { %879 = vst [vmem:[%s5037_s16 + $0x190] sm:$0xff] %v878_v50  ;;  %v982_v38 = vld [vmem:[%s5032_s21 + $0x660] sm:$0xff]  ;;  %v984_v39 = vld [vmem:[%s5032_s21 + $0x668] sm:$0xff] }
  0x67   : > { %881 = vst [vmem:[%s5037_s16 + $0x198] sm:$0xff] %v880_v51  ;;  %v986_v40 = vld [vmem:[%s5032_s21 + $0x680] sm:$0xff]  ;;  %v988_v41 = vld [vmem:[%s5032_s21 + $0x688] sm:$0xff] }
  0x68   : > { %883 = vst [vmem:[%s5037_s16 + $0x1a0] sm:$0xff] %v882_v52  ;;  %v990_v42 = vld [vmem:[%s5032_s21 + $0x6a0] sm:$0xff]  ;;  %v992_v43 = vld [vmem:[%s5032_s21 + $0x6a8] sm:$0xff] }
  0x69   : > { %885 = vst [vmem:[%s5037_s16 + $0x1a8] sm:$0xff] %v884_v53  ;;  %v994_v44 = vld [vmem:[%s5032_s21 + $0x6c0] sm:$0xff]  ;;  %v996_v45 = vld [vmem:[%s5032_s21 + $0x6c8] sm:$0xff] }
  0x6a   : > { %887 = vst [vmem:[%s5037_s16 + $0x1b0] sm:$0xff] %v886_v54  ;;  %v998_v46 = vld [vmem:[%s5032_s21 + $0x6e0] sm:$0xff]  ;;  %v1000_v47 = vld [vmem:[%s5032_s21 + $0x6e8] sm:$0xff] }
  0x6b   : > { %889 = vst [vmem:[%s5037_s16 + $0x1b8] sm:$0xff] %v888_v55  ;;  %v1002_v48 = vld [vmem:[%s5032_s21 + $0x700] sm:$0xff]  ;;  %v1004_v49 = vld [vmem:[%s5032_s21 + $0x708] sm:$0xff] }
  0x6c   : > { %891 = vst [vmem:[%s5037_s16 + $0x1c0] sm:$0xff] %v890_v56  ;;  %v1006_v50 = vld [vmem:[%s5032_s21 + $0x720] sm:$0xff]  ;;  %v1008_v51 = vld [vmem:[%s5032_s21 + $0x728] sm:$0xff] }
  0x6d   : > { %893 = vst [vmem:[%s5037_s16 + $0x1c8] sm:$0xff] %v892_v57  ;;  %v1010_v52 = vld [vmem:[%s5032_s21 + $0x740] sm:$0xff]  ;;  %v1012_v53 = vld [vmem:[%s5032_s21 + $0x748] sm:$0xff] }
  0x6e   : > { %895 = vst [vmem:[%s5037_s16 + $0x1d0] sm:$0xff] %v894_v58  ;;  %v1014_v54 = vld [vmem:[%s5032_s21 + $0x760] sm:$0xff]  ;;  %v1016_v55 = vld [vmem:[%s5032_s21 + $0x768] sm:$0xff] }
  0x6f   : > { %897 = vst [vmem:[%s5037_s16 + $0x1d8] sm:$0xff] %v896_v59  ;;  %v1018_v56 = vld [vmem:[%s5032_s21 + $0x780] sm:$0xff]  ;;  %v1020_v57 = vld [vmem:[%s5032_s21 + $0x788] sm:$0xff] }
  0x70   : > { %899 = vst [vmem:[%s5037_s16 + $0x1e0] sm:$0xff] %v898_v60  ;;  %v1022_v58 = vld [vmem:[%s5032_s21 + $0x7a0] sm:$0xff]  ;;  %v1024_v59 = vld [vmem:[%s5032_s21 + $0x7a8] sm:$0xff] }
  0x71   : > { %901 = vst [vmem:[%s5037_s16 + $0x1e8] sm:$0xff] %v900_v61  ;;  %v1026_v60 = vld [vmem:[%s5032_s21 + $0x7c0] sm:$0xff]  ;;  %v1028_v61 = vld [vmem:[%s5032_s21 + $0x7c8] sm:$0xff] }
  0x72   : > { %903 = vst [vmem:[%s5037_s16 + $0x1f0] sm:$0xff] %v902_v62  ;;  %v1030_v62 = vld [vmem:[%s5032_s21 + $0x7e0] sm:$0xff] }
  0x73   : > { %905 = vst [vmem:[%s5037_s16 + $0x1f8] sm:$0xff] %v904_v63  ;;  %v1032_v63 = vld [vmem:[%s5032_s21 + $0x7e8] sm:$0xff] }
  0x74   : > { %907 = vst [vmem:[%s5037_s16 + $0x200] sm:$0xff] %v906_v0 }
  0x75   : > { %909 = vst [vmem:[%s5037_s16 + $0x208] sm:$0xff] %v908_v1 }
  0x76   : > { %911 = vst [vmem:[%s5037_s16 + $0x210] sm:$0xff] %v910_v2 }
  0x77   : > { %913 = vst [vmem:[%s5037_s16 + $0x218] sm:$0xff] %v912_v3 }
  0x78   : > { %915 = vst [vmem:[%s5037_s16 + $0x220] sm:$0xff] %v914_v4 }
  0x79   : > { %917 = vst [vmem:[%s5037_s16 + $0x228] sm:$0xff] %v916_v5 }
  0x7a   : > { %919 = vst [vmem:[%s5037_s16 + $0x230] sm:$0xff] %v918_v6 }
  0x7b   : > { %921 = vst [vmem:[%s5037_s16 + $0x238] sm:$0xff] %v920_v7 }
  0x7c   : > { %923 = vst [vmem:[%s5037_s16 + $0x240] sm:$0xff] %v922_v8 }
  0x7d   : > { %925 = vst [vmem:[%s5037_s16 + $0x248] sm:$0xff] %v924_v9 }
  0x7e   : > { %927 = vst [vmem:[%s5037_s16 + $0x250] sm:$0xff] %v926_v10 }
  0x7f   : > { %929 = vst [vmem:[%s5037_s16 + $0x258] sm:$0xff] %v928_v11 }
  0x80   : > { %931 = vst [vmem:[%s5037_s16 + $0x260] sm:$0xff] %v930_v12 }
  0x81   : > { %933 = vst [vmem:[%s5037_s16 + $0x268] sm:$0xff] %v932_v13 }
  0x82   : > { %935 = vst [vmem:[%s5037_s16 + $0x270] sm:$0xff] %v934_v14 }
  0x83   : > { %937 = vst [vmem:[%s5037_s16 + $0x278] sm:$0xff] %v936_v15 }
  0x84   : > { %939 = vst [vmem:[%s5037_s16 + $0x280] sm:$0xff] %v938_v16 }
  0x85   : > { %941 = vst [vmem:[%s5037_s16 + $0x288] sm:$0xff] %v940_v17 }
  0x86   : > { %943 = vst [vmem:[%s5037_s16 + $0x290] sm:$0xff] %v942_v18 }
  0x87   : > { %945 = vst [vmem:[%s5037_s16 + $0x298] sm:$0xff] %v944_v19 }
  0x88   : > { %947 = vst [vmem:[%s5037_s16 + $0x2a0] sm:$0xff] %v946_v20 }
  0x89   : > { %949 = vst [vmem:[%s5037_s16 + $0x2a8] sm:$0xff] %v948_v21 }
  0x8a   : > { %951 = vst [vmem:[%s5037_s16 + $0x2b0] sm:$0xff] %v950_v22 }
  0x8b   : > { %953 = vst [vmem:[%s5037_s16 + $0x2b8] sm:$0xff] %v952_v23 }
  0x8c   : > { %955 = vst [vmem:[%s5037_s16 + $0x2c0] sm:$0xff] %v954_v24 }
  0x8d   : > { %957 = vst [vmem:[%s5037_s16 + $0x2c8] sm:$0xff] %v956_v25 }
  0x8e   : > { %959 = vst [vmem:[%s5037_s16 + $0x2d0] sm:$0xff] %v958_v26 }
  0x8f   : > { %961 = vst [vmem:[%s5037_s16 + $0x2d8] sm:$0xff] %v960_v27 }
  0x90   : > { %963 = vst [vmem:[%s5037_s16 + $0x2e0] sm:$0xff] %v962_v28 }
  0x91   : > { %965 = vst [vmem:[%s5037_s16 + $0x2e8] sm:$0xff] %v964_v29 }
  0x92   : > { %967 = vst [vmem:[%s5037_s16 + $0x2f0] sm:$0xff] %v966_v30 }
  0x93   : > { %969 = vst [vmem:[%s5037_s16 + $0x2f8] sm:$0xff] %v968_v31 }
  0x94   : > { %971 = vst [vmem:[%s5037_s16 + $0x300] sm:$0xff] %v970_v32 }
  0x95   : > { %973 = vst [vmem:[%s5037_s16 + $0x308] sm:$0xff] %v972_v33 }
  0x96   : > { %975 = vst [vmem:[%s5037_s16 + $0x310] sm:$0xff] %v974_v34 }
  0x97   : > { %977 = vst [vmem:[%s5037_s16 + $0x318] sm:$0xff] %v976_v35 }
  0x98   : > { %979 = vst [vmem:[%s5037_s16 + $0x320] sm:$0xff] %v978_v36 }
  0x99   : > { %981 = vst [vmem:[%s5037_s16 + $0x328] sm:$0xff] %v980_v37 }
  0x9a   : > { %983 = vst [vmem:[%s5037_s16 + $0x330] sm:$0xff] %v982_v38 }
  0x9b   : > { %985 = vst [vmem:[%s5037_s16 + $0x338] sm:$0xff] %v984_v39 }
  0x9c   : > { %987 = vst [vmem:[%s5037_s16 + $0x340] sm:$0xff] %v986_v40 }
  0x9d   : > { %989 = vst [vmem:[%s5037_s16 + $0x348] sm:$0xff] %v988_v41 }
  0x9e   : > { %991 = vst [vmem:[%s5037_s16 + $0x350] sm:$0xff] %v990_v42 }
  0x9f   : > { %993 = vst [vmem:[%s5037_s16 + $0x358] sm:$0xff] %v992_v43 }
  0xa0   : > { %995 = vst [vmem:[%s5037_s16 + $0x360] sm:$0xff] %v994_v44 }
  0xa1   : > { %997 = vst [vmem:[%s5037_s16 + $0x368] sm:$0xff] %v996_v45 }
  0xa2   : > { %999 = vst [vmem:[%s5037_s16 + $0x370] sm:$0xff] %v998_v46 }
  0xa3   : > { %1001 = vst [vmem:[%s5037_s16 + $0x378] sm:$0xff] %v1000_v47 }
  0xa4   : > { %1003 = vst [vmem:[%s5037_s16 + $0x380] sm:$0xff] %v1002_v48 }
  0xa5   : > { %1005 = vst [vmem:[%s5037_s16 + $0x388] sm:$0xff] %v1004_v49 }
  0xa6   : > { %1007 = vst [vmem:[%s5037_s16 + $0x390] sm:$0xff] %v1006_v50 }
  0xa7   : > { %1009 = vst [vmem:[%s5037_s16 + $0x398] sm:$0xff] %v1008_v51 }
  0xa8   : > { %1011 = vst [vmem:[%s5037_s16 + $0x3a0] sm:$0xff] %v1010_v52 }
  0xa9   : > { %1013 = vst [vmem:[%s5037_s16 + $0x3a8] sm:$0xff] %v1012_v53 }
  0xaa   : > { %1015 = vst [vmem:[%s5037_s16 + $0x3b0] sm:$0xff] %v1014_v54 }
  0xab   : > { %1017 = vst [vmem:[%s5037_s16 + $0x3b8] sm:$0xff] %v1016_v55 }
  0xac   : > { %1019 = vst [vmem:[%s5037_s16 + $0x3c0] sm:$0xff] %v1018_v56 }
  0xad   : > { %1021 = vst [vmem:[%s5037_s16 + $0x3c8] sm:$0xff] %v1020_v57 }
  0xae   : > { %1023 = vst [vmem:[%s5037_s16 + $0x3d0] sm:$0xff] %v1022_v58 }
  0xaf   : > { %1025 = vst [vmem:[%s5037_s16 + $0x3d8] sm:$0xff] %v1024_v59 }
  0xb0   : > { %1027 = vst [vmem:[%s5037_s16 + $0x3e0] sm:$0xff] %v1026_v60 }
  0xb1   : > { %1029 = vst [vmem:[%s5037_s16 + $0x3e8] sm:$0xff] %v1028_v61 }
  0xb2   : > { %1031 = vst [vmem:[%s5037_s16 + $0x3f0] sm:$0xff] %v1030_v62 }
  0xb3   : > { %1033 = vst [vmem:[%s5037_s16 + $0x3f8] sm:$0xff] %v1032_v63 }
  0xb4 PF: > { %p4362_p0 = scmp.ge.s32.totalorder %s4833_s9, 1  ;;  %p1038_p1 = scmp.lt.s32.totalorder %s4833_s9, 5 }
  0xb6   : > { %p1039_p2 = pnand %p4362_p0, %p1038_p1 }
  0xb7   : > { %s1045_s11 = sand.u32 (!%p1039_p2), 1, %s4809_s26   ;;  %s7261_s23 = sand.u32 (!%p1039_p2), 1, %s4801_s24  }
  0xb8   : > { %1042 = sbr.rel (%p1039_p2) target bundleno = 2435 (0x983), region = 118  ;;  %s4363_s20 = sshll.u32 (!%p1039_p2), %s1045_s11, 10 }
  0xb9   : > { %s4364_s18 = sshll.u32 (!%p1039_p2), %s7261_s23, 6  ;;  %s4365_s14 = sshll.u32 (!%p1039_p2), %s4821_s29, 1 }
  0xba   : > { %p1101_p3 = scmp.lt.s32.totalorder (!%p1039_p2), %s4365_s14, 3  ;;  %s7281_s21 = sld [smem:[#allocation19_spill]] (!%p1039_p2) }
  0xbb   : > { %s5302_s1 = scalar_lea.vmem (!%p1039_p2), [#allocation9], %s4363_s20  ;;  %s5304_s0 = scalar_lea.vmem (!%p1039_p2), [#allocation10], %s4364_s18 }
  0xbc   : > { %p4368_p4 = scmp.ne.s32.totalorder (!%p1039_p2), %s4817_s28, 0 }
  0xbd   : > { %s7337_s14 = smov (!%p1101_p3, %s4365_s14), 3  ;;  %s7282_s2 = sld [smem:[#allocation21_spill]] (!%p4368_p4) }
  0xbe   : > { %s4495_s19 = sshll.u32 %s7337_s14, 5  ;;  %1114 = sbr.rel (%p4368_p4) target bundleno = 634 (0x27a), region = 126 }
  0xbf   : > { %s4835_s30 = smov (!%p4368_p4), 32  }
  0xc0   : > { %s1105_s16 = scalar_lea.vmem %s7281_s21, %s4495_s19  ;;  %s4836_s19 = smov (!%p4368_p4), 64  }
  0xc1   : > { %s4837_s21 = smov (!%p4368_p4), 96  }
  0xc3   : > { %v4497_v0 = vld [vmem:[%s7282_s2 + $0x8] sm:$0xff]  ;;  %v4496_v1 = vld [vmem:[%s7282_s2] sm:$0xff]  ;;  %v1117_v4 = vld [vmem:[%s1105_s16 + $0x10] sm:$0xff]  ;;  %vm1147_vm0 = vcmask 261120   ;;  %vm1237_vm1 = vcmask 257024   ;;  %vm1292_vm2 = vcmask 7168  }
  0xc4   : > { %v1115_v2 = vld [vmem:[%s1105_s16] sm:$0xff]  ;;  %v1116_v3 = vld [vmem:[%s1105_s16 + $0x8] sm:$0xff]  ;;  %v1118_v5 = vld [vmem:[%s1105_s16 + $0x18] sm:$0xff]  ;;  %1166 = vmatpush.bf16.msra.mxu0 %v4497_v0  ;;  %4526 = vmatpush.bf16.msra.mxu1 %v4497_v0  ;;  %vm1384_vm3 = vcmask 130112   ;;  %vm1395_vm4 = vcmask 1041409   ;;  %vm1400_vm5 = vcmask 123904  }
  0xc5   : > { %v1119_v6 = vld [vmem:[%s1105_s16 + $0x20] sm:$0xff]  ;;  %v1120_v7 = vld [vmem:[%s1105_s16 + $0x28] sm:$0xff]  ;;  %v1121_v8 = vld [vmem:[%s1105_s16 + $0x30] sm:$0xff]  ;;  %4527 = vmatpush.bf16.msra.mxu2 %v4497_v0  ;;  %4528 = vmatpush.bf16.msra.mxu3 %v4497_v0  ;;  %v1123_v11 = vpack.c.bf16 %v1116_v3, %v1115_v2  ;;  %v1124_v12 = vpack.c.bf16 %v1118_v5, %v1117_v4 }
  0xc6   : > { %v1122_v9 = vld [vmem:[%s1105_s16 + $0x38] sm:$0xff]  ;;  %v4636_v10 = vld [vmem:[%s7243_s7] ss:$0 sm:$0xff]  ;;  %v1125_v13 = vpack.c.bf16 %v1120_v7, %v1119_v6  ;;  %s1282_s16 = sld [smem:[#allocation8]] }
  0xc7   : > { %1304 = vrot.lane.b32.xlu0 %v4636_v10, %s4835_s30  ;;  %v1126_v14 = vpack.c.bf16 %v1122_v9, %v1121_v8  ;;  %v4637_v15 = vld [vmem:[%s7239_s3] ss:$0 sm:$0xff] }
  0xc8   : > { %1167 = vmatpush.bf16.msra.mxu0 %v4496_v1  ;;  %4529 = vmatpush.bf16.msra.mxu1 %v4496_v1  ;;  %v4638_v35 = vld [vmem:[%s7242_s6] ss:$0 sm:$0xff] }
  0xc9   : > { %4530 = vmatpush.bf16.msra.mxu2 %v4496_v1  ;;  %4531 = vmatpush.bf16.msra.mxu3 %v4496_v1 }
  0xcb   : > { %4377 = vmatmul.msk.bf16.vlgmr.msra.gmra.mxu0 %vm1147_vm0, %v1123_v11  ;;  %4378 = vmatmul.msk.bf16.vlgmr.msra.gmra.mxu1 %vm1147_vm0, %v1124_v12 }
  0xcc   : > { %4379 = vmatmul.msk.bf16.vlgmr.msra.gmra.mxu2 %vm1147_vm0, %v1125_v13  ;;  %4380 = vmatmul.msk.bf16.vlgmr.msra.gmra.mxu3 %vm1147_vm0, %v1126_v14 }
 0x139   : > { %v1305_v29 = vpop.permute.xlu0 %1304 }
 0x148   : > { %v1169_v16 = vpop.f32.mrf.mxu0  ;;  %v1174_v17 = vpop.f32.mrf.mxu1 }
 0x149   : > { %v1170_v18 = vadd.f32 %v4637_v15, %v1169_v16  ;;  %v1175_v19 = vadd.f32 %v4637_v15, %v1174_v17 }
 0x14b   : > { %v1189_v20 = vmax.f32 %v1170_v18, 0.0  ;;  %v5323_v21 = vmax.f32 %v1175_v19, 0.0  ;;  %v4839_v19 = vmov 0.0  }
 0x14c   : > { %1411 = vst.msk [vmem:[#allocation6] sm:$0xff] %vm1292_vm2, %v4839_v19 }
 0x14d   : > { %v1199_v22 = vpack.c.bf16 %v5323_v21, %v5323_v21  ;;  %v1197_v23 = vpack.c.bf16 %v1189_v20, %v1189_v20  ;;  %v1307_v31 = vmul.f32 %v1305_v29, %v1189_v20  ;;  %v1309_v47 = vmul.f32 %v1305_v29, %v5323_v21  ;;  %1412 = vst.msk [vmem:[#allocation6 + $0x8] sm:$0xff] %vm1292_vm2, %v4839_v19 }
 0x14e   : > { %v1250_v56 = vmul.f32 %v4638_v35, %v1189_v20  ;;  %v1252_v1 = vmul.f32 %v4638_v35, %v5323_v21  ;;  %1413 = vst.msk [vmem:[#allocation6 + $0x10] sm:$0xff] %vm1292_vm2, %v4839_v19 }
 0x14f   : > { %v1179_v24 = vpop.f32.mrf.mxu2  ;;  %v1184_v25 = vpop.f32.mrf.mxu3  ;;  %1217 = vrot.lane.b32.xlu1 %v1199_v22, %s4836_s19  ;;  %1213 = vrot.lane.b32.xlu0 %v1197_v23, %s4836_s19  ;;  %1414 = vst.msk [vmem:[#allocation6 + $0x18] sm:$0xff] %vm1292_vm2, %v4839_v19 }
 0x150   : > { %v1180_v26 = vadd.f32 %v4637_v15, %v1179_v24  ;;  %v1185_v27 = vadd.f32 %v4637_v15, %v1184_v25  ;;  %v1176_v28 = vpop.f32.mrf.mxu1  ;;  %v1171_v42 = vpop.f32.mrf.mxu0  ;;  %v1258_v58 = vsel %vm1147_vm0, %v1250_v56, 0.0  ;;  %v1264_v3 = vsel %vm1147_vm0, %v1252_v1, 0.0  ;;  %1415 = vst.msk [vmem:[#allocation6 + $0x20] sm:$0xff] %vm1292_vm2, %v4839_v19 }
 0x151   : > { %v1177_v33 = vadd.f32 %v4637_v15, %v1176_v28  ;;  %v1172_v45 = vadd.f32 %v4637_v15, %v1171_v42  ;;  %1416 = vst.msk [vmem:[#allocation6 + $0x28] sm:$0xff] %vm1292_vm2, %v4839_v19 }
 0x152   : > { %v1193_v30 = vmax.f32 %v1180_v26, 0.0  ;;  %v1195_v32 = vmax.f32 %v1185_v27, 0.0  ;;  %1417 = vst.msk [vmem:[#allocation6 + $0x30] sm:$0xff] %vm1292_vm2, %v4839_v19 }
 0x153   : > { %v1192_v39 = vmax.f32 %v1177_v33, 0.0  ;;  %v1190_v50 = vmax.f32 %v1172_v45, 0.0  ;;  %1418 = vst.msk [vmem:[#allocation6 + $0x38] sm:$0xff] %vm1292_vm2, %v4839_v19 }
 0x154   : > { %v1201_v34 = vpack.c.bf16 %v1193_v30, %v1193_v30  ;;  %v5333_v36 = vmul.f32 %v4638_v35, %v1195_v32  ;;  %v1203_v51 = vpack.c.bf16 %v1195_v32, %v1195_v32  ;;  %v1311_v54 = vmul.f32 %v1305_v29, %v1193_v30  ;;  %1419 = vst.msk [vmem:[#allocation7] sm:$0xff] %vm1147_vm0, %v4839_v19 }
 0x155   : > { %v1200_v46 = vpack.c.bf16 %v1192_v39, %v1192_v39  ;;  %v1308_v52 = vmul.f32 %v1305_v29, %v1190_v50  ;;  %v1310_v53 = vmul.f32 %v1305_v29, %v1192_v39  ;;  %v1313_v57 = vmul.f32 %v1305_v29, %v1195_v32  ;;  %1420 = vst.msk [vmem:[#allocation7 + $0x8] sm:$0xff] %vm1147_vm0, %v4839_v19 }
 0x156   : > { %1221 = vrot.lane.b32.xlu2 %v1201_v34, %s4836_s19  ;;  %v1198_v60 = vpack.c.bf16 %v1190_v50, %v1190_v50  ;;  %v1251_v63 = vmul.f32 %v4638_v35, %v1190_v50  ;;  %v1254_v2 = vmul.f32 %v4638_v35, %v1193_v30  ;;  %v1253_v6 = vmul.f32 %v4638_v35, %v1192_v39 }
 0x157   : > { %v1181_v37 = vpop.f32.mrf.mxu2  ;;  %v1186_v38 = vpop.f32.mrf.mxu3  ;;  %1323 = vrot.lane.b32.xlu1 %v1307_v31, %s4837_s21  ;;  %1421 = vst.msk [vmem:[#allocation7 + $0x10] sm:$0xff] %vm1147_vm0, %v4839_v19  ;;  %v5403_v31 = vstv %s1282_s16  ;;  %v1276_v39 = vsel %vm1147_vm0, %v5333_v36, 0.0  ;;  %v1379_v50 = vlaneseq }
 0x158   : > { %v1182_v40 = vadd.f32 %v4637_v15, %v1181_v37  ;;  %v1187_v41 = vadd.f32 %v4637_v15, %v1186_v38  ;;  %v1261_v0 = vsel %vm1147_vm0, %v1251_v63, 0.0  ;;  %v1270_v5 = vsel %vm1147_vm0, %v1254_v2, 0.0  ;;  %1422 = vst.msk [vmem:[#allocation7 + $0x18] sm:$0xff] %vm1147_vm0, %v4839_v19 }
 0x159   : > { %v1267_v7 = vsel %vm1147_vm0, %v1253_v6, 0.0  ;;  %v4838_v15 = vmov -inf   ;;  %1423 = vst.msk [vmem:[#allocation7 + $0x20] sm:$0xff] %vm1147_vm0, %v4839_v19 }
 0x15a   : > { %v1194_v43 = vmax.f32 %v1182_v40, 0.0  ;;  %v1196_v44 = vmax.f32 %v1187_v41, 0.0  ;;  %1403 = vst.msk [vmem:[#allocation5] sm:$0xff] %vm1292_vm2, %v4838_v15 }
 0x15b   : > { %1404 = vst.msk [vmem:[#allocation5 + $0x8] sm:$0xff] %vm1292_vm2, %v4838_v15 }
 0x15c   : > { %v5337_v48 = vmul.f32 %v4638_v35, %v1194_v43  ;;  %v5339_v49 = vmul.f32 %v4638_v35, %v1196_v44  ;;  %v1204_v55 = vpack.c.bf16 %v1196_v44, %v1196_v44  ;;  %v1312_v59 = vmul.f32 %v1305_v29, %v1194_v43  ;;  %1405 = vst.msk [vmem:[#allocation5 + $0x10] sm:$0xff] %vm1292_vm2, %v4838_v15 }
 0x15d   : > { %v1314_v61 = vmul.f32 %v1305_v29, %v1196_v44  ;;  %v1202_v62 = vpack.c.bf16 %v1194_v43, %v1194_v43  ;;  %1406 = vst.msk [vmem:[#allocation5 + $0x18] sm:$0xff] %vm1292_vm2, %v4838_v15 }
 0x15e   : > { %1219 = vrot.lane.b32.xlu2 %v1200_v46, %s4836_s19  ;;  %1407 = vst.msk [vmem:[#allocation5 + $0x20] sm:$0xff] %vm1292_vm2, %v4838_v15  ;;  %v1273_v25 = vsel %vm1147_vm0, %v5337_v48, 0.0  ;;  %v1279_v28 = vsel %vm1147_vm0, %v5339_v49, 0.0 }
 0x15f   : > { %1327 = vrot.lane.b32.xlu1 %v1309_v47, %s4837_s21  ;;  %1408 = vst.msk [vmem:[#allocation5 + $0x28] sm:$0xff] %vm1292_vm2, %v4838_v15 }
 0x160   : > { %1409 = vst.msk [vmem:[#allocation5 + $0x30] sm:$0xff] %vm1292_vm2, %v4838_v15 }
 0x161   : > { %1410 = vst.msk [vmem:[#allocation5 + $0x38] sm:$0xff] %vm1292_vm2, %v4838_v15 }
 0x162   : > { %1424 = vst.msk [vmem:[#allocation7 + $0x28] sm:$0xff] %vm1147_vm0, %v4839_v19 }
 0x163   : > { %1425 = vst.msk [vmem:[#allocation7 + $0x30] sm:$0xff] %vm1147_vm0, %v4839_v19 }
 0x164   : > { %1426 = vst.msk [vmem:[#allocation7 + $0x38] sm:$0xff] %vm1147_vm0, %v4839_v19 }
 0x166   : > { %1325 = vrot.lane.b32.xlu2 %v1308_v52, %s4837_s21 }
 0x167   : > { %1225 = vrot.lane.b32.xlu1 %v1203_v51, %s4836_s19 }
 0x16e   : > { %1329 = vrot.lane.b32.xlu2 %v1310_v53, %s4837_s21 }
 0x16f   : > { %1331 = vrot.lane.b32.xlu1 %v1311_v54, %s4837_s21 }
 0x176   : > { %1227 = vrot.lane.b32.xlu2 %v1204_v55, %s4836_s19  ;;  %v1380_v55 = vand.u32 127, %v1379_v50 }
 0x177   : > { %1335 = vrot.lane.b32.xlu1 %v1313_v57, %s4837_s21 }
 0x178   : > { %v1382_v56 = vadd.s32 4294967288, %v1380_v55 }
 0x179   : > { %1259 = vadd.xlane.f32.xlu0 %v1258_v58 }
 0x17e   : > { %1333 = vrot.lane.b32.xlu2 %v1312_v59, %s4837_s21 }
 0x17f   : > { %1215 = vrot.lane.b32.xlu1 %v1198_v60, %s4836_s19 }
 0x186   : > { %1337 = vrot.lane.b32.xlu2 %v1314_v61, %s4837_s21 }
 0x18d   : > { %1223 = vrot.lane.b32.xlu0 %v1202_v62, %s4836_s19 }
 0x1a9   : > { %1262 = vadd.xlane.f32.xlu1 %v1261_v0 }
 0x1af   : > { %1265 = vadd.xlane.f32.xlu2 %v1264_v3 }
 0x1b0   : > { %v1222_v4 = vpop.permute.xlu2 %1221 }
 0x1b1   : > { %1242 = vst.msk [vmem:[#allocation2 + $0x10] sm:$0xf] %vm1237_vm1, %v1222_v4  ;;  %1271 = vadd.xlane.f32.xlu1 %v1270_v5 }
 0x1b7   : > { %1268 = vadd.xlane.f32.xlu0 %v1267_v7 }
 0x1b8   : > { %v1220_v8 = vpop.permute.xlu2 %1219 }
 0x1b9   : > { %1241 = vst.msk [vmem:[#allocation2 + $0xc] sm:$0xf] %vm1237_vm1, %v1220_v8 }
 0x1c0   : > { %v5361_v9 = vpop.permute.xlu2 %1325 }
 0x1c1   : > { %v1218_v10 = vpop.permute.xlu1 %1217  ;;  %v1214_v11 = vpop.permute.xlu0 %1213  ;;  %v1350_v35 = vsel %vm1147_vm0, %v5361_v9, 0.0 }
 0x1c2   : > { %1240 = vst.msk [vmem:[#allocation2 + $0x8] sm:$0xf] %vm1237_vm1, %v1218_v10 }
 0x1c3   : > { %1238 = vst.msk [vmem:[#allocation2] sm:$0xf] %vm1237_vm1, %v1214_v11 }
 0x1c8   : > { %v5365_v12 = vpop.permute.xlu2 %1329 }
 0x1c9   : > { %v1324_v13 = vpop.permute.xlu1 %1323  ;;  %v1356_v37 = vsel %vm1147_vm0, %v5365_v12, 0.0 }
 0x1ca   : > { %v1347_v14 = vsel %vm1147_vm0, %v1324_v13, 0.0 }
 0x1cb   : > { %1348 = vadd.xlane.f32.xlu2 %v1347_v14 }
 0x1d0   : > { %v1228_v16 = vpop.permute.xlu2 %1227 }
 0x1d1   : > { %1245 = vst.msk [vmem:[#allocation2 + $0x1c] sm:$0xf] %vm1237_vm1, %v1228_v16  ;;  %v1328_v17 = vpop.permute.xlu1 %1327 }
 0x1d2   : > { %v1353_v18 = vsel %vm1147_vm0, %v1328_v17, 0.0 }
 0x1d3   : > { %1354 = vadd.xlane.f32.xlu0 %v1353_v18 }
 0x1d8   : > { %v1334_v20 = vpop.permute.xlu2 %1333 }
 0x1d9   : > { %v1362_v21 = vsel %vm1147_vm0, %v1334_v20, 0.0  ;;  %v1226_v22 = vpop.permute.xlu1 %1225 }
 0x1da   : > { %1363 = vadd.xlane.f32.xlu2 %v1362_v21  ;;  %1244 = vst.msk [vmem:[#allocation2 + $0x18] sm:$0xf] %vm1237_vm1, %v1226_v22 }
 0x1e0   : > { %v1338_v23 = vpop.permute.xlu2 %1337 }
 0x1e1   : > { %v1368_v24 = vsel %vm1147_vm0, %v1338_v23, 0.0  ;;  %v1332_v26 = vpop.permute.xlu1 %1331 }
 0x1e2   : > { %1369 = vadd.xlane.f32.xlu1 %v1368_v24  ;;  %1274 = vadd.xlane.f32.xlu2 %v1273_v25  ;;  %v1359_v27 = vsel %vm1147_vm0, %v1332_v26, 0.0 }
 0x1e3   : > { %1360 = vadd.xlane.f32.xlu0 %v1359_v27 }
 0x1e9   : > { %v1336_v29 = vpop.permute.xlu1 %1335 }
 0x1ea   : > { %1280 = vadd.xlane.f32.xlu1 %v1279_v28  ;;  %v1365_v30 = vsel %vm1147_vm0, %v1336_v29, 0.0 }
 0x1eb   : > { %1366 = vadd.xlane.f32.xlu0 %v1365_v30 }
 0x1ec   : > { %v1260_v32 = vpop.xlane.xlu0 %1259 }
 0x1ed   : > { %v1284_v33 = vadd.f32 %v5403_v31, %v1260_v32 }
 0x1ef   : > { %1293 = vst.msk [vmem:[#allocation3] sm:$0xff] %vm1292_vm2, %v1284_v33 }
 0x1f1   : > { %v1216_v34 = vpop.permute.xlu1 %1215 }
 0x1f2   : > { %1239 = vst.msk [vmem:[#allocation2 + $0x4] sm:$0xf] %vm1237_vm1, %v1216_v34 }
 0x1f3   : > { %1351 = vadd.xlane.f32.xlu0 %v1350_v35 }
 0x1fb   : > { %1357 = vadd.xlane.f32.xlu0 %v1356_v37 }
 0x1ff   : > { %v1224_v38 = vpop.permute.xlu0 %1223 }
 0x200   : > { %1243 = vst.msk [vmem:[#allocation2 + $0x14] sm:$0xf] %vm1237_vm1, %v1224_v38 }
 0x203   : > { %1277 = vadd.xlane.f32.xlu0 %v1276_v39 }
 0x21c   : > { %v1263_v40 = vpop.xlane.xlu1 %1262 }
 0x21d   : > { %v1285_v41 = vadd.f32 %v5403_v31, %v1263_v40 }
 0x21f   : > { %1294 = vst.msk [vmem:[#allocation3 + $0x8] sm:$0xff] %vm1292_vm2, %v1285_v41 }
 0x222   : > { %v1266_v42 = vpop.xlane.xlu2 %1265 }
 0x223   : > { %v1286_v43 = vadd.f32 %v5403_v31, %v1266_v42 }
 0x224   : > { %v1272_v44 = vpop.xlane.xlu1 %1271 }
 0x225   : > { %1295 = vst.msk [vmem:[#allocation3 + $0x10] sm:$0xff] %vm1292_vm2, %v1286_v43  ;;  %v1288_v45 = vadd.f32 %v5403_v31, %v1272_v44 }
 0x227   : > { %1297 = vst.msk [vmem:[#allocation3 + $0x20] sm:$0xff] %vm1292_vm2, %v1288_v45 }
 0x22a   : > { %v1269_v46 = vpop.xlane.xlu0 %1268 }
 0x22b   : > { %v1287_v47 = vadd.f32 %v5403_v31, %v1269_v46 }
 0x22d   : > { %1296 = vst.msk [vmem:[#allocation3 + $0x18] sm:$0xff] %vm1292_vm2, %v1287_v47 }
 0x23e   : > { %v1349_v36 = vpop.xlane.xlu2 %1348 }
 0x23f   : > { %v1381_v6 = vperm.slane %v1349_v36, %v1380_v55 }
 0x246   : > { %v1355_v49 = vpop.xlane.xlu0 %1354 }
 0x247   : > { %v1386_v7 = vperm.slane %v1355_v49, %v1380_v55 }
 0x24d   : > { %v1364_v48 = vpop.xlane.xlu2 %1363 }
 0x24e   : > { %v1390_v61 = vperm.slane %v1364_v48, %v1382_v56 }
 0x255   : > { %v1275_v51 = vpop.xlane.xlu2 %1274  ;;  %v1370_v52 = vpop.xlane.xlu1 %1369 }
 0x256   : > { %v1289_v53 = vadd.f32 %v5403_v31, %v1275_v51  ;;  %v1361_v54 = vpop.xlane.xlu0 %1360  ;;  %v1393_v62 = vperm.slane %v1370_v52, %v1382_v56 }
 0x257   : > { %v1389_v57 = vperm.slane %v1361_v54, %v1380_v55 }
 0x258   : > { %1298 = vst.msk [vmem:[#allocation3 + $0x28] sm:$0xff] %vm1292_vm2, %v1289_v53 }
 0x259   : > { %v1391_v0 = vsel %vm1384_vm3, %v1390_v61, %v1389_v57 }
 0x25d   : > { %v1281_v58 = vpop.xlane.xlu1 %1280 }
 0x25e   : > { %v1291_v59 = vadd.f32 %v5403_v31, %v1281_v58  ;;  %v1367_v60 = vpop.xlane.xlu0 %1366 }
 0x25f   : > { %v1392_v63 = vperm.slane %v1367_v60, %v1380_v55 }
 0x260   : > { %1300 = vst.msk [vmem:[#allocation3 + $0x38] sm:$0xff] %vm1292_vm2, %v1291_v59 }
 0x261   : > { %v1394_v1 = vsel %vm1384_vm3, %v1393_v62, %v1392_v63 }
 0x262   : > { %v1397_v2 = vsel %vm1395_vm4, %v1394_v1, %v1391_v0 }
 0x263   : > { %1402 = vst.msk [vmem:[#allocation4 + $0x2] sm:$0x3] %vm1400_vm5, %v1397_v2 }
 0x266   : > { %v1352_v3 = vpop.xlane.xlu0 %1351 }
 0x267   : > { %v1383_v4 = vperm.slane %v1352_v3, %v1382_v56 }
 0x269   : > { %v1385_v9 = vsel %vm1384_vm3, %v1383_v4, %v1381_v6 }
 0x26e   : > { %v1358_v5 = vpop.xlane.xlu0 %1357 }
 0x26f   : > { %v1387_v8 = vperm.slane %v1358_v5, %v1382_v56 }
 0x271   : > { %v1388_v10 = vsel %vm1384_vm3, %v1387_v8, %v1386_v7 }
 0x272   : > { %v1396_v11 = vsel %vm1395_vm4, %v1388_v10, %v1385_v9 }
 0x273   : > { %1401 = vst.msk [vmem:[#allocation4] sm:$0x3] %vm1400_vm5, %v1396_v11 }
 0x276   : > { %v1278_v12 = vpop.xlane.xlu0 %1277 }
 0x277   : > { %v1290_v13 = vadd.f32 %v5403_v31, %v1278_v12 }
 0x279   : > { %1299 = vst.msk [vmem:[#allocation3 + $0x30] sm:$0xff] %vm1292_vm2, %v1290_v13 }
 0x27a PF: > { %v4498_v14 = vld [vmem:[%s7240_s4] sm:$0xff]  ;;  %v1428_v16 = vld [vmem:[%s5302_s1 + $0x8] sm:$0xff]  ;;  %v1461_v18 = vld [vmem:[%s5302_s1 + $0x110] sm:$0xff]  ;;  %vm1631_vm6 = vcmask 130048   ;;  %v4840_v1 = vmov 0   ;;  %s2805_s20 = scalar_lea.vmem [#allocation4], %s4817_s28 }
 0x27b   : > { %v1427_v15 = vld [vmem:[%s5302_s1] sm:$0xff]  ;;  %v1462_v19 = vld [vmem:[%s5302_s1 + $0x118] sm:$0xff]  ;;  %1831 = vmatpush.bf16.msra.mxu0 %v4498_v14  ;;  %4532 = vmatpush.bf16.msra.mxu1 %v4498_v14  ;;  %v1492_v22 = vld [vmem:[%s5302_s1 + $0x208] sm:$0xff]  ;;  %vm2991_vm7 = vcmask 130112   ;;  %vm3182_vm8 = vcmask 1041409   ;;  %vm3184_vm9 = vcmask 1042434  }
 0x27c   : > { %v1555_v17 = vpack.c.bf16 %v1428_v16, %v1427_v15  ;;  %v1491_v20 = vld [vmem:[%s5302_s1 + $0x200] sm:$0xff]  ;;  %v1572_v21 = vpack.c.bf16 %v1462_v19, %v1461_v18  ;;  %v1521_v23 = vld [vmem:[%s5302_s1 + $0x2f0] sm:$0xff]  ;;  %v1522_v24 = vld [vmem:[%s5302_s1 + $0x2f8] sm:$0xff]  ;;  %4533 = vmatpush.bf16.msra.mxu2 %v4498_v14  ;;  %4534 = vmatpush.bf16.msra.mxu3 %v4498_v14  ;;  %vm3186_vm10 = vcmask 1043459   ;;  %vm3188_vm11 = vcmask 1044484   ;;  %p4463_p5 = scmp.ne.s32.totalorder %s4817_s28, 1 }
 0x27d   : > { %v1587_v25 = vpack.c.bf16 %v1492_v22, %v1491_v20  ;;  %v1602_v26 = vpack.c.bf16 %v1522_v24, %v1521_v23  ;;  %v1429_v27 = vld [vmem:[%s5302_s1 + $0x10] sm:$0xff]  ;;  %v1430_v28 = vld [vmem:[%s5302_s1 + $0x18] sm:$0xff]  ;;  %v1463_v29 = vld [vmem:[%s5302_s1 + $0x120] sm:$0xff]  ;;  %4640 = vset.pattern.permute.xlu0 %v4840_v1  ;;  %4639 = vset.pattern.permute.xlu2 %v4840_v1  ;;  %vm3190_vm12 = vcmask 1045509   ;;  %vm3192_vm13 = vcmask 1046534   ;;  %s7309_s21 = sld [smem:[#allocation22_spill]] (!%p4463_p5) }
 0x27e   : > { %4385 = vmatmul.msk.bf16.vlgmr.msra.gmra.mxu0 %vm1631_vm6, %v1555_v17  ;;  %4402 = vmatmul.msk.bf16.vlgmr.msra.gmra.mxu1 %vm1631_vm6, %v1572_v21  ;;  %v1464_v30 = vld [vmem:[%s5302_s1 + $0x128] sm:$0xff]  ;;  %v1493_v31 = vld [vmem:[%s5302_s1 + $0x210] sm:$0xff]  ;;  %v1494_v32 = vld [vmem:[%s5302_s1 + $0x218] sm:$0xff]  ;;  %v1556_v35 = vpack.c.bf16 %v1430_v28, %v1429_v27  ;;  %vm3194_vm14 = vcmask 1047559   ;;  %s7310_s11 = sld [smem:[#allocation23_spill]] (!%p4463_p5) }
 0x27f   : > { %4417 = vmatmul.msk.bf16.vlgmr.msra.gmra.mxu2 %vm1631_vm6, %v1587_v25  ;;  %4432 = vmatmul.msk.bf16.vlgmr.msra.gmra.mxu3 %vm1631_vm6, %v1602_v26  ;;  %v1523_v33 = vld [vmem:[%s5302_s1 + $0x300] sm:$0xff]  ;;  %v1524_v34 = vld [vmem:[%s5302_s1 + $0x308] sm:$0xff]  ;;  %v1573_v37 = vpack.c.bf16 %v1464_v30, %v1463_v29  ;;  %v1588_v38 = vpack.c.bf16 %v1494_v32, %v1493_v31  ;;  %v1465_v42 = vld [vmem:[%s5302_s1 + $0x130] sm:$0xff]  ;;  %s7315_s22 = sld [smem:[#allocation24_spill]] (!%p4463_p5) }
 0x280   : > { %v1603_v39 = vpack.c.bf16 %v1524_v34, %v1523_v33  ;;  %v1431_v40 = vld [vmem:[%s5302_s1 + $0x20] sm:$0xff]  ;;  %v1432_v41 = vld [vmem:[%s5302_s1 + $0x28] sm:$0xff]  ;;  %v1466_v43 = vld [vmem:[%s5302_s1 + $0x138] sm:$0xff]  ;;  %4641 = vset.pattern.permute.xlu1 %v4840_v1  ;;  %s7316_s16 = sld [smem:[#allocation26_spill]] (!%p4463_p5) }
 0x281   : > { %v1495_v44 = vld [vmem:[%s5302_s1 + $0x220] sm:$0xff]  ;;  %v1496_v45 = vld [vmem:[%s5302_s1 + $0x228] sm:$0xff]  ;;  %v1525_v46 = vld [vmem:[%s5302_s1 + $0x310] sm:$0xff]  ;;  %v1557_v36 = vpack.c.bf16 %v1432_v41, %v1431_v40  ;;  %v1574_v48 = vpack.c.bf16 %v1466_v43, %v1465_v42 }
 0x282   : > { %v1526_v47 = vld [vmem:[%s5302_s1 + $0x318] sm:$0xff]  ;;  %v1589_v49 = vpack.c.bf16 %v1496_v45, %v1495_v44  ;;  %v1467_v51 = vld [vmem:[%s5302_s1 + $0x140] sm:$0xff]  ;;  %v1468_v52 = vld [vmem:[%s5302_s1 + $0x148] sm:$0xff] }
 0x283   : > { %v1604_v50 = vpack.c.bf16 %v1526_v47, %v1525_v46  ;;  %v1497_v53 = vld [vmem:[%s5302_s1 + $0x230] sm:$0xff]  ;;  %v1434_v55 = vld [vmem:[%s5302_s1 + $0x38] sm:$0xff]  ;;  %v1527_v57 = vld [vmem:[%s5302_s1 + $0x320] sm:$0xff]  ;;  %v1575_v59 = vpack.c.bf16 %v1468_v52, %v1467_v51 }
 0x284   : > { %v1433_v54 = vld [vmem:[%s5302_s1 + $0x30] sm:$0xff]  ;;  %v1498_v56 = vld [vmem:[%s5302_s1 + $0x238] sm:$0xff]  ;;  %v1528_v58 = vld [vmem:[%s5302_s1 + $0x328] sm:$0xff] }
 0x285   : > { %v1558_v60 = vpack.c.bf16 %v1434_v55, %v1433_v54  ;;  %v1590_v61 = vpack.c.bf16 %v1498_v56, %v1497_v53  ;;  %v1605_v62 = vpack.c.bf16 %v1528_v58, %v1527_v57  ;;  %v2802_v63 = vld [vmem:[#allocation3 + $0x28] sm:$0xff]  ;;  %v2801_v0 = vld [vmem:[#allocation3 + $0x20] sm:$0xff]  ;;  %v1469_v2 = vld [vmem:[%s5302_s1 + $0x150] sm:$0xff] }
 0x286   : > { %2835 = vperm.xlu0 %4640, %v2802_v63   ;;  %2830 = vperm.xlu2 %4639, %v2801_v0   ;;  %v1470_v3 = vld [vmem:[%s5302_s1 + $0x158] sm:$0xff]  ;;  %v2798_v4 = vld [vmem:[#allocation3 + $0x8] sm:$0xff]  ;;  %v1529_v9 = vld [vmem:[%s5302_s1 + $0x330] sm:$0xff] }
 0x287   : > { %v1499_v5 = vld [vmem:[%s5302_s1 + $0x240] sm:$0xff]  ;;  %v1436_v7 = vld [vmem:[%s5302_s1 + $0x48] sm:$0xff]  ;;  %v1530_v10 = vld [vmem:[%s5302_s1 + $0x338] sm:$0xff]  ;;  %v1576_v11 = vpack.c.bf16 %v1470_v3, %v1469_v2 }
 0x288   : > { %v1435_v6 = vld [vmem:[%s5302_s1 + $0x40] sm:$0xff]  ;;  %v1500_v8 = vld [vmem:[%s5302_s1 + $0x248] sm:$0xff]  ;;  %v1606_v14 = vpack.c.bf16 %v1530_v10, %v1529_v9  ;;  %v1501_v17 = vld [vmem:[%s5302_s1 + $0x250] sm:$0xff] }
 0x289   : > { %v1559_v12 = vpack.c.bf16 %v1436_v7, %v1435_v6  ;;  %v1591_v13 = vpack.c.bf16 %v1500_v8, %v1499_v5  ;;  %v1471_v15 = vld [vmem:[%s5302_s1 + $0x160] sm:$0xff]  ;;  %v1472_v16 = vld [vmem:[%s5302_s1 + $0x168] sm:$0xff]  ;;  %v1437_v18 = vld [vmem:[%s5302_s1 + $0x50] sm:$0xff] }
 0x28a   : > { %v1438_v19 = vld [vmem:[%s5302_s1 + $0x58] sm:$0xff]  ;;  %v1531_v21 = vld [vmem:[%s5302_s1 + $0x340] sm:$0xff]  ;;  %v1532_v22 = vld [vmem:[%s5302_s1 + $0x348] sm:$0xff]  ;;  %v1577_v23 = vpack.c.bf16 %v1472_v16, %v1471_v15 }
 0x28b   : > { %v1502_v20 = vld [vmem:[%s5302_s1 + $0x258] sm:$0xff]  ;;  %v1560_v24 = vpack.c.bf16 %v1438_v19, %v1437_v18  ;;  %v1607_v26 = vpack.c.bf16 %v1532_v22, %v1531_v21  ;;  %v1473_v27 = vld [vmem:[%s5302_s1 + $0x170] sm:$0xff]  ;;  %v1503_v29 = vld [vmem:[%s5302_s1 + $0x260] sm:$0xff] }
 0x28c   : > { %v1592_v25 = vpack.c.bf16 %v1502_v20, %v1501_v17  ;;  %v1474_v28 = vld [vmem:[%s5302_s1 + $0x178] sm:$0xff]  ;;  %v1439_v30 = vld [vmem:[%s5302_s1 + $0x60] sm:$0xff]  ;;  %v1440_v31 = vld [vmem:[%s5302_s1 + $0x68] sm:$0xff] }
 0x28d   : > { %v1504_v32 = vld [vmem:[%s5302_s1 + $0x268] sm:$0xff]  ;;  %v1533_v33 = vld [vmem:[%s5302_s1 + $0x350] sm:$0xff]  ;;  %v1534_v34 = vld [vmem:[%s5302_s1 + $0x358] sm:$0xff] }
 0x28e   : > { %4386 = vmatmul.msk.bf16.gmra.mxu0 %vm1631_vm6, %v1556_v35  ;;  %4403 = vmatmul.msk.bf16.gmra.mxu1 %vm1631_vm6, %v1573_v37  ;;  %v1578_v35 = vpack.c.bf16 %v1474_v28, %v1473_v27  ;;  %v1561_v37 = vpack.c.bf16 %v1440_v31, %v1439_v30  ;;  %v1475_v40 = vld [vmem:[%s5302_s1 + $0x180] sm:$0xff]  ;;  %v1476_v41 = vld [vmem:[%s5302_s1 + $0x188] sm:$0xff]  ;;  %v1505_v42 = vld [vmem:[%s5302_s1 + $0x270] sm:$0xff] }
 0x28f   : > { %4418 = vmatmul.msk.bf16.gmra.mxu2 %vm1631_vm6, %v1588_v38  ;;  %4433 = vmatmul.msk.bf16.gmra.mxu3 %vm1631_vm6, %v1603_v39  ;;  %v1593_v38 = vpack.c.bf16 %v1504_v32, %v1503_v29  ;;  %v1608_v39 = vpack.c.bf16 %v1534_v34, %v1533_v33  ;;  %v1441_v43 = vld [vmem:[%s5302_s1 + $0x70] sm:$0xff]  ;;  %v1442_v44 = vld [vmem:[%s5302_s1 + $0x78] sm:$0xff]  ;;  %v1535_v46 = vld [vmem:[%s5302_s1 + $0x360] sm:$0xff] }
 0x290   : > { %2815 = vperm.xlu2 %4639, %v2798_v4   ;;  %v1506_v45 = vld [vmem:[%s5302_s1 + $0x278] sm:$0xff]  ;;  %v1536_v47 = vld [vmem:[%s5302_s1 + $0x368] sm:$0xff]  ;;  %v1477_v52 = vld [vmem:[%s5302_s1 + $0x190] sm:$0xff] }
 0x291   : > { %v5538_v51 = vld [vmem:[%s7241_s5] ss:$0 sm:$0xff]  ;;  %v1507_v54 = vld [vmem:[%s5302_s1 + $0x280] sm:$0xff]  ;;  %v1444_v56 = vld [vmem:[%s5302_s1 + $0x88] sm:$0xff] }
 0x292   : > { %v1478_v53 = vld [vmem:[%s5302_s1 + $0x198] sm:$0xff]  ;;  %v1443_v55 = vld [vmem:[%s5302_s1 + $0x80] sm:$0xff]  ;;  %v1508_v57 = vld [vmem:[%s5302_s1 + $0x288] sm:$0xff] }
 0x293   : > { %v1537_v58 = vld [vmem:[%s5302_s1 + $0x370] sm:$0xff]  ;;  %v1595_v0 = vpack.c.bf16 %v1508_v57, %v1507_v54  ;;  %v5553_v4 = vld [vmem:[%s7244_s8] ss:$0 sm:$0xff]  ;;  %v1479_v22 = vld [vmem:[%s5302_s1 + $0x1a0] sm:$0xff] }
 0x294   : > { %v1446_v27 = vld [vmem:[%s5302_s1 + $0x98] sm:$0xff]  ;;  %v1539_v32 = vld [vmem:[%s5302_s1 + $0x380] sm:$0xff]  ;;  %v1540_v33 = vld [vmem:[%s5302_s1 + $0x388] sm:$0xff] }
 0x295   : > { %v1510_v31 = vld [vmem:[%s5302_s1 + $0x298] sm:$0xff] }
 0x29e   : > { %4387 = vmatmul.msk.bf16.gmra.mxu0 %vm1631_vm6, %v1557_v36  ;;  %4404 = vmatmul.msk.bf16.gmra.mxu1 %vm1631_vm6, %v1574_v48  ;;  %v1579_v36 = vpack.c.bf16 %v1476_v41, %v1475_v40  ;;  %v1562_v48 = vpack.c.bf16 %v1442_v44, %v1441_v43 }
 0x29f   : > { %4419 = vmatmul.msk.bf16.gmra.mxu2 %vm1631_vm6, %v1589_v49  ;;  %4434 = vmatmul.msk.bf16.gmra.mxu3 %vm1631_vm6, %v1604_v50  ;;  %v1594_v49 = vpack.c.bf16 %v1506_v45, %v1505_v42  ;;  %v1609_v50 = vpack.c.bf16 %v1536_v47, %v1535_v46  ;;  %v1611_v46 = vpack.c.bf16 %v1540_v33, %v1539_v32 }
 0x2ae   : > { %4405 = vmatmul.msk.bf16.gmra.mxu1 %vm1631_vm6, %v1575_v59  ;;  %4388 = vmatmul.msk.bf16.gmra.mxu0 %vm1631_vm6, %v1558_v60  ;;  %v1538_v59 = vld [vmem:[%s5302_s1 + $0x378] sm:$0xff]  ;;  %v1580_v60 = vpack.c.bf16 %v1478_v53, %v1477_v52 }
 0x2af   : > { %4420 = vmatmul.msk.bf16.gmra.mxu2 %vm1631_vm6, %v1590_v61  ;;  %4435 = vmatmul.msk.bf16.gmra.mxu3 %vm1631_vm6, %v1605_v62  ;;  %v1563_v61 = vpack.c.bf16 %v1444_v56, %v1443_v55  ;;  %v1610_v1 = vpack.c.bf16 %v1538_v59, %v1537_v58 }
 0x2be   : > { %4406 = vmatmul.msk.bf16.gmra.mxu1 %vm1631_vm6, %v1576_v11  ;;  %4389 = vmatmul.msk.bf16.gmra.mxu0 %vm1631_vm6, %v1559_v12 }
 0x2bf   : > { %4421 = vmatmul.msk.bf16.gmra.mxu2 %vm1631_vm6, %v1591_v13  ;;  %4436 = vmatmul.msk.bf16.gmra.mxu3 %vm1631_vm6, %v1606_v14 }
 0x2ce   : > { %4407 = vmatmul.msk.bf16.gmra.mxu1 %vm1631_vm6, %v1577_v23  ;;  %4390 = vmatmul.msk.bf16.gmra.mxu0 %vm1631_vm6, %v1560_v24  ;;  %v1480_v23 = vld [vmem:[%s5302_s1 + $0x1a8] sm:$0xff] }
 0x2cf   : > { %4422 = vmatmul.msk.bf16.gmra.mxu2 %vm1631_vm6, %v1592_v25  ;;  %4437 = vmatmul.msk.bf16.gmra.mxu3 %vm1631_vm6, %v1607_v26  ;;  %v1509_v25 = vld [vmem:[%s5302_s1 + $0x290] sm:$0xff]  ;;  %v1581_v40 = vpack.c.bf16 %v1480_v23, %v1479_v22 }
 0x2d0   : > { %v1445_v26 = vld [vmem:[%s5302_s1 + $0x90] sm:$0xff]  ;;  %v1596_v45 = vpack.c.bf16 %v1510_v31, %v1509_v25 }
 0x2d1   : > { %v1564_v41 = vpack.c.bf16 %v1446_v27, %v1445_v26 }
 0x2de   : > { %4408 = vmatmul.msk.bf16.gmra.mxu1 %vm1631_vm6, %v1578_v35  ;;  %4391 = vmatmul.msk.bf16.gmra.mxu0 %vm1631_vm6, %v1561_v37 }
 0x2df   : > { %4423 = vmatmul.msk.bf16.gmra.mxu2 %vm1631_vm6, %v1593_v38  ;;  %4438 = vmatmul.msk.bf16.gmra.mxu3 %vm1631_vm6, %v1608_v39 }
 0x2ee   : > { %4409 = vmatmul.msk.bf16.gmra.mxu1 %vm1631_vm6, %v1579_v36  ;;  %4392 = vmatmul.msk.bf16.gmra.mxu0 %vm1631_vm6, %v1562_v48 }
 0x2ef   : > { %4424 = vmatmul.msk.bf16.gmra.mxu2 %vm1631_vm6, %v1594_v49  ;;  %4439 = vmatmul.msk.bf16.gmra.mxu3 %vm1631_vm6, %v1609_v50 }
 0x2fb   : > { %v1833_v62 = vpop.f32.mrf.mxu0  ;;  %v1918_v63 = vpop.f32.mrf.mxu1 }
 0x2fc   : > { %v1834_v2 = vadd.f32 %v5538_v51, %v1833_v62  ;;  %v1919_v3 = vadd.f32 %v5538_v51, %v1918_v63 }
 0x2fe   : > { %v2153_v5 = vmax.f32 %v1834_v2, 0.0  ;;  %v2187_v6 = vmax.f32 %v1919_v3, 0.0  ;;  %4410 = vmatmul.msk.bf16.gmra.mxu1 %vm1631_vm6, %v1580_v60  ;;  %4393 = vmatmul.msk.bf16.gmra.mxu0 %vm1631_vm6, %v1563_v61 }
 0x2ff   : > { %4425 = vmatmul.msk.bf16.gmra.mxu2 %vm1631_vm6, %v1595_v0  ;;  %4440 = vmatmul.msk.bf16.gmra.mxu3 %vm1631_vm6, %v1610_v1 }
 0x300   : > { %v2319_v7 = vmul.f32 %v5553_v4, %v2187_v6  ;;  %v2285_v8 = vmul.f32 %v5553_v4, %v2153_v5 }
 0x302   : > { %v1993_v9 = vpop.f32.mrf.mxu2  ;;  %v2068_v10 = vpop.f32.mrf.mxu3  ;;  %v2515_v11 = vsel %vm1631_vm6, %v2319_v7, 0.0  ;;  %v2413_v12 = vsel %vm1631_vm6, %v2285_v8, 0.0  ;;  %v1481_v8 = vld [vmem:[%s5302_s1 + $0x1b0] sm:$0xff] }
 0x303   : > { %v1994_v13 = vadd.f32 %v5538_v51, %v1993_v9  ;;  %v1920_v14 = vpop.f32.mrf.mxu1  ;;  %2516 = vadd.xlane.f32.xlu1 %v2515_v11  ;;  %v1835_v15 = vpop.f32.mrf.mxu0  ;;  %2414 = vadd.xlane.f32.xlu0 %v2413_v12  ;;  %v2069_v17 = vadd.f32 %v5538_v51, %v2068_v10  ;;  %v1482_v9 = vld [vmem:[%s5302_s1 + $0x1b8] sm:$0xff]  ;;  %v1511_v10 = vld [vmem:[%s5302_s1 + $0x2a0] sm:$0xff]  ;;  %v1512_v12 = vld [vmem:[%s5302_s1 + $0x2a8] sm:$0xff] }
 0x304   : > { %v1921_v16 = vadd.f32 %v5538_v51, %v1920_v14  ;;  %v1836_v18 = vadd.f32 %v5538_v51, %v1835_v15  ;;  %v1542_v14 = vld [vmem:[%s5302_s1 + $0x398] sm:$0xff] }
 0x305   : > { %v2217_v19 = vmax.f32 %v1994_v13, 0.0  ;;  %v2247_v28 = vmax.f32 %v2069_v17, 0.0  ;;  %v1541_v13 = vld [vmem:[%s5302_s1 + $0x390] sm:$0xff] }
 0x306   : > { %v2188_v20 = vmax.f32 %v1921_v16, 0.0  ;;  %v2154_v21 = vmax.f32 %v1836_v18, 0.0  ;;  %v1612_v25 = vpack.c.bf16 %v1542_v14, %v1541_v13 }
 0x307   : > { %v2349_v24 = vmul.f32 %v5553_v4, %v2217_v19  ;;  %v2379_v48 = vmul.f32 %v5553_v4, %v2247_v28 }
 0x308   : > { %v2320_v29 = vmul.f32 %v5553_v4, %v2188_v20  ;;  %v2286_v30 = vmul.f32 %v5553_v4, %v2154_v21  ;;  %v1582_v21 = vpack.c.bf16 %v1482_v9, %v1481_v8  ;;  %v1449_v8 = vld [vmem:[%s5302_s1 + $0xb0] sm:$0xff]  ;;  %v1450_v9 = vld [vmem:[%s5302_s1 + $0xb8] sm:$0xff] }
 0x309   : > { %v2605_v34 = vsel %vm1631_vm6, %v2349_v24, 0.0  ;;  %v2695_v55 = vsel %vm1631_vm6, %v2379_v48, 0.0  ;;  %v1597_v24 = vpack.c.bf16 %v1512_v12, %v1511_v10  ;;  %v1543_v10 = vld [vmem:[%s5302_s1 + $0x3a0] sm:$0xff]  ;;  %v1566_v14 = vpack.c.bf16 %v1450_v9, %v1449_v8 }
 0x30a   : > { %v1995_v35 = vpop.f32.mrf.mxu2  ;;  %v2070_v37 = vpop.f32.mrf.mxu3  ;;  %v2518_v38 = vsel %vm1631_vm6, %v2320_v29, 0.0  ;;  %v2416_v39 = vsel %vm1631_vm6, %v2286_v30, 0.0  ;;  %v1447_v29 = vld [vmem:[%s5302_s1 + $0xa0] sm:$0xff]  ;;  %v1448_v30 = vld [vmem:[%s5302_s1 + $0xa8] sm:$0xff] }
 0x30b   : > { %v1996_v42 = vadd.f32 %v5538_v51, %v1995_v35  ;;  %v1923_v43 = vpop.f32.mrf.mxu1  ;;  %2519 = vadd.xlane.f32.xlu2 %v2518_v38  ;;  %2606 = vadd.xlane.f32.xlu1 %v2605_v34  ;;  %v1838_v44 = vpop.f32.mrf.mxu0  ;;  %v2071_v52 = vadd.f32 %v5538_v51, %v2070_v37  ;;  %v1565_v34 = vpack.c.bf16 %v1448_v30, %v1447_v29 }
 0x30c   : > { %v1924_v47 = vadd.f32 %v5538_v51, %v1923_v43  ;;  %v1839_v36 = vadd.f32 %v5538_v51, %v1838_v44  ;;  %2417 = vadd.xlane.f32.xlu0 %v2416_v39 }
 0x30d   : > { %v2218_v49 = vmax.f32 %v1996_v42, 0.0  ;;  %v2248_v57 = vmax.f32 %v2071_v52, 0.0  ;;  %v1483_v52 = vld [vmem:[%s5302_s1 + $0x1c0] sm:$0xff] }
 0x30e   : > { %v2189_v50 = vmax.f32 %v1924_v47, 0.0  ;;  %4411 = vmatmul.msk.bf16.gmra.mxu1 %vm1631_vm6, %v1581_v40  ;;  %4394 = vmatmul.msk.bf16.gmra.mxu0 %vm1631_vm6, %v1564_v41  ;;  %v2155_v54 = vmax.f32 %v1839_v36, 0.0 }
 0x30f   : > { %v2350_v53 = vmul.f32 %v5553_v4, %v2218_v49  ;;  %4426 = vmatmul.msk.bf16.gmra.mxu2 %vm1631_vm6, %v1596_v45  ;;  %4441 = vmatmul.msk.bf16.gmra.mxu3 %vm1631_vm6, %v1611_v46  ;;  %v2380_v6 = vmul.f32 %v5553_v4, %v2248_v57 }
 0x310   : > { %v2321_v56 = vmul.f32 %v5553_v4, %v2189_v50  ;;  %v2287_v1 = vmul.f32 %v5553_v4, %v2155_v54 }
 0x311   : > { %v2608_v59 = vsel %vm1631_vm6, %v2350_v53, 0.0  ;;  %v2698_v19 = vsel %vm1631_vm6, %v2380_v6, 0.0  ;;  %v1484_v53 = vld [vmem:[%s5302_s1 + $0x1c8] sm:$0xff] }
 0x312   : > { %v1998_v58 = vpop.f32.mrf.mxu2  ;;  %v2521_v60 = vsel %vm1631_vm6, %v2321_v56, 0.0  ;;  %v2073_v61 = vpop.f32.mrf.mxu3  ;;  %v2419_v11 = vsel %vm1631_vm6, %v2287_v1, 0.0  ;;  %v1514_v56 = vld [vmem:[%s5302_s1 + $0x2b8] sm:$0xff] }
 0x313   : > { %v1999_v62 = vadd.f32 %v5538_v51, %v1998_v58  ;;  %v1925_v63 = vpop.f32.mrf.mxu1  ;;  %2609 = vadd.xlane.f32.xlu2 %v2608_v59  ;;  %2696 = vadd.xlane.f32.xlu1 %v2695_v55  ;;  %v1840_v0 = vpop.f32.mrf.mxu0  ;;  %v2074_v3 = vadd.f32 %v5538_v51, %v2073_v61  ;;  %v1513_v55 = vld [vmem:[%s5302_s1 + $0x2b0] sm:$0xff] }
 0x314   : > { %2522 = vadd.xlane.f32.xlu0 %v2521_v60  ;;  %v1841_v5 = vadd.f32 %v5538_v51, %v1840_v0  ;;  %v1926_v27 = vadd.f32 %v5538_v51, %v1925_v63  ;;  %v1583_v0 = vpack.c.bf16 %v1484_v53, %v1483_v52  ;;  %v1452_v52 = vld [vmem:[%s5302_s1 + $0xc8] sm:$0xff]  ;;  %v1545_v53 = vld [vmem:[%s5302_s1 + $0x3b0] sm:$0xff] }
 0x315   : > { %v2219_v2 = vmax.f32 %v1999_v62, 0.0  ;;  %v2249_v15 = vmax.f32 %v2074_v3, 0.0 }
 0x316   : > { %v2156_v17 = vmax.f32 %v1841_v5, 0.0  ;;  %v2190_v37 = vmax.f32 %v1926_v27, 0.0  ;;  %v1598_v5 = vpack.c.bf16 %v1514_v56, %v1513_v55 }
 0x317   : > { %v2351_v7 = vmul.f32 %v5553_v4, %v2219_v2  ;;  %v2381_v28 = vmul.f32 %v5553_v4, %v2249_v15  ;;  %v1544_v15 = vld [vmem:[%s5302_s1 + $0x3a8] sm:$0xff] }
 0x318   : > { %v2288_v33 = vmul.f32 %v5553_v4, %v2156_v17  ;;  %v2322_v36 = vmul.f32 %v5553_v4, %v2190_v37  ;;  %v1486_v37 = vld [vmem:[%s5302_s1 + $0x1d8] sm:$0xff] }
 0x319   : > { %v2611_v16 = vsel %vm1631_vm6, %v2351_v7, 0.0  ;;  %v2701_v38 = vsel %vm1631_vm6, %v2381_v28, 0.0 }
 0x31a   : > { %v2000_v18 = vpop.f32.mrf.mxu2  ;;  %v2075_v20 = vpop.f32.mrf.mxu3  ;;  %v2422_v42 = vsel %vm1631_vm6, %v2288_v33, 0.0  ;;  %v2524_v58 = vsel %vm1631_vm6, %v2322_v36, 0.0 }
 0x31b   : > { %v1928_v22 = vpop.f32.mrf.mxu1  ;;  %2699 = vadd.xlane.f32.xlu2 %v2698_v19  ;;  %v1843_v23 = vpop.f32.mrf.mxu0  ;;  %2420 = vadd.xlane.f32.xlu1 %v2419_v11  ;;  %v2001_v47 = vadd.f32 %v5538_v51, %v2000_v18  ;;  %v2076_v6 = vadd.f32 %v5538_v51, %v2075_v20  ;;  %v1613_v18 = vpack.c.bf16 %v1544_v15, %v1543_v10 }
 0x31c   : > { %v1844_v26 = vadd.f32 %v5538_v51, %v1843_v23  ;;  %2612 = vadd.xlane.f32.xlu0 %v2611_v16  ;;  %v1929_v31 = vadd.f32 %v5538_v51, %v1928_v22 }
 0x31d   : > { %v2220_v57 = vmax.f32 %v2001_v47, 0.0  ;;  %v2250_v19 = vmax.f32 %v2076_v6, 0.0 }
 0x31e   : > { %v2157_v32 = vmax.f32 %v1844_v26, 0.0  ;;  %4412 = vmatmul.msk.bf16.gmra.mxu1 %vm1631_vm6, %v1582_v21  ;;  %4395 = vmatmul.msk.bf16.gmra.mxu0 %vm1631_vm6, %v1565_v34  ;;  %v2191_v39 = vmax.f32 %v1929_v31, 0.0 }
 0x31f   : > { %4427 = vmatmul.msk.bf16.gmra.mxu2 %vm1631_vm6, %v1597_v24  ;;  %4442 = vmatmul.msk.bf16.gmra.mxu3 %vm1631_vm6, %v1612_v25  ;;  %v2352_v13 = vmul.f32 %v5553_v4, %v2220_v57  ;;  %v2382_v33 = vmul.f32 %v5553_v4, %v2250_v19  ;;  %v1517_v19 = vld [vmem:[%s5302_s1 + $0x2d0] sm:$0xff] }
 0x320   : > { %v2289_v35 = vmul.f32 %v5553_v4, %v2157_v32  ;;  %v2323_v50 = vmul.f32 %v5553_v4, %v2191_v39  ;;  %v1516_v39 = vld [vmem:[%s5302_s1 + $0x2c8] sm:$0xff] }
 0x321   : > { %v2614_v22 = vsel %vm1631_vm6, %v2352_v13, 0.0 }
 0x322   : > { %v2003_v40 = vpop.f32.mrf.mxu2  ;;  %v2425_v41 = vsel %vm1631_vm6, %v2289_v35, 0.0  ;;  %v2078_v43 = vpop.f32.mrf.mxu3  ;;  %v2527_v61 = vsel %vm1631_vm6, %v2323_v50, 0.0  ;;  %v1485_v35 = vld [vmem:[%s5302_s1 + $0x1d0] sm:$0xff]  ;;  %v1451_v50 = vld [vmem:[%s5302_s1 + $0xc0] sm:$0xff] }
 0x323   : > { %v1930_v44 = vpop.f32.mrf.mxu1  ;;  %2426 = vadd.xlane.f32.xlu2 %v2425_v41  ;;  %2423 = vadd.xlane.f32.xlu1 %v2422_v42  ;;  %v1845_v45 = vpop.f32.mrf.mxu0  ;;  %v2004_v48 = vadd.f32 %v5538_v51, %v2003_v40  ;;  %v2079_v11 = vadd.f32 %v5538_v51, %v2078_v43  ;;  %v1584_v47 = vpack.c.bf16 %v1486_v37, %v1485_v35 }
 0x324   : > { %v1931_v46 = vadd.f32 %v5538_v51, %v1930_v44  ;;  %2702 = vadd.xlane.f32.xlu0 %v2701_v38  ;;  %v1846_v28 = vadd.f32 %v5538_v51, %v1845_v45  ;;  %v1515_v38 = vld [vmem:[%s5302_s1 + $0x2c0] sm:$0xff]  ;;  %v2704_v44 = vsel %vm1631_vm6, %v2382_v33, 0.0 }
 0x325   : > { %v2221_v59 = vmax.f32 %v2004_v48, 0.0  ;;  %v2251_v20 = vmax.f32 %v2079_v11, 0.0  ;;  %v1547_v33 = vld [vmem:[%s5302_s1 + $0x3c0] sm:$0xff] }
 0x326   : > { %v2192_v49 = vmax.f32 %v1931_v46, 0.0  ;;  %v2158_v40 = vmax.f32 %v1846_v28, 0.0 }
 0x327   : > { %v2353_v12 = vmul.f32 %v5553_v4, %v2221_v59  ;;  %v2383_v32 = vmul.f32 %v5553_v4, %v2251_v20  ;;  %v1546_v59 = vld [vmem:[%s5302_s1 + $0x3b8] sm:$0xff] }
 0x328   : > { %v2324_v54 = vmul.f32 %v5553_v4, %v2192_v49  ;;  %v1599_v49 = vpack.c.bf16 %v1516_v39, %v1515_v38  ;;  %v2290_v55 = vmul.f32 %v5553_v4, %v2158_v40  ;;  %v1518_v20 = vld [vmem:[%s5302_s1 + $0x2d8] sm:$0xff] }
 0x329   : > { %v2617_v21 = vsel %vm1631_vm6, %v2353_v12, 0.0  ;;  %v2707_v43 = vsel %vm1631_vm6, %v2383_v32, 0.0  ;;  %v1600_v32 = vpack.c.bf16 %v1518_v20, %v1517_v19 }
 0x32a   : > { %v2005_v60 = vpop.f32.mrf.mxu2  ;;  %v2530_v62 = vsel %vm1631_vm6, %v2324_v54, 0.0  ;;  %v2080_v63 = vpop.f32.mrf.mxu3 }
 0x32b   : > { %v2006_v1 = vadd.f32 %v5538_v51, %v2005_v60  ;;  %2528 = vadd.xlane.f32.xlu2 %v2527_v61  ;;  %2525 = vadd.xlane.f32.xlu1 %v2524_v58  ;;  %v1933_v2 = vpop.f32.mrf.mxu1  ;;  %v1848_v3 = vpop.f32.mrf.mxu0  ;;  %v2081_v16 = vadd.f32 %v5538_v51, %v2080_v63  ;;  %v1567_v58 = vpack.c.bf16 %v1452_v52, %v1451_v50 }
 0x32c   : > { %2531 = vadd.xlane.f32.xlu0 %v2530_v62  ;;  %v1849_v29 = vadd.f32 %v5538_v51, %v1848_v3  ;;  %v1934_v31 = vadd.f32 %v5538_v51, %v1933_v2  ;;  %v1614_v63 = vpack.c.bf16 %v1546_v59, %v1545_v53 }
 0x32d   : > { %v2222_v7 = vmax.f32 %v2006_v1, 0.0  ;;  %v2252_v25 = vmax.f32 %v2081_v16, 0.0 }
 0x32e   : > { %4413 = vmatmul.msk.bf16.gmra.mxu1 %vm1631_vm6, %v1583_v0  ;;  %4396 = vmatmul.msk.bf16.gmra.mxu0 %vm1631_vm6, %v1566_v14  ;;  %v2159_v41 = vmax.f32 %v1849_v29, 0.0  ;;  %v2193_v42 = vmax.f32 %v1934_v31, 0.0 }
 0x32f   : > { %v2354_v17 = vmul.f32 %v5553_v4, %v2222_v7  ;;  %4428 = vmatmul.msk.bf16.gmra.mxu2 %vm1631_vm6, %v1598_v5  ;;  %4443 = vmatmul.msk.bf16.gmra.mxu3 %vm1631_vm6, %v1613_v18  ;;  %v2384_v34 = vmul.f32 %v5553_v4, %v2252_v25  ;;  %v2428_v5 = vsel %vm1631_vm6, %v2290_v55, 0.0  ;;  %v1488_v18 = vld [vmem:[%s5302_s1 + $0x1e8] sm:$0xff]  ;;  %v1454_v55 = vld [vmem:[%s5302_s1 + $0xd8] sm:$0xff] }
 0x330   : > { %v2291_v56 = vmul.f32 %v5553_v4, %v2159_v41  ;;  %v2325_v62 = vmul.f32 %v5553_v4, %v2193_v42 }
 0x331   : > { %v2620_v26 = vsel %vm1631_vm6, %v2354_v17, 0.0  ;;  %v2710_v36 = vsel %vm1631_vm6, %v2384_v34, 0.0  ;;  %v1487_v17 = vld [vmem:[%s5302_s1 + $0x1e0] sm:$0xff]  ;;  %v1548_v34 = vld [vmem:[%s5302_s1 + $0x3c8] sm:$0xff] }
 0x332   : > { %v2008_v23 = vpop.f32.mrf.mxu2  ;;  %v2083_v24 = vpop.f32.mrf.mxu3  ;;  %v2431_v1 = vsel %vm1631_vm6, %v2291_v56, 0.0  ;;  %v2533_v6 = vsel %vm1631_vm6, %v2325_v62, 0.0  ;;  %v1585_v28 = vpack.c.bf16 %v1488_v18, %v1487_v17  ;;  %v1615_v39 = vpack.c.bf16 %v1548_v34, %v1547_v33 }
 0x333   : > { %2618 = vadd.xlane.f32.xlu2 %v2617_v21  ;;  %2615 = vadd.xlane.f32.xlu1 %v2614_v22  ;;  %v1935_v27 = vpop.f32.mrf.mxu1  ;;  %v5658_v30 = vpop.f32.mrf.mxu0  ;;  %v2009_v61 = vadd.f32 %v5538_v51, %v2008_v23  ;;  %v2084_v10 = vadd.f32 %v5538_v51, %v2083_v24 }
 0x334   : > { %2621 = vadd.xlane.f32.xlu0 %v2620_v26  ;;  %v1936_v60 = vadd.f32 %v5538_v51, %v1935_v27  ;;  %v1851_v35 = vadd.f32 %v5538_v51, %v5658_v30 }
 0x335   : > { %v2223_v3 = vmax.f32 %v2009_v61, 0.0  ;;  %v2253_v21 = vmax.f32 %v2084_v10, 0.0 }
 0x336   : > { %v2194_v2 = vmax.f32 %v1936_v60, 0.0  ;;  %v2160_v30 = vmax.f32 %v1851_v35, 0.0 }
 0x337   : > { %v2355_v15 = vmul.f32 %v5553_v4, %v2223_v3  ;;  %v2385_v42 = vmul.f32 %v5553_v4, %v2253_v21 }
 0x338   : > { %v2326_v14 = vmul.f32 %v5553_v4, %v2194_v2  ;;  %v2292_v52 = vmul.f32 %v5553_v4, %v2160_v30 }
 0x339   : > { %v2623_v26 = vsel %vm1631_vm6, %v2355_v15, 0.0  ;;  %v1550_v15 = vld [vmem:[%s5302_s1 + $0x3d8] sm:$0xff] }
 0x33a   : > { %v2010_v45 = vpop.f32.mrf.mxu2  ;;  %v5670_v46 = vpop.f32.mrf.mxu3  ;;  %v2536_v25 = vsel %vm1631_vm6, %v2326_v14, 0.0  ;;  %v2434_v3 = vsel %vm1631_vm6, %v2292_v52, 0.0  ;;  %v1549_v14 = vld [vmem:[%s5302_s1 + $0x3d0] sm:$0xff] }
 0x33b   : > { %2708 = vadd.xlane.f32.xlu2 %v2707_v43  ;;  %2705 = vadd.xlane.f32.xlu1 %v2704_v44  ;;  %v1938_v48 = vpop.f32.mrf.mxu1  ;;  %v5679_v57 = vpop.f32.mrf.mxu0  ;;  %v2011_v13 = vadd.f32 %v5538_v51, %v2010_v45  ;;  %v2086_v40 = vadd.f32 %v5538_v51, %v5670_v46 }
 0x33c   : > { %2711 = vadd.xlane.f32.xlu0 %v2710_v36  ;;  %v1939_v54 = vadd.f32 %v5538_v51, %v1938_v48  ;;  %v2713_v36 = vsel %vm1631_vm6, %v2385_v42, 0.0 }
 0x33d   : > { %v2224_v24 = vmax.f32 %v2011_v13, 0.0 }
 0x33e   : > { %4414 = vmatmul.msk.bf16.gmra.mxu1 %vm1631_vm6, %v1584_v47  ;;  %4397 = vmatmul.msk.bf16.gmra.mxu0 %vm1631_vm6, %v1567_v58  ;;  %v2195_v0 = vmax.f32 %v1939_v54, 0.0  ;;  %v2254_v47 = vmax.f32 %v2086_v40, 0.0  ;;  %v1453_v54 = vld [vmem:[%s5302_s1 + $0xd0] sm:$0xff]  ;;  %v1854_v58 = vadd.f32 %v5538_v51, %v5679_v57 }
 0x33f   : > { %4429 = vmatmul.msk.bf16.gmra.mxu2 %vm1631_vm6, %v1599_v49  ;;  %4444 = vmatmul.msk.bf16.gmra.mxu3 %vm1631_vm6, %v1614_v63  ;;  %v2356_v41 = vmul.f32 %v5553_v4, %v2224_v24  ;;  %v1568_v60 = vpack.c.bf16 %v1454_v55, %v1453_v54  ;;  %v1490_v55 = vld [vmem:[%s5302_s1 + $0x1f8] sm:$0xff] }
 0x340   : > { %v2327_v12 = vmul.f32 %v5553_v4, %v2195_v0  ;;  %v2386_v59 = vmul.f32 %v5553_v4, %v2254_v47  ;;  %v1455_v47 = vld [vmem:[%s5302_s1 + $0xe0] sm:$0xff] }
 0x341   : > { %v2626_v46 = vsel %vm1631_vm6, %v2356_v41, 0.0 }
 0x342   : > { %v2013_v7 = vpop.f32.mrf.mxu2  ;;  %v2088_v8 = vpop.f32.mrf.mxu3  ;;  %v2539_v23 = vsel %vm1631_vm6, %v2327_v12, 0.0  ;;  %v2716_v2 = vsel %vm1631_vm6, %v2386_v59, 0.0 }
 0x343   : > { %2429 = vadd.xlane.f32.xlu2 %v2428_v5  ;;  %2534 = vadd.xlane.f32.xlu1 %v2533_v6  ;;  %v1940_v9 = vpop.f32.mrf.mxu1  ;;  %v2014_v11 = vadd.f32 %v5538_v51, %v2013_v7  ;;  %v1855_v16 = vpop.f32.mrf.mxu0  ;;  %v2089_v37 = vadd.f32 %v5538_v51, %v2088_v8 }
 0x344   : > { %2432 = vadd.xlane.f32.xlu0 %v2431_v1  ;;  %v1941_v56 = vadd.f32 %v5538_v51, %v1940_v9  ;;  %v1856_v61 = vadd.f32 %v5538_v51, %v1855_v16  ;;  %v2161_v1 = vmax.f32 %v1854_v58, 0.0  ;;  %v1616_v16 = vpack.c.bf16 %v1550_v15, %v1549_v14 }
 0x345   : > { %v2225_v22 = vmax.f32 %v2014_v11, 0.0  ;;  %v2255_v44 = vmax.f32 %v2089_v37, 0.0 }
 0x346   : > { %v2196_v0 = vmax.f32 %v1941_v56, 0.0  ;;  %v2162_v5 = vmax.f32 %v1856_v61, 0.0  ;;  %v2293_v10 = vmul.f32 %v5553_v4, %v2161_v1  ;;  %v1520_v61 = vld [vmem:[%s5302_s1 + $0x2e8] sm:$0xff] }
 0x347   : > { %v2357_v38 = vmul.f32 %v5553_v4, %v2225_v22  ;;  %v2387_v53 = vmul.f32 %v5553_v4, %v2255_v44 }
 0x348   : > { %v2328_v11 = vmul.f32 %v5553_v4, %v2196_v0  ;;  %v2294_v13 = vmul.f32 %v5553_v4, %v2162_v5  ;;  %v2437_v19 = vsel %vm1631_vm6, %v2293_v10, 0.0 }
 0x349   : > { %v2629_v45 = vsel %vm1631_vm6, %v2357_v38, 0.0  ;;  %v2719_v62 = vsel %vm1631_vm6, %v2387_v53, 0.0 }
 0x34a   : > { %v2015_v27 = vpop.f32.mrf.mxu2  ;;  %v5705_v31 = vpop.f32.mrf.mxu3  ;;  %v2542_v20 = vsel %vm1631_vm6, %v2328_v11, 0.0 }
 0x34b   : > { %2537 = vadd.xlane.f32.xlu2 %v2536_v25  ;;  %2624 = vadd.xlane.f32.xlu1 %v2623_v26  ;;  %v1943_v29 = vpop.f32.mrf.mxu1  ;;  %v5718_v43 = vpop.f32.mrf.mxu0  ;;  %v2016_v8 = vadd.f32 %v5538_v51, %v2015_v27  ;;  %v2091_v27 = vadd.f32 %v5538_v51, %v5705_v31 }
 0x34c   : > { %2540 = vadd.xlane.f32.xlu0 %v2539_v23  ;;  %v1944_v9 = vadd.f32 %v5538_v51, %v1943_v29  ;;  %v2440_v23 = vsel %vm1631_vm6, %v2294_v13, 0.0  ;;  %v5771_v31 = vpop.permute.xlu2 %2830  ;;  %v1859_v30 = vadd.f32 %v5538_v51, %v5718_v43 }
 0x34d   : > { %v2226_v17 = vmax.f32 %v2016_v8, 0.0  ;;  %v2256_v35 = vmax.f32 %v2091_v27, 0.0 }
 0x34e   : > { %4415 = vmatmul.msk.bf16.gmra.mxu1 %vm1631_vm6, %v1585_v28  ;;  %4398 = vmatmul.msk.bf16.gmra.mxu0 %vm1631_vm6, %v1568_v60  ;;  %v2197_v18 = vmax.f32 %v1944_v9, 0.0  ;;  %v1519_v60 = vld [vmem:[%s5302_s1 + $0x2e0] sm:$0xff] }
 0x34f   : > { %4430 = vmatmul.msk.bf16.gmra.mxu2 %vm1631_vm6, %v1600_v32  ;;  %4445 = vmatmul.msk.bf16.gmra.mxu3 %vm1631_vm6, %v1615_v39  ;;  %v2358_v32 = vmul.f32 %v5553_v4, %v2226_v17  ;;  %v2388_v53 = vmul.f32 %v5553_v4, %v2256_v35 }
 0x350   : > { %v2329_v29 = vmul.f32 %v5553_v4, %v2197_v18 }
 0x351   : > { %v2632_v39 = vsel %vm1631_vm6, %v2358_v32, 0.0  ;;  %v1458_v32 = vld [vmem:[%s5302_s1 + $0xf8] sm:$0xff] }
 0x352   : > { %v2018_v48 = vpop.f32.mrf.mxu2  ;;  %v5725_v50 = vpop.f32.mrf.mxu3  ;;  %v2545_v38 = vsel %vm1631_vm6, %v2329_v29, 0.0  ;;  %v1457_v29 = vld [vmem:[%s5302_s1 + $0xf0] sm:$0xff] }
 0x353   : > { %2627 = vadd.xlane.f32.xlu2 %v2626_v46  ;;  %2714 = vadd.xlane.f32.xlu1 %v2713_v36  ;;  %v1945_v49 = vpop.f32.mrf.mxu1  ;;  %v5738_v63 = vpop.f32.mrf.mxu0  ;;  %v2019_v28 = vadd.f32 %v5538_v51, %v2018_v48  ;;  %v1456_v46 = vld [vmem:[%s5302_s1 + $0xe8] sm:$0xff]  ;;  %v1489_v36 = vld [vmem:[%s5302_s1 + $0x1f0] sm:$0xff] }
 0x354   : > { %2630 = vadd.xlane.f32.xlu0 %v2629_v45  ;;  %v1946_v12 = vadd.f32 %v5538_v51, %v1945_v49  ;;  %v5783_v48 = vpop.permute.xlu0 %2835  ;;  %v2094_v49 = vadd.f32 %v5538_v51, %v5725_v50  ;;  %v1569_v54 = vpack.c.bf16 %v1456_v46, %v1455_v47  ;;  %v1586_v59 = vpack.c.bf16 %v1490_v55, %v1489_v36  ;;  %v5802_v5 = vpop.permute.xlu2 %2815 }
 0x355   : > { %v2227_v37 = vmax.f32 %v2019_v28, 0.0  ;;  %v2163_v50 = vmax.f32 %v1859_v30, 0.0  ;;  %v1551_v30 = vld [vmem:[%s5302_s1 + $0x3e0] sm:$0xff] }
 0x356   : > { %v2198_v22 = vmax.f32 %v1946_v12, 0.0  ;;  %v2257_v0 = vmax.f32 %v2094_v49, 0.0 }
 0x357   : > { %v2359_v52 = vmul.f32 %v5553_v4, %v2227_v37  ;;  %v2295_v14 = vmul.f32 %v5553_v4, %v2163_v50 }
 0x358   : > { %v2330_v34 = vmul.f32 %v5553_v4, %v2198_v22  ;;  %v2389_v13 = vmul.f32 %v5553_v4, %v2257_v0 }
 0x359   : > { %v2635_v1 = vsel %vm1631_vm6, %v2359_v52, 0.0  ;;  %v2443_v22 = vsel %vm1631_vm6, %v2295_v14, 0.0 }
 0x35a   : > { %v2020_v57 = vpop.f32.mrf.mxu2  ;;  %v2095_v7 = vpop.f32.mrf.mxu3  ;;  %v2548_v41 = vsel %vm1631_vm6, %v2330_v34, 0.0 }
 0x35b   : > { %2717 = vadd.xlane.f32.xlu2 %v2716_v2  ;;  %2435 = vadd.xlane.f32.xlu1 %v2434_v3  ;;  %v5742_v6 = vpop.f32.mrf.mxu1  ;;  %v1863_v24 = vpop.f32.mrf.mxu0  ;;  %v2021_v33 = vadd.f32 %v5538_v51, %v2020_v57  ;;  %v2096_v43 = vadd.f32 %v5538_v51, %v2095_v7  ;;  %v2722_v2 = vsel %vm1631_vm6, %v2388_v53, 0.0  ;;  %v1861_v7 = vadd.f32 %v5538_v51, %v5738_v63 }
 0x35c   : > { %2720 = vadd.xlane.f32.xlu0 %v2719_v62  ;;  %v1601_v62 = vpack.c.bf16 %v1520_v61, %v1519_v60  ;;  %v1864_v8 = vadd.f32 %v5538_v51, %v1863_v24  ;;  %v1949_v10 = vadd.f32 %v5538_v51, %v5742_v6 }
 0x35d   : > { %v2228_v40 = vmax.f32 %v2021_v33, 0.0  ;;  %v2258_v3 = vmax.f32 %v2096_v43, 0.0  ;;  %v2164_v17 = vmax.f32 %v1861_v7, 0.0 }
 0x35e   : > { %4399 = vmatmul.msk.bf16.gmra.mxu0 %vm1631_vm6, %v1569_v54  ;;  %4416 = vmatmul.msk.bf16.gmra.mxu1 %vm1631_vm6, %v1586_v59  ;;  %v2165_v18 = vmax.f32 %v1864_v8, 0.0  ;;  %v2199_v6 = vmax.f32 %v1949_v10, 0.0 }
 0x35f   : > { %4446 = vmatmul.msk.bf16.gmra.mxu3 %vm1631_vm6, %v1616_v16  ;;  %v2360_v56 = vmul.f32 %v5553_v4, %v2228_v40  ;;  %4431 = vmatmul.msk.bf16.gmra.mxu2 %vm1631_vm6, %v1601_v62  ;;  %v2390_v15 = vmul.f32 %v5553_v4, %v2258_v3  ;;  %v2296_v27 = vmul.f32 %v5553_v4, %v2164_v17  ;;  %v1459_v17 = vld [vmem:[%s5302_s1 + $0x100] sm:$0xff] }
 0x360   : > { %v2297_v28 = vmul.f32 %v5553_v4, %v2165_v18  ;;  %v1460_v18 = vld [vmem:[%s5302_s1 + $0x108] sm:$0xff] }
 0x361   : > { %v2638_v57 = vsel %vm1631_vm6, %v2360_v56, 0.0  ;;  %v2446_v53 = vsel %vm1631_vm6, %v2296_v27, 0.0  ;;  %v1571_v27 = vpack.c.bf16 %v1460_v18, %v1459_v17 }
 0x362   : > { %v5754_v21 = vpop.f32.mrf.mxu2  ;;  %v5760_v26 = vpop.f32.mrf.mxu3  ;;  %v2449_v46 = vsel %vm1631_vm6, %v2297_v28, 0.0 }
 0x363   : > { %2438 = vadd.xlane.f32.xlu2 %v2437_v19  ;;  %2543 = vadd.xlane.f32.xlu1 %v2542_v20  ;;  %v5758_v25 = vpop.f32.mrf.mxu1  ;;  %v5778_v44 = vpop.f32.mrf.mxu0  ;;  %v2725_v20 = vsel %vm1631_vm6, %v2389_v13, 0.0  ;;  %v2024_v34 = vadd.f32 %v5538_v51, %v5754_v21  ;;  %v2099_v60 = vadd.f32 %v5538_v51, %v5760_v26 }
 0x364   : > { %2441 = vadd.xlane.f32.xlu0 %v2440_v23  ;;  %v2728_v23 = vsel %vm1631_vm6, %v2390_v15, 0.0  ;;  %v1951_v33 = vadd.f32 %v5538_v51, %v5758_v25  ;;  %v1866_v13 = vadd.f32 %v5538_v51, %v5778_v44 }
 0x365   : > { %v2229_v52 = vmax.f32 %v2024_v34, 0.0  ;;  %v2259_v7 = vmax.f32 %v2099_v60, 0.0 }
 0x366   : > { %v2200_v49 = vmax.f32 %v1951_v33, 0.0  ;;  %v2166_v34 = vmax.f32 %v1866_v13, 0.0 }
 0x367   : > { %v2361_v0 = vmul.f32 %v5553_v4, %v2229_v52 }
 0x368   : > { %v2332_v50 = vmul.f32 %v5553_v4, %v2200_v49 }
 0x369   : > { %v2641_v8 = vsel %vm1631_vm6, %v2361_v0, 0.0 }
 0x36a   : > { %v5774_v42 = vpop.f32.mrf.mxu2  ;;  %v5792_v58 = vpop.f32.mrf.mxu3  ;;  %v2554_v26 = vsel %vm1631_vm6, %v2332_v50, 0.0 }
 0x36b   : > { %2546 = vadd.xlane.f32.xlu2 %v2545_v38  ;;  %2633 = vadd.xlane.f32.xlu1 %v2632_v39  ;;  %v1953_v45 = vpop.f32.mrf.mxu1  ;;  %v5816_v16 = vpop.f32.mrf.mxu0  ;;  %v2331_v38 = vmul.f32 %v5553_v4, %v2199_v6  ;;  %v1570_v39 = vpack.c.bf16 %v1458_v32, %v1457_v29  ;;  %v2026_v59 = vadd.f32 %v5538_v51, %v5774_v42  ;;  %v1553_v29 = vld [vmem:[%s5302_s1 + $0x3f0] sm:$0xff]  ;;  %v1554_v32 = vld [vmem:[%s5302_s1 + $0x3f8] sm:$0xff] }
 0x36c   : > { %2549 = vadd.xlane.f32.xlu0 %v2548_v41  ;;  %v1954_v24 = vadd.f32 %v5538_v51, %v1953_v45  ;;  %v1552_v45 = vld [vmem:[%s5302_s1 + $0x3e8] sm:$0xff]  ;;  %v2101_v6 = vadd.f32 %v5538_v51, %v5792_v58  ;;  %v1618_v33 = vpack.c.bf16 %v1554_v32, %v1553_v29 }
 0x36d   : > { %v1617_v47 = vpack.c.bf16 %v1552_v45, %v1551_v30  ;;  %v2551_v54 = vsel %vm1631_vm6, %v2331_v38, 0.0  ;;  %v2230_v42 = vmax.f32 %v2026_v59, 0.0 }
 0x36e   : > { %4400 = vmatmul.msk.bf16.gmra.mxu0 %vm1631_vm6, %v1570_v39  ;;  %v2201_v25 = vmax.f32 %v1954_v24, 0.0  ;;  %v2391_v24 = vmul.f32 %v5553_v4, %v2259_v7  ;;  %v2260_v38 = vmax.f32 %v2101_v6, 0.0 }
 0x36f   : > { %4447 = vmatmul.msk.bf16.gmra.mxu3 %vm1631_vm6, %v1617_v47 }
 0x370   : > { %v2333_v56 = vmul.f32 %v5553_v4, %v2201_v25  ;;  %v2731_v30 = vsel %vm1631_vm6, %v2391_v24, 0.0  ;;  %v2986_v24 = vlaneseq }
 0x372   : > { %v2028_v9 = vpop.f32.mrf.mxu2  ;;  %v5820_v19 = vpop.f32.mrf.mxu3  ;;  %v2557_v3 = vsel %vm1631_vm6, %v2333_v56, 0.0 }
 0x373   : > { %2636 = vadd.xlane.f32.xlu2 %v2635_v1  ;;  %2723 = vadd.xlane.f32.xlu1 %v2722_v2  ;;  %v5818_v63 = vpop.f32.mrf.mxu1  ;;  %v1870_v21 = vpop.f32.mrf.mxu0  ;;  %v2029_v43 = vadd.f32 %v5538_v51, %v2028_v9 }
 0x374   : > { %2639 = vadd.xlane.f32.xlu0 %v2638_v57  ;;  %v1871_v44 = vadd.f32 %v5538_v51, %v1870_v21  ;;  %v1869_v21 = vadd.f32 %v5538_v51, %v5816_v16  ;;  %v1956_v49 = vadd.f32 %v5538_v51, %v5818_v63 }
 0x375   : > { %v2231_v2 = vmax.f32 %v2029_v43, 0.0  ;;  %v2298_v43 = vmul.f32 %v5553_v4, %v2166_v34 }
 0x376   : > { %v5809_v11 = vpop.xlane.xlu1 %2516  ;;  %v5811_v12 = vpop.xlane.xlu0 %2414  ;;  %v2168_v45 = vmax.f32 %v1871_v44, 0.0  ;;  %v2167_v16 = vmax.f32 %v1869_v21, 0.0  ;;  %v2202_v0 = vmax.f32 %v1956_v49, 0.0 }
 0x377   : > { %v2363_v14 = vmul.f32 %v5553_v4, %v2231_v2  ;;  %v2452_v2 = vsel %vm1631_vm6, %v2298_v43, 0.0 }
 0x378   : > { %v2300_v60 = vmul.f32 %v5553_v4, %v2168_v45  ;;  %v2334_v17 = vmul.f32 %v5553_v4, %v2202_v0 }
 0x379   : > { %v2647_v58 = vsel %vm1631_vm6, %v2363_v14, 0.0  ;;  %v2299_v14 = vmul.f32 %v5553_v4, %v2167_v16 }
 0x37a   : > { %v5841_v41 = vpop.f32.mrf.mxu2  ;;  %v5852_v55 = vpop.f32.mrf.mxu3 }
 0x37b   : > { %2726 = vadd.xlane.f32.xlu2 %v2725_v20  ;;  %2444 = vadd.xlane.f32.xlu1 %v2443_v22  ;;  %v5847_v36 = vpop.f32.mrf.mxu1  ;;  %v5873_v9 = vpop.f32.mrf.mxu0 }
 0x37c   : > { %2729 = vadd.xlane.f32.xlu0 %v2728_v23  ;;  %v2362_v23 = vmul.f32 %v5553_v4, %v2230_v42  ;;  %v2458_v42 = vsel %vm1631_vm6, %v2300_v60, 0.0 }
 0x37e   : > { %v5834_v35 = vpop.xlane.xlu2 %2519  ;;  %v5836_v37 = vpop.xlane.xlu1 %2606  ;;  %4401 = vmatmul.msk.bf16.gmra.mxu0 %vm1631_vm6, %v1571_v27  ;;  %v2644_v39 = vsel %vm1631_vm6, %v2362_v23, 0.0  ;;  %v5946_v23 = vld [vmem:[%s7244_s8] ss:$0 sm:$0xff] }
 0x37f   : > { %v5839_v40 = vpop.xlane.xlu0 %2417  ;;  %4448 = vmatmul.msk.bf16.gmra.mxu3 %vm1631_vm6, %v1618_v33  ;;  %v2560_v33 = vsel %vm1631_vm6, %v2334_v17, 0.0 }
 0x382   : > { %v5869_v57 = vpop.f32.mrf.mxu2  ;;  %v5878_v15 = vpop.f32.mrf.mxu3 }
 0x383   : > { %2447 = vadd.xlane.f32.xlu2 %v2446_v53  ;;  %2552 = vadd.xlane.f32.xlu1 %v2551_v54  ;;  %v1960_v10 = vpop.f32.mrf.mxu1  ;;  %v5900_v25 = vpop.f32.mrf.mxu0  ;;  %v2392_v54 = vmul.f32 %v5553_v4, %v2260_v38  ;;  %v2455_v4 = vsel %vm1631_vm6, %v2299_v14, 0.0  ;;  %v5956_v38 = vand.u32 127, %v2986_v24 }
 0x384   : > { %2450 = vadd.xlane.f32.xlu0 %v2449_v46  ;;  %v1961_v56 = vadd.f32 %v5538_v51, %v1960_v10  ;;  %v5928_v51 = vld [vmem:[%s7241_s5] ss:$0 sm:$0xff] }
 0x385   : > { %v2734_v63 = vsel %vm1631_vm6, %v2392_v54, 0.0  ;;  %v5962_v45 = vadd.s32 4294967288, %v5956_v38 }
 0x386   : > { %v5860_v61 = vpop.xlane.xlu2 %2609  ;;  %v5862_v62 = vpop.xlane.xlu1 %2696 }
 0x387   : > { %v5866_v1 = vpop.xlane.xlu0 %2522 }
 0x38a   : > { %v2035_v47 = vpop.f32.mrf.mxu2  ;;  %v5918_v50 = vpop.f32.mrf.mxu3 }
 0x38b   : > { %2555 = vadd.xlane.f32.xlu2 %v2554_v26  ;;  %2642 = vadd.xlane.f32.xlu1 %v2641_v8  ;;  %v5902_v46 = vpop.f32.mrf.mxu1  ;;  %v1959_v26 = vadd.f32 %v5928_v51, %v5847_v36  ;;  %v2031_v8 = vadd.f32 %v5928_v51, %v5841_v41  ;;  %v2036_v18 = vadd.f32 %v5928_v51, %v2035_v47  ;;  %v1878_v27 = vpop.f32.mrf.mxu0 }
 0x38c   : > { %2558 = vadd.xlane.f32.xlu0 %v2557_v3  ;;  %v2204_v3 = vmax.f32 %v1961_v56, 0.0  ;;  %v2034_v47 = vadd.f32 %v5928_v51, %v5869_v57 }
 0x38d   : > { %v2203_v29 = vmax.f32 %v1959_v26, 0.0  ;;  %v2232_v32 = vmax.f32 %v2031_v8, 0.0 }
 0x38e   : > { %v5884_v20 = vpop.xlane.xlu2 %2699  ;;  %v5886_v22 = vpop.xlane.xlu1 %2420  ;;  %v2336_v36 = vmul.f32 %v5946_v23, %v2204_v3  ;;  %v2233_v3 = vmax.f32 %v2034_v47, 0.0 }
 0x38f   : > { %v5891_v28 = vpop.xlane.xlu0 %2612  ;;  %v2335_v54 = vmul.f32 %v5946_v23, %v2203_v29  ;;  %v2364_v43 = vmul.f32 %v5946_v23, %v2232_v32  ;;  %v1876_v29 = vadd.f32 %v5928_v51, %v5900_v25  ;;  %v1964_v32 = vadd.f32 %v5928_v51, %v5902_v46 }
 0x390   : > { %v2566_v34 = vsel %vm1631_vm6, %v2336_v36, 0.0 }
 0x391   : > { %v2563_v26 = vsel %vm1631_vm6, %v2335_v54, 0.0  ;;  %v2650_v8 = vsel %vm1631_vm6, %v2364_v43, 0.0 }
 0x392   : > { %v5923_v7 = vpop.f32.mrf.mxu2  ;;  %v5951_v44 = vpop.f32.mrf.mxu3 }
 0x393   : > { %2645 = vadd.xlane.f32.xlu2 %v2644_v39  ;;  %2732 = vadd.xlane.f32.xlu1 %v2731_v30  ;;  %v5949_v41 = vpop.f32.mrf.mxu1  ;;  %v1874_v39 = vadd.f32 %v5928_v51, %v5873_v9  ;;  %v1879_v30 = vadd.f32 %v5928_v51, %v1878_v27  ;;  %v1880_v17 = vpop.f32.mrf.mxu0 }
 0x394   : > { %2648 = vadd.xlane.f32.xlu0 %v2647_v58  ;;  %v2234_v58 = vmax.f32 %v2036_v18, 0.0 }
 0x396   : > { %v5908_v52 = vpop.xlane.xlu2 %2426  ;;  %v5910_v53 = vpop.xlane.xlu1 %2423  ;;  %v2366_v9 = vmul.f32 %v5946_v23, %v2234_v58  ;;  %v2365_v58 = vmul.f32 %v5946_v23, %v2233_v3 }
 0x397   : > { %v5915_v59 = vpop.xlane.xlu0 %2702 }
 0x398   : > { %v2656_v14 = vsel %vm1631_vm6, %v2366_v9, 0.0  ;;  %v2205_v9 = vmax.f32 %v1964_v32, 0.0 }
 0x39a   : > { %v5972_v16 = vpop.f32.mrf.mxu2  ;;  %v5981_v18 = vpop.f32.mrf.mxu3  ;;  %v2337_v32 = vmul.f32 %v5946_v23, %v2205_v9 }
 0x39b   : > { %2735 = vadd.xlane.f32.xlu2 %v2734_v63  ;;  %2453 = vadd.xlane.f32.xlu1 %v2452_v2  ;;  %v2169_v63 = vmax.f32 %v1874_v39, 0.0  ;;  %v2171_v2 = vmax.f32 %v1879_v30, 0.0  ;;  %v1968_v57 = vpop.f32.mrf.mxu1 }
 0x39c   : > { %2459 = vadd.xlane.f32.xlu0 %v2458_v42  ;;  %v1969_v36 = vadd.f32 %v5928_v51, %v1968_v57  ;;  %v6006_v57 = vpop.f32.mrf.mxu0 }
 0x39d   : > { %v2301_v24 = vmul.f32 %v5946_v23, %v2169_v63  ;;  %v2303_v27 = vmul.f32 %v5946_v23, %v2171_v2 }
 0x39e   : > { %v5934_v10 = vpop.xlane.xlu2 %2528  ;;  %v5936_v13 = vpop.xlane.xlu1 %2525  ;;  %v2207_v54 = vmax.f32 %v1969_v36, 0.0  ;;  %v2114_v36 = vadd.f32 %v5928_v51, %v5951_v44 }
 0x39f   : > { %v5941_v6 = vpop.xlane.xlu0 %2531  ;;  %v2461_v46 = vsel %vm1631_vm6, %v2301_v24, 0.0  ;;  %v2467_v43 = vsel %vm1631_vm6, %v2303_v27, 0.0 }
 0x3a3   : > { %2456 = vadd.xlane.f32.xlu2 %v2455_v4  ;;  %2561 = vadd.xlane.f32.xlu1 %v2560_v33  ;;  %v6004_v2 = vpop.f32.mrf.mxu1 }
 0x3a4   : > { %2567 = vadd.xlane.f32.xlu0 %v2566_v34  ;;  %v3134_v34 = vperm.slane %v5915_v59, %v5956_v38 }
 0x3a6   : > { %v2619_v21 = vpop.xlane.xlu2 %2618  ;;  %v5966_v49 = vpop.xlane.xlu1 %2615 }
 0x3a7   : > { %v3092_v56 = vperm.slane %v2619_v21, %v5956_v38  ;;  %v2622_v60 = vpop.xlane.xlu0 %2621 }
 0x3a8   : > { %v3093_v0 = vperm.slane %v2622_v60, %v5962_v45  ;;  %v2170_v60 = vmax.f32 %v1876_v29, 0.0 }
 0x3aa   : > { %v5976_v42 = vsel %vm2991_vm7, %v3093_v0, %v3092_v56  ;;  %v2043_v56 = vpop.f32.mrf.mxu2  ;;  %v2653_v0 = vsel %vm1631_vm6, %v2365_v58, 0.0  ;;  %v2302_v29 = vmul.f32 %v5946_v23, %v2170_v60 }
 0x3ab   : > { %2564 = vadd.xlane.f32.xlu2 %v2563_v26  ;;  %2651 = vadd.xlane.f32.xlu1 %v2650_v8  ;;  %v2044_v3 = vadd.f32 %v5928_v51, %v2043_v56  ;;  %v2339_v26 = vmul.f32 %v5946_v23, %v2207_v54  ;;  %v2118_v8 = vpop.f32.mrf.mxu3 }
 0x3ac   : > { %2657 = vadd.xlane.f32.xlu0 %v2656_v14  ;;  %v2039_v14 = vadd.f32 %v5928_v51, %v5923_v7  ;;  %v2569_v7 = vsel %vm1631_vm6, %v2337_v32, 0.0  ;;  %v2119_v54 = vadd.f32 %v5928_v51, %v2118_v8 }
 0x3ad   : > { %v2575_v58 = vsel %vm1631_vm6, %v2339_v26, 0.0 }
 0x3ae   : > { %v2709_v4 = vpop.xlane.xlu2 %2708  ;;  %v2706_v33 = vpop.xlane.xlu1 %2705 }
 0x3af   : > { %v3137_v39 = vperm.slane %v2709_v4, %v5956_v38  ;;  %v3135_v30 = vperm.slane %v2706_v33, %v5962_v45  ;;  %v2712_v47 = vpop.xlane.xlu0 %2711  ;;  %v2237_v33 = vmax.f32 %v2044_v3, 0.0 }
 0x3b0   : > { %v3138_v21 = vperm.slane %v2712_v47, %v5962_v45  ;;  %v6025_v47 = vpop.f32.mrf.mxu1 }
 0x3b1   : > { %v3136_v25 = vsel %vm2991_vm7, %v3135_v30, %v3134_v34  ;;  %v2235_v34 = vmax.f32 %v2039_v14, 0.0  ;;  %v2464_v30 = vsel %vm1631_vm6, %v2302_v29, 0.0  ;;  %v2267_v29 = vmax.f32 %v2119_v54, 0.0 }
 0x3b2   : > { %v3139_v59 = vsel %vm2991_vm7, %v3138_v21, %v3137_v39  ;;  %v2265_v39 = vmax.f32 %v2114_v36, 0.0  ;;  %v6023_v44 = vpop.f32.mrf.mxu2  ;;  %v1966_v21 = vadd.f32 %v5928_v51, %v5949_v41  ;;  %v3089_v36 = vperm.slane %v5891_v28, %v5956_v38 }
 0x3b3   : > { %v6002_v63 = vsel %vm3182_vm8, %v3139_v59, %v3136_v25  ;;  %2654 = vadd.xlane.f32.xlu2 %v2653_v0  ;;  %2462 = vadd.xlane.f32.xlu1 %v2461_v46  ;;  %v2369_v25 = vmul.f32 %v5946_v23, %v2237_v33  ;;  %v1885_v46 = vpop.f32.mrf.mxu0  ;;  %v2367_v59 = vmul.f32 %v5946_v23, %v2235_v34  ;;  %v6040_v8 = vpop.f32.mrf.mxu3 }
 0x3b4   : > { %2468 = vadd.xlane.f32.xlu0 %v2467_v43  ;;  %v1881_v43 = vadd.f32 %v5928_v51, %v1880_v17  ;;  %v2397_v9 = vmul.f32 %v5946_v23, %v2265_v39  ;;  %v3090_v0 = vperm.slane %v5966_v49, %v5962_v45  ;;  %v3087_v17 = vperm.slane %v5860_v61, %v5962_v45 }
 0x3b5   : > { %v2206_v14 = vmax.f32 %v1966_v21, 0.0  ;;  %v2665_v49 = vsel %vm1631_vm6, %v2369_v25, 0.0  ;;  %v3086_v34 = vperm.slane %v5836_v37, %v5956_v38  ;;  %v2041_v28 = vadd.f32 %v5928_v51, %v5972_v16 }
 0x3b6   : > { %v6014_v24 = vpop.xlane.xlu2 %2429  ;;  %v2535_v27 = vpop.xlane.xlu1 %2534  ;;  %v2749_v33 = vsel %vm1631_vm6, %v2397_v9, 0.0  ;;  %v3091_v61 = vsel %vm2991_vm7, %v3090_v0, %v3089_v36  ;;  %v2116_v21 = vadd.f32 %v5928_v51, %v5981_v18  ;;  %v2399_v54 = vmul.f32 %v5946_v23, %v2267_v29 }
 0x3b7   : > { %v6018_v4 = vpop.xlane.xlu0 %2432  ;;  %v3050_v3 = vperm.slane %v2535_v27, %v5956_v38  ;;  %v2172_v27 = vmax.f32 %v1881_v43, 0.0  ;;  %v1886_v43 = vadd.f32 %v5928_v51, %v1885_v46  ;;  %v2236_v46 = vmax.f32 %v2041_v28, 0.0 }
 0x3b8   : > { %v1975_v37 = vpop.f32.mrf.mxu1  ;;  %v2266_v29 = vmax.f32 %v2116_v21, 0.0 }
 0x3b9   : > { %v2304_v16 = vmul.f32 %v5946_v23, %v2172_v27  ;;  %v2755_v27 = vsel %vm1631_vm6, %v2399_v54, 0.0  ;;  %v2368_v28 = vmul.f32 %v5946_v23, %v2236_v46 }
 0x3ba   : > { %v6055_v39 = vpop.f32.mrf.mxu2 }
 0x3bb   : > { %2465 = vadd.xlane.f32.xlu2 %v2464_v30  ;;  %2570 = vadd.xlane.f32.xlu1 %v2569_v7  ;;  %v2338_v30 = vmul.f32 %v5946_v23, %v2206_v14  ;;  %v3088_v7 = vsel %vm2991_vm7, %v3087_v17, %v3086_v34  ;;  %v6071_v18 = vpop.f32.mrf.mxu3  ;;  %v2994_v17 = vperm.slane %v5910_v53, %v5962_v45  ;;  %v6078_v36 = vpop.f32.mrf.mxu0  ;;  %v2470_v53 = vsel %vm1631_vm6, %v2304_v16, 0.0 }
 0x3bc   : > { %2576 = vadd.xlane.f32.xlu0 %v2575_v58  ;;  %v2659_v58 = vsel %vm1631_vm6, %v2367_v59, 0.0  ;;  %v3217_v25 = vsel %vm3182_vm8, %v3091_v61, %v3088_v7  ;;  %v2988_v34 = vperm.slane %v5811_v12, %v5956_v38  ;;  %v2996_v61 = vperm.slane %v5908_v52, %v5956_v38 }
 0x3bd   : > { %v2572_v14 = vsel %vm1631_vm6, %v2338_v30, 0.0  ;;  %v2398_v12 = vmul.f32 %v5946_v23, %v2266_v29  ;;  %v1976_v52 = vadd.f32 %v5928_v51, %v1975_v37  ;;  %v2662_v37 = vsel %vm1631_vm6, %v2368_v28, 0.0 }
 0x3be   : > { %v2538_v56 = vpop.xlane.xlu2 %2537  ;;  %v2625_v60 = vpop.xlane.xlu1 %2624 }
 0x3bf   : > { %v3051_v41 = vperm.slane %v2538_v56, %v5962_v45  ;;  %v6038_v26 = vpop.xlane.xlu0 %2540  ;;  %v3095_v59 = vperm.slane %v2625_v60, %v5956_v38  ;;  %v3218_v60 = vsel %vm3184_vm9, %v5976_v42, %v3217_v25  ;;  %v2993_v42 = vperm.slane %v5886_v22, %v5956_v38 }
 0x3c0   : > { %v1971_v22 = vadd.f32 %v5928_v51, %v6004_v2  ;;  %v6116_v46 = vpop.f32.mrf.mxu1 }
 0x3c1   : > { %v6047_v32 = vsel %vm2991_vm7, %v3051_v41, %v3050_v3  ;;  %v2990_v41 = vperm.slane %v5839_v40, %v5962_v45  ;;  %v2174_v40 = vmax.f32 %v1886_v43, 0.0  ;;  %v2995_v7 = vsel %vm2991_vm7, %v2994_v17, %v2993_v42 }
 0x3c2   : > { %v2050_v21 = vpop.f32.mrf.mxu2 }
 0x3c3   : > { %2750 = vadd.xlane.f32.xlu2 %v2749_v33  ;;  %2660 = vadd.xlane.f32.xlu1 %v2659_v58  ;;  %v2997_v33 = vperm.slane %v6014_v24, %v5962_v45  ;;  %v1884_v24 = vadd.f32 %v5928_v51, %v6006_v57  ;;  %v2992_v30 = vsel %vm2991_vm7, %v2990_v41, %v2988_v34  ;;  %v6122_v29 = vpop.f32.mrf.mxu3 }
 0x3c4   : > { %2666 = vadd.xlane.f32.xlu0 %v2665_v49  ;;  %v2306_v57 = vmul.f32 %v5946_v23, %v2174_v40  ;;  %v3183_v2 = vsel %vm3182_vm8, %v2995_v7, %v2992_v30 }
 0x3c5   : > { %v2998_v54 = vsel %vm2991_vm7, %v2997_v33, %v2996_v61  ;;  %v2173_v17 = vmax.f32 %v1884_v24, 0.0  ;;  %v2046_v61 = vadd.f32 %v5928_v51, %v6023_v44  ;;  %v2121_v24 = vadd.f32 %v5928_v51, %v6040_v8 }
 0x3c6   : > { %v2628_v56 = vpop.xlane.xlu2 %2627  ;;  %v2715_v9 = vpop.xlane.xlu1 %2714  ;;  %v2476_v34 = vsel %vm1631_vm6, %v2306_v57, 0.0 }
 0x3c7   : > { %v3096_v0 = vperm.slane %v2628_v56, %v5962_v45  ;;  %v6069_v3 = vpop.xlane.xlu0 %2630  ;;  %v2999_v56 = vperm.slane %v6018_v4, %v5956_v38  ;;  %v3140_v16 = vperm.slane %v2715_v9, %v5956_v38  ;;  %v2752_v9 = vsel %vm1631_vm6, %v2398_v12, 0.0 }
 0x3c8   : > { %v2305_v42 = vmul.f32 %v5946_v23, %v2173_v17  ;;  %v3053_v12 = vperm.slane %v6038_v26, %v5956_v38 }
 0x3c9   : > { %v3097_v49 = vsel %vm2991_vm7, %v3096_v0, %v3095_v59 }
 0x3ca   : > { %v6087_v58 = vsel %vm3186_vm10, %v3097_v49, %v3218_v60  ;;  %v2208_v49 = vmax.f32 %v1971_v22, 0.0  ;;  %v2051_v22 = vadd.f32 %v5928_v51, %v2050_v21  ;;  %v6145_v8 = vpop.f32.mrf.mxu2  ;;  %v2473_v57 = vsel %vm1631_vm6, %v2305_v42, 0.0 }
 0x3cb   : > { %2573 = vadd.xlane.f32.xlu2 %v2572_v14  ;;  %2471 = vadd.xlane.f32.xlu1 %v2470_v53  ;;  %v3185_v14 = vsel %vm3184_vm9, %v2998_v54, %v3183_v2  ;;  %v6129_v53 = vpop.f32.mrf.mxu0  ;;  %v3098_v42 = vperm.slane %v6069_v3, %v5956_v38 }
 0x3cc   : > { %2756 = vadd.xlane.f32.xlu0 %v2755_v27  ;;  %v2210_v27 = vmax.f32 %v1976_v52, 0.0  ;;  %v2340_v30 = vmul.f32 %v5946_v23, %v2208_v49 }
 0x3ce   : > { %v2718_v25 = vpop.xlane.xlu2 %2717  ;;  %v2436_v43 = vpop.xlane.xlu1 %2435  ;;  %v2342_v7 = vmul.f32 %v5946_v23, %v2210_v27  ;;  %v2578_v21 = vsel %vm1631_vm6, %v2340_v30, 0.0 }
 0x3cf   : > { %v3141_v59 = vperm.slane %v2718_v25, %v5962_v45  ;;  %v3000_v0 = vperm.slane %v2436_v43, %v5962_v45  ;;  %v6112_v41 = vpop.xlane.xlu0 %2720 }
 0x3d0   : > { %v2584_v17 = vsel %vm1631_vm6, %v2342_v7, 0.0 }
 0x3d1   : > { %v3142_v60 = vsel %vm2991_vm7, %v3141_v59, %v3140_v16  ;;  %v3001_v4 = vsel %vm2991_vm7, %v3000_v0, %v2999_v56  ;;  %v2238_v56 = vmax.f32 %v2046_v61, 0.0  ;;  %v2268_v16 = vmax.f32 %v2121_v24, 0.0  ;;  %v6153_v59 = vpop.f32.mrf.mxu1 }
 0x3d2   : > { %v6126_v33 = vsel %vm3184_vm9, %v3142_v60, %v6002_v63  ;;  %v3187_v40 = vsel %vm3186_vm10, %v3001_v4, %v3185_v14  ;;  %v2240_v0 = vmax.f32 %v2051_v22, 0.0  ;;  %v1974_v14 = vadd.f32 %v5928_v51, %v6025_v47 }
 0x3d3   : > { %2663 = vadd.xlane.f32.xlu2 %v2662_v37  ;;  %2753 = vadd.xlane.f32.xlu1 %v2752_v9  ;;  %v6159_v37 = vpop.f32.mrf.mxu3  ;;  %v1893_v60 = vpop.f32.mrf.mxu0  ;;  %v1889_v4 = vadd.f32 %v5928_v51, %v6078_v36 }
 0x3d4   : > { %2477 = vadd.xlane.f32.xlu0 %v2476_v34  ;;  %v1894_v9 = vadd.f32 %v5928_v51, %v1893_v60  ;;  %v2370_v34 = vmul.f32 %v5946_v23, %v2238_v56 }
 0x3d5   : > { %v2175_v30 = vmax.f32 %v1889_v4, 0.0  ;;  %v3143_v4 = vperm.slane %v6112_v41, %v5956_v38 }
 0x3d6   : > { %v2439_v28 = vpop.xlane.xlu2 %2438  ;;  %v2544_v63 = vpop.xlane.xlu1 %2543  ;;  %v2177_v7 = vmax.f32 %v1894_v9, 0.0 }
 0x3d7   : > { %v3002_v54 = vperm.slane %v2439_v28, %v5956_v38  ;;  %v3054_v52 = vperm.slane %v2544_v63, %v5962_v45  ;;  %v2442_v25 = vpop.xlane.xlu0 %2441  ;;  %v2372_v28 = vmul.f32 %v5946_v23, %v2240_v0  ;;  %v2209_v63 = vmax.f32 %v1974_v14, 0.0 }
 0x3d8   : > { %v3003_v44 = vperm.slane %v2442_v25, %v5962_v45  ;;  %v6182_v25 = vpop.f32.mrf.mxu2  ;;  %v2124_v0 = vadd.f32 %v5928_v51, %v6071_v18  ;;  %v2307_v60 = vmul.f32 %v5946_v23, %v2175_v30 }
 0x3d9   : > { %v6148_v43 = vsel %vm2991_vm7, %v3054_v52, %v3053_v12  ;;  %v2668_v52 = vsel %vm1631_vm6, %v2370_v34, 0.0  ;;  %v2341_v56 = vmul.f32 %v5946_v23, %v2209_v63 }
 0x3da   : > { %v3004_v26 = vsel %vm2991_vm7, %v3003_v44, %v3002_v54  ;;  %v2674_v44 = vsel %vm1631_vm6, %v2372_v28, 0.0  ;;  %v2479_v63 = vsel %vm1631_vm6, %v2307_v60, 0.0 }
 0x3db   : > { %v6156_v2 = vsel %vm3188_vm11, %v3004_v26, %v3187_v40  ;;  %2474 = vadd.xlane.f32.xlu2 %v2473_v57  ;;  %2579 = vadd.xlane.f32.xlu1 %v2578_v21  ;;  %v2400_v40 = vmul.f32 %v5946_v23, %v2268_v16  ;;  %v1983_v57 = vpop.f32.mrf.mxu1  ;;  %v2309_v26 = vmul.f32 %v5946_v23, %v2177_v7  ;;  %v6190_v21 = vpop.f32.mrf.mxu3  ;;  %v2581_v34 = vsel %vm1631_vm6, %v2341_v56, 0.0 }
 0x3dc   : > { %2585 = vadd.xlane.f32.xlu0 %v2584_v17  ;;  %v1984_v16 = vadd.f32 %v5928_v51, %v1983_v57  ;;  %v6197_v9 = vpop.f32.mrf.mxu0  ;;  %v1891_v7 = vadd.f32 %v5928_v51, %v6129_v53 }
 0x3dd   : > { %v2758_v3 = vsel %vm1631_vm6, %v2400_v40, 0.0 }
 0x3de   : > { %v2547_v49 = vpop.xlane.xlu2 %2546  ;;  %v2634_v27 = vpop.xlane.xlu1 %2633 }
 0x3df   : > { %v3056_v61 = vperm.slane %v2547_v49, %v5956_v38  ;;  %v3099_v47 = vperm.slane %v2634_v27, %v5962_v45  ;;  %v2550_v24 = vpop.xlane.xlu0 %2549 }
 0x3e0   : > { %v3057_v36 = vperm.slane %v2550_v24, %v5962_v45  ;;  %v2269_v24 = vmax.f32 %v2124_v0, 0.0  ;;  %v2058_v30 = vpop.f32.mrf.mxu2  ;;  %v2176_v0 = vmax.f32 %v1891_v7, 0.0 }
 0x3e1   : > { %v3100_v12 = vsel %vm2991_vm7, %v3099_v47, %v3098_v42  ;;  %v2213_v42 = vmax.f32 %v1984_v16, 0.0  ;;  %v2485_v47 = vsel %vm1631_vm6, %v2309_v26, 0.0 }
 0x3e2   : > { %v3220_v22 = vsel %vm3188_vm11, %v3100_v12, %v6087_v58  ;;  %v6178_v54 = vsel %vm2991_vm7, %v3057_v36, %v3056_v61  ;;  %v2049_v58 = vadd.f32 %v5928_v51, %v6055_v39  ;;  %v2059_v12 = vadd.f32 %v5928_v51, %v2058_v30 }
 0x3e3   : > { %2759 = vadd.xlane.f32.xlu2 %v2758_v3  ;;  %2669 = vadd.xlane.f32.xlu1 %v2668_v52  ;;  %v2345_v3 = vmul.f32 %v5946_v23, %v2213_v42  ;;  %v2133_v26 = vpop.f32.mrf.mxu3  ;;  %v2126_v42 = vadd.f32 %v5928_v51, %v6122_v29 }
 0x3e4   : > { %2675 = vadd.xlane.f32.xlu0 %v2674_v44  ;;  %v2239_v18 = vmax.f32 %v2049_v58, 0.0  ;;  %v6221_v16 = vpop.f32.mrf.mxu0 }
 0x3e5   : > { %v2270_v29 = vmax.f32 %v2126_v42, 0.0 }
 0x3e6   : > { %v2637_v17 = vpop.xlane.xlu2 %2636  ;;  %v2724_v14 = vpop.xlane.xlu1 %2723  ;;  %v2371_v57 = vmul.f32 %v5946_v23, %v2239_v18  ;;  %v2054_v18 = vadd.f32 %v5928_v51, %v6145_v8 }
 0x3e7   : > { %v3101_v39 = vperm.slane %v2637_v17, %v5956_v38  ;;  %v3144_v49 = vperm.slane %v2724_v14, %v5962_v45  ;;  %v2640_v27 = vpop.xlane.xlu0 %2639  ;;  %v2243_v17 = vmax.f32 %v2059_v12, 0.0  ;;  %v2593_v14 = vsel %vm1631_vm6, %v2345_v3, 0.0 }
 0x3e8   : > { %v3102_v40 = vperm.slane %v2640_v27, %v5962_v45  ;;  %v2134_v27 = vadd.f32 %v5928_v51, %v2133_v26 }
 0x3e9   : > { %v3145_v61 = vsel %vm2991_vm7, %v3144_v49, %v3143_v4  ;;  %v2671_v4 = vsel %vm1631_vm6, %v2371_v57, 0.0 }
 0x3ea   : > { %v3233_v41 = vsel %vm3186_vm10, %v3145_v61, %v6126_v33  ;;  %v3103_v28 = vsel %vm2991_vm7, %v3102_v40, %v3101_v39  ;;  %v1979_v33 = vadd.f32 %v5928_v51, %v6116_v46  ;;  %v2308_v40 = vmul.f32 %v5946_v23, %v2176_v0 }
 0x3eb   : > { %v6210_v36 = vsel %vm3190_vm12, %v3103_v28, %v3220_v22  ;;  %2582 = vadd.xlane.f32.xlu2 %v2581_v34  ;;  %2480 = vadd.xlane.f32.xlu1 %v2479_v63  ;;  %v2401_v22 = vmul.f32 %v5946_v23, %v2269_v24  ;;  %v2375_v34 = vmul.f32 %v5946_v23, %v2243_v17  ;;  %v2273_v30 = vmax.f32 %v2134_v27, 0.0  ;;  %v6251_v57 = vpop.f32.mrf.mxu3 }
 0x3ec   : > { %2486 = vadd.xlane.f32.xlu0 %v2485_v47  ;;  %v2211_v60 = vmax.f32 %v1979_v33, 0.0  ;;  %v2482_v12 = vsel %vm1631_vm6, %v2308_v40, 0.0  ;;  %v1900_v3 = vpop.f32.mrf.mxu0  ;;  %v2241_v33 = vmax.f32 %v2054_v18, 0.0 }
 0x3ed   : > { %v2761_v39 = vsel %vm1631_vm6, %v2401_v22, 0.0  ;;  %v2683_v8 = vsel %vm1631_vm6, %v2375_v34, 0.0  ;;  %v2405_v22 = vmul.f32 %v5946_v23, %v2273_v30 }
 0x3ee   : > { %v2727_v52 = vpop.xlane.xlu2 %2726  ;;  %v2445_v44 = vpop.xlane.xlu1 %2444  ;;  %v2343_v24 = vmul.f32 %v5946_v23, %v2211_v60  ;;  %v2373_v0 = vmul.f32 %v5946_v23, %v2241_v33 }
 0x3ef   : > { %v3146_v56 = vperm.slane %v2727_v52, %v5956_v38  ;;  %v2730_v58 = vpop.xlane.xlu0 %2729 }
 0x3f0   : > { %v3147_v53 = vperm.slane %v2730_v58, %v5962_v45  ;;  %v2129_v58 = vadd.f32 %v5928_v51, %v6159_v37  ;;  %v2773_v37 = vsel %vm1631_vm6, %v2405_v22, 0.0  ;;  %v2677_v18 = vsel %vm1631_vm6, %v2373_v0, 0.0 }
 0x3f2   : > { %v3148_v46 = vsel %vm2991_vm7, %v3147_v53, %v3146_v56  ;;  %v1981_v56 = vadd.f32 %v5928_v51, %v6153_v59  ;;  %v2271_v40 = vmax.f32 %v2129_v58, 0.0 }
 0x3f3   : > { %v6229_v49 = vsel %vm3188_vm11, %v3148_v46, %v3233_v41  ;;  %2672 = vadd.xlane.f32.xlu2 %v2671_v4  ;;  %2762 = vadd.xlane.f32.xlu1 %v2761_v39  ;;  %v3005_v41 = vperm.slane %v2445_v44, %v5956_v38  ;;  %v2587_v44 = vsel %vm1631_vm6, %v2343_v24, 0.0  ;;  %v1985_v4 = vpop.f32.mrf.mxu1 }
 0x3f4   : > { %2594 = vadd.xlane.f32.xlu0 %v2593_v14  ;;  %v1901_v14 = vadd.f32 %v5928_v51, %v1900_v3  ;;  %v6269_v39 = vpop.f32.mrf.mxu0  ;;  %v2212_v27 = vmax.f32 %v1981_v56, 0.0 }
 0x3f6   : > { %v2448_v61 = vpop.xlane.xlu2 %2447  ;;  %v2553_v47 = vpop.xlane.xlu1 %2552  ;;  %v2180_v42 = vmax.f32 %v1901_v14, 0.0  ;;  %v2106_v14 = vadd.f32 %v5928_v51, %v5852_v55 }
 0x3f7   : > { %v3006_v28 = vperm.slane %v2448_v61, %v5962_v45  ;;  %v6241_v63 = vpop.xlane.xlu0 %2450  ;;  %v3059_v17 = vperm.slane %v2553_v47, %v5956_v38  ;;  %v1896_v61 = vadd.f32 %v5928_v51, %v6197_v9  ;;  %v2138_v47 = vpop.f32.mrf.mxu3 }
 0x3f8   : > { %v2139_v24 = vadd.f32 %v5928_v51, %v2138_v47  ;;  %v2312_v9 = vmul.f32 %v5946_v23, %v2180_v42  ;;  %v3008_v42 = vperm.slane %v6241_v63, %v5956_v38 }
 0x3f9   : > { %v3007_v7 = vsel %vm2991_vm7, %v3006_v28, %v3005_v41  ;;  %v2056_v41 = vadd.f32 %v5928_v51, %v6182_v25 }
 0x3fa   : > { %v6248_v52 = vsel %vm3190_vm12, %v3007_v7, %v6156_v2  ;;  %v2402_v2 = vmul.f32 %v5946_v23, %v2270_v29  ;;  %v2344_v7 = vmul.f32 %v5946_v23, %v2212_v27  ;;  %v2178_v29 = vmax.f32 %v1896_v61, 0.0 }
 0x3fb   : > { %2483 = vadd.xlane.f32.xlu2 %v2482_v12  ;;  %2588 = vadd.xlane.f32.xlu1 %v2587_v44  ;;  %v2403_v12 = vmul.f32 %v5946_v23, %v2271_v40  ;;  %v2060_v44 = vpop.f32.mrf.mxu2  ;;  %v2275_v22 = vmax.f32 %v2139_v24, 0.0  ;;  %v6286_v56 = vpop.f32.mrf.mxu1  ;;  %v2242_v58 = vmax.f32 %v2056_v41, 0.0  ;;  %v2494_v0 = vsel %vm1631_vm6, %v2312_v9, 0.0 }
 0x3fc   : > { %2684 = vadd.xlane.f32.xlu0 %v2683_v8  ;;  %v2764_v34 = vsel %vm1631_vm6, %v2402_v2, 0.0  ;;  %v1986_v27 = vadd.f32 %v5928_v51, %v1985_v4  ;;  %v2262_v41 = vmax.f32 %v2106_v14, 0.0 }
 0x3fd   : > { %v2767_v2 = vsel %vm1631_vm6, %v2403_v12, 0.0 }
 0x3fe   : > { %v2556_v53 = vpop.xlane.xlu2 %2555  ;;  %v2643_v26 = vpop.xlane.xlu1 %2642  ;;  %v2214_v63 = vmax.f32 %v1986_v27, 0.0 }
 0x3ff   : > { %v3060_v60 = vperm.slane %v2556_v53, %v5962_v45  ;;  %v6263_v46 = vpop.xlane.xlu0 %2558  ;;  %v3104_v8 = vperm.slane %v2643_v26, %v5956_v38  ;;  %v2590_v26 = vsel %vm1631_vm6, %v2344_v7, 0.0 }
 0x401   : > { %v6266_v59 = vsel %vm2991_vm7, %v3060_v60, %v3059_v17  ;;  %v6295_v17 = vpop.f32.mrf.mxu0  ;;  %v2310_v60 = vmul.f32 %v5946_v23, %v2178_v29 }
 0x403   : > { %2765 = vadd.xlane.f32.xlu2 %v2764_v34  ;;  %2678 = vadd.xlane.f32.xlu1 %v2677_v18  ;;  %v2374_v18 = vmul.f32 %v5946_v23, %v2242_v58  ;;  %v1990_v29 = vpop.f32.mrf.mxu1 }
 0x404   : > { %2774 = vadd.xlane.f32.xlu0 %v2773_v37  ;;  %v2407_v37 = vmul.f32 %v5946_v23, %v2275_v22  ;;  %v2061_v22 = vadd.f32 %v5928_v51, %v2060_v44  ;;  %v3062_v44 = vperm.slane %v6263_v46, %v5956_v38 }
 0x406   : > { %v2646_v28 = vpop.xlane.xlu2 %2645  ;;  %v2733_v30 = vpop.xlane.xlu1 %2732  ;;  %v2779_v12 = vsel %vm1631_vm6, %v2407_v37, 0.0 }
 0x407   : > { %v3105_v3 = vperm.slane %v2646_v28, %v5962_v45  ;;  %v6282_v33 = vpop.xlane.xlu0 %2648  ;;  %v3149_v61 = vperm.slane %v2733_v30, %v5956_v38 }
 0x409   : > { %v3106_v25 = vsel %vm2991_vm7, %v3105_v3, %v3104_v8  ;;  %v6314_v8 = vpop.f32.mrf.mxu2  ;;  %v2680_v3 = vsel %vm1631_vm6, %v2374_v18, 0.0 }
 0x40a   : > { %v6290_v53 = vsel %vm3192_vm13, %v3106_v25, %v6210_v36  ;;  %v2131_v36 = vadd.f32 %v5928_v51, %v6190_v21  ;;  %v2488_v21 = vsel %vm1631_vm6, %v2310_v60, 0.0  ;;  %v6324_v25 = vpop.f32.mrf.mxu3  ;;  %v2346_v60 = vmul.f32 %v5946_v23, %v2214_v63 }
 0x40b   : > { %2591 = vadd.xlane.f32.xlu2 %v2590_v26  ;;  %2768 = vadd.xlane.f32.xlu1 %v2767_v2  ;;  %v2394_v26 = vmul.f32 %v5946_v23, %v2262_v41  ;;  %v1908_v2 = vpop.f32.mrf.mxu0 }
 0x40c   : > { %2495 = vadd.xlane.f32.xlu0 %v2494_v0  ;;  %v2272_v28 = vmax.f32 %v2131_v36, 0.0  ;;  %v1991_v0 = vadd.f32 %v5928_v51, %v1990_v29 }
 0x40e   : > { %v2736_v40 = vpop.xlane.xlu2 %2735  ;;  %v2454_v34 = vpop.xlane.xlu1 %2453  ;;  %v2404_v58 = vmul.f32 %v5946_v23, %v2272_v28 }
 0x40f   : > { %v3150_v55 = vperm.slane %v2736_v40, %v5962_v45  ;;  %v3009_v47 = vperm.slane %v2454_v34, %v5962_v45  ;;  %v2460_v24 = vpop.xlane.xlu0 %2459  ;;  %v2244_v34 = vmax.f32 %v2061_v22, 0.0  ;;  %v3107_v22 = vperm.slane %v6282_v33, %v5956_v38 }
 0x410   : > { %v3012_v36 = vperm.slane %v2460_v24, %v5962_v45  ;;  %v2740_v24 = vsel %vm1631_vm6, %v2394_v26, 0.0 }
 0x411   : > { %v3151_v4 = vsel %vm2991_vm7, %v3150_v55, %v3149_v61  ;;  %v3010_v7 = vsel %vm2991_vm7, %v3009_v47, %v3008_v42  ;;  %v2770_v42 = vsel %vm1631_vm6, %v2404_v58, 0.0  ;;  %v2216_v55 = vmax.f32 %v1991_v0, 0.0  ;;  %v2065_v41 = vpop.f32.mrf.mxu2 }
 0x412   : > { %v6318_v30 = vsel %vm3190_vm12, %v3151_v4, %v6229_v49  ;;  %v3193_v9 = vsel %vm3192_vm13, %v3010_v7, %v6248_v52  ;;  %v1899_v49 = vadd.f32 %v5928_v51, %v6221_v16  ;;  %v2596_v47 = vsel %vm1631_vm6, %v2346_v60, 0.0  ;;  %v6348_v4 = vpop.f32.mrf.mxu3 }
 0x413   : > { %2681 = vadd.xlane.f32.xlu2 %v2680_v3  ;;  %2489 = vadd.xlane.f32.xlu1 %v2488_v21  ;;  %v2136_v21 = vadd.f32 %v5928_v51, %v6251_v57  ;;  %v2376_v28 = vmul.f32 %v5946_v23, %v2244_v34  ;;  %v1989_v7 = vadd.f32 %v5928_v51, %v6286_v56  ;;  %v6360_v0 = vpop.f32.mrf.mxu0 }
 0x414   : > { %2780 = vadd.xlane.f32.xlu0 %v2779_v12  ;;  %v2179_v61 = vmax.f32 %v1899_v49, 0.0  ;;  %v2066_v12 = vadd.f32 %v5928_v51, %v2065_v41  ;;  %v2348_v29 = vmul.f32 %v5946_v23, %v2216_v55  ;;  %v1904_v34 = vadd.f32 %v5928_v51, %v6269_v39 }
 0x415   : > { %v2274_v56 = vmax.f32 %v2136_v21, 0.0  ;;  %v2686_v60 = vsel %vm1631_vm6, %v2376_v28, 0.0 }
 0x416   : > { %v2457_v14 = vpop.xlane.xlu2 %2456  ;;  %v2562_v52 = vpop.xlane.xlu1 %2561 }
 0x417   : > { %v3011_v37 = vperm.slane %v2457_v14, %v5956_v38  ;;  %v3063_v27 = vperm.slane %v2562_v52, %v5962_v45  ;;  %v2568_v40 = vpop.xlane.xlu0 %2567  ;;  %v2406_v55 = vmul.f32 %v5946_v23, %v2274_v56  ;;  %v2109_v56 = vadd.f32 %v5928_v51, %v5878_v15 }
 0x418   : > { %v3066_v57 = vperm.slane %v2568_v40, %v5962_v45  ;;  %v2602_v40 = vsel %vm1631_vm6, %v2348_v29, 0.0  ;;  %v2141_v29 = vadd.f32 %v5928_v51, %v6324_v25 }
 0x419   : > { %v3013_v16 = vsel %vm2991_vm7, %v3012_v36, %v3011_v37  ;;  %v3064_v18 = vsel %vm2991_vm7, %v3063_v27, %v3062_v44  ;;  %v2215_v44 = vmax.f32 %v1989_v7, 0.0  ;;  %v2246_v27 = vmax.f32 %v2066_v12, 0.0 }
 0x41a   : > { %v6342_v46 = vsel %vm3194_vm14, %v3013_v16, %v3193_v9  ;;  %v2311_v9 = vmul.f32 %v5946_v23, %v2179_v61  ;;  %v2064_v16 = vadd.f32 %v5928_v51, %v6314_v8  ;;  %v2145_v39 = vpop.f32.mrf.mxu3  ;;  %v2181_v7 = vmax.f32 %v1904_v34, 0.0 }
 0x41b   : > { %2771 = vadd.xlane.f32.xlu2 %v2770_v42  ;;  %2597 = vadd.xlane.f32.xlu1 %v2596_v47  ;;  %v2347_v61 = vmul.f32 %v5946_v23, %v2215_v44  ;;  %v2378_v21 = vmul.f32 %v5946_v23, %v2246_v27  ;;  %v6389_v8 = vpop.f32.mrf.mxu0 }
 0x41c   : > { %2741 = vadd.xlane.f32.xlu0 %v2740_v24  ;;  %v2491_v33 = vsel %vm1631_vm6, %v2311_v9, 0.0  ;;  %v2245_v12 = vmax.f32 %v2064_v16, 0.0  ;;  %v2263_v16 = vmax.f32 %v2109_v56, 0.0 }
 0x41d   : > { %v2692_v9 = vsel %vm1631_vm6, %v2378_v21, 0.0 }
 0x41e   : > { %v2565_v63 = vpop.xlane.xlu2 %2564  ;;  %v2652_v3 = vpop.xlane.xlu1 %2651 }
 0x41f   : > { %v3065_v58 = vperm.slane %v2565_v63, %v5956_v38  ;;  %v3108_v26 = vperm.slane %v2652_v3, %v5962_v45  ;;  %v2658_v49 = vpop.xlane.xlu0 %2657  ;;  %v2599_v63 = vsel %vm1631_vm6, %v2347_v61, 0.0 }
 0x420   : > { %v3111_v47 = vperm.slane %v2658_v49, %v5962_v45  ;;  %v2313_v49 = vmul.f32 %v5946_v23, %v2181_v7 }
 0x421   : > { %v3067_v14 = vsel %vm2991_vm7, %v3066_v57, %v3065_v58  ;;  %v3109_v52 = vsel %vm2991_vm7, %v3108_v26, %v3107_v22  ;;  %v1906_v22 = vadd.f32 %v5928_v51, %v6295_v17  ;;  %v2377_v26 = vmul.f32 %v5946_v23, %v2245_v12 }
 0x422   : > { %v6366_v36 = vsel %vm3182_vm8, %v3067_v14, %v3064_v18  ;;  %v6371_v37 = vsel %vm3194_vm14, %v3109_v52, %v6290_v53  ;;  %v1909_v53 = vadd.f32 %v5928_v51, %v1908_v2  ;;  %v2776_v2 = vsel %vm1631_vm6, %v2406_v55, 0.0  ;;  %v6408_v17 = vpop.f32.mrf.mxu3 }
 0x423   : > { %2492 = vadd.xlane.f32.xlu2 %v2491_v33  ;;  %2687 = vadd.xlane.f32.xlu1 %v2686_v60  ;;  %v2276_v33 = vmax.f32 %v2141_v29, 0.0  ;;  %v2182_v27 = vmax.f32 %v1906_v22, 0.0  ;;  %v2497_v34 = vsel %vm1631_vm6, %v2313_v49, 0.0  ;;  %v1915_v51 = vpop.f32.mrf.mxu0 }
 0x424   : > { %2603 = vadd.xlane.f32.xlu0 %v2602_v40  ;;  %v2183_v3 = vmax.f32 %v1909_v53, 0.0  ;;  %v2689_v40 = vsel %vm1631_vm6, %v2377_v26, 0.0 }
 0x426   : > { %v2655_v18 = vpop.xlane.xlu2 %2654  ;;  %v2463_v42 = vpop.xlane.xlu1 %2462  ;;  %v2315_v25 = vmul.f32 %v5946_v23, %v2183_v3  ;;  %v6416_v23 = vld [vmem:[%s7241_s5] ss:$0 sm:$0xff] }
 0x427   : > { %v3110_v24 = vperm.slane %v2655_v18, %v5956_v38  ;;  %v6383_v41 = vpop.xlane.xlu0 %2468  ;;  %v3014_v14 = vperm.slane %v2463_v42, %v5956_v38  ;;  %v2104_v18 = vadd.f32 %v6416_v23, %v5820_v19  ;;  %v2111_v42 = vadd.f32 %v6416_v23, %v5918_v50 }
 0x428   : > { %v2503_v15 = vsel %vm1631_vm6, %v2315_v25, 0.0  ;;  %v1916_v61 = vadd.f32 %v6416_v23, %v1915_v51  ;;  %v2146_v49 = vadd.f32 %v6416_v23, %v2145_v39 }
 0x429   : > { %v6387_v28 = vsel %vm2991_vm7, %v3111_v47, %v3110_v24  ;;  %v6426_v47 = vld [vmem:[%s7244_s8] ss:$0 sm:$0xff]  ;;  %v2261_v12 = vmax.f32 %v2104_v18, 0.0 }
 0x42a   : > { %v2314_v24 = vmul.f32 %v6426_v47, %v2182_v27  ;;  %v2408_v21 = vmul.f32 %v6426_v47, %v2276_v33  ;;  %v2395_v19 = vmul.f32 %v6426_v47, %v2263_v16  ;;  %v2186_v50 = vmax.f32 %v1916_v61, 0.0  ;;  %v2150_v29 = vpop.f32.mrf.mxu3 }
 0x42b   : > { %2600 = vadd.xlane.f32.xlu2 %v2599_v63  ;;  %2777 = vadd.xlane.f32.xlu1 %v2776_v2  ;;  %v2264_v63 = vmax.f32 %v2111_v42, 0.0  ;;  %v2393_v22 = vmul.f32 %v6426_v47, %v2261_v12  ;;  %v2151_v56 = vadd.f32 %v6416_v23, %v2150_v29  ;;  %v3017_v33 = vperm.slane %v6383_v41, %v5956_v38 }
 0x42c   : > { %2693 = vadd.xlane.f32.xlu0 %v2692_v9  ;;  %v2500_v2 = vsel %vm1631_vm6, %v2314_v24, 0.0  ;;  %v2782_v3 = vsel %vm1631_vm6, %v2408_v21, 0.0  ;;  %v2743_v9 = vsel %vm1631_vm6, %v2395_v19, 0.0  ;;  %v2318_v25 = vmul.f32 %v6426_v47, %v2186_v50 }
 0x42d   : > { %v2396_v26 = vmul.f32 %v6426_v47, %v2264_v63  ;;  %v2737_v16 = vsel %vm1631_vm6, %v2393_v22, 0.0  ;;  %v2278_v42 = vmax.f32 %v2146_v49, 0.0  ;;  %v2280_v61 = vmax.f32 %v2151_v56, 0.0 }
 0x42e   : > { %v2466_v57 = vpop.xlane.xlu2 %2465  ;;  %v2571_v58 = vpop.xlane.xlu1 %2570  ;;  %v2512_v24 = vsel %vm1631_vm6, %v2318_v25, 0.0  ;;  %v1911_v21 = vadd.f32 %v6416_v23, %v6360_v0  ;;  %v1914_v19 = vadd.f32 %v6416_v23, %v6389_v8 }
 0x42f   : > { %v3015_v52 = vperm.slane %v2466_v57, %v5962_v45  ;;  %v6404_v60 = vpop.xlane.xlu0 %2576  ;;  %v2144_v57 = vadd.f32 %v6416_v23, %v6348_v4  ;;  %v3068_v27 = vperm.slane %v2571_v58, %v5956_v38  ;;  %v2746_v18 = vsel %vm1631_vm6, %v2396_v26, 0.0 }
 0x430   : > { %v2410_v50 = vmul.f32 %v6426_v47, %v2278_v42  ;;  %v2184_v22 = vmax.f32 %v1911_v21, 0.0  ;;  %v2185_v26 = vmax.f32 %v1914_v19, 0.0 }
 0x431   : > { %v3016_v44 = vsel %vm2991_vm7, %v3015_v52, %v3014_v14  ;;  %v2277_v39 = vmax.f32 %v2144_v57, 0.0 }
 0x432   : > { %v2788_v56 = vsel %vm1631_vm6, %v2410_v50, 0.0 }
 0x433   : > { %2690 = vadd.xlane.f32.xlu2 %v2689_v40  ;;  %2498 = vadd.xlane.f32.xlu1 %v2497_v34 }
 0x434   : > { %2504 = vadd.xlane.f32.xlu0 %v2503_v15 }
 0x436   : > { %v2751_v55 = vpop.xlane.xlu2 %2750  ;;  %v2661_v53 = vpop.xlane.xlu1 %2660 }
 0x437   : > { %v6430_v7 = vpop.xlane.xlu0 %2666 }
 0x438   : > { %v3116_v19 = vperm.slane %v6430_v7, %v5956_v38  ;;  %v2799_v7 = vld [vmem:[#allocation3 + $0x10] sm:$0xff] }
 0x43b   : > { %2501 = vadd.xlane.f32.xlu2 %v2500_v2  ;;  %2783 = vadd.xlane.f32.xlu1 %v2782_v3  ;;  %v2409_v2 = vmul.f32 %v6426_v47, %v2277_v39  ;;  %v3113_v3 = vperm.slane %v2661_v53, %v5956_v38 }
 0x43c   : > { %2744 = vadd.xlane.f32.xlu0 %v2743_v9 }
 0x43e   : > { %v2574_v14 = vpop.xlane.xlu2 %2573  ;;  %v2472_v52 = vpop.xlane.xlu1 %2471 }
 0x43f   : > { %v3069_v40 = vperm.slane %v2574_v14, %v5962_v45  ;;  %v3018_v34 = vperm.slane %v2472_v52, %v5962_v45  ;;  %v6448_v4 = vpop.xlane.xlu0 %2756  ;;  %v2316_v14 = vmul.f32 %v6426_v47, %v2184_v22  ;;  %v2149_v52 = vadd.f32 %v6416_v23, %v6408_v17 }
 0x441   : > { %v3070_v15 = vsel %vm2991_vm7, %v3069_v40, %v3068_v27  ;;  %v3019_v51 = vsel %vm2991_vm7, %v3018_v34, %v3017_v33  ;;  %v2317_v27 = vmul.f32 %v6426_v47, %v2185_v26  ;;  %v2506_v17 = vsel %vm1631_vm6, %v2316_v14, 0.0  ;;  %v2797_v14 = vld [vmem:[#allocation3] sm:$0xff] }
 0x442   : > { %v3211_v41 = vsel %vm3184_vm9, %v3070_v15, %v6366_v36  ;;  %v3196_v58 = vsel %vm3182_vm8, %v3019_v51, %v3016_v44  ;;  %v2412_v36 = vmul.f32 %v6426_v47, %v2280_v61  ;;  %v3158_v44 = vperm.slane %v2751_v55, %v5956_v38 }
 0x443   : > { %2738 = vadd.xlane.f32.xlu2 %v2737_v16  ;;  %2747 = vadd.xlane.f32.xlu1 %v2746_v18  ;;  %v2785_v55 = vsel %vm1631_vm6, %v2409_v2, 0.0  ;;  %v2279_v23 = vmax.f32 %v2149_v52, 0.0 }
 0x444   : > { %2513 = vadd.xlane.f32.xlu0 %v2512_v24  ;;  %v2794_v53 = vsel %vm1631_vm6, %v2412_v36, 0.0 }
 0x445   : > { %v2411_v21 = vmul.f32 %v6426_v47, %v2279_v23 }
 0x446   : > { %v2664_v12 = vpop.xlane.xlu2 %2663  ;;  %v2754_v63 = vpop.xlane.xlu1 %2753 }
 0x447   : > { %v3114_v9 = vperm.slane %v2664_v12, %v5962_v45  ;;  %v3159_v29 = vperm.slane %v2754_v63, %v5962_v45  ;;  %v2478_v0 = vpop.xlane.xlu0 %2477  ;;  %v3161_v12 = vperm.slane %v6448_v4, %v5956_v38  ;;  %v2791_v47 = vsel %vm1631_vm6, %v2411_v21, 0.0  ;;  %v6520_v21 = vld [vmem:[%s2805_s20 + $0x2] ss:$0 sm:$0xff] }
 0x448   : > { %v3021_v40 = vperm.slane %v2478_v0, %v5962_v45 }
 0x449   : > { %v3115_v8 = vsel %vm2991_vm7, %v3114_v9, %v3113_v3  ;;  %v3160_v57 = vsel %vm2991_vm7, %v3159_v29, %v3158_v44 }
 0x44a   : > { %v3224_v49 = vsel %vm3182_vm8, %v3115_v8, %v6387_v28  ;;  %v3071_v28 = vperm.slane %v6404_v60, %v5956_v38  ;;  %v2509_v60 = vsel %vm1631_vm6, %v2317_v27, 0.0 }
 0x44b   : > { %2789 = vadd.xlane.f32.xlu2 %v2788_v56  ;;  %2786 = vadd.xlane.f32.xlu1 %v2785_v55 }
 0x44c   : > { %2795 = vadd.xlane.f32.xlu0 %v2794_v53 }
 0x44e   : > { %v2475_v25 = vpop.xlane.xlu2 %2474  ;;  %v2580_v33 = vpop.xlane.xlu1 %2579 }
 0x44f   : > { %v3020_v34 = vperm.slane %v2475_v25, %v5956_v38  ;;  %v3072_v16 = vperm.slane %v2580_v33, %v5962_v45  ;;  %v2586_v39 = vpop.xlane.xlu0 %2585 }
 0x450   : > { %v3075_v4 = vperm.slane %v2586_v39, %v5962_v45  ;;  %v2803_v39 = vld [vmem:[#allocation3 + $0x30] sm:$0xff] }
 0x451   : > { %v3022_v15 = vsel %vm2991_vm7, %v3021_v40, %v3020_v34  ;;  %v3073_v51 = vsel %vm2991_vm7, %v3072_v16, %v3071_v28  ;;  %v2804_v34 = vld [vmem:[#allocation3 + $0x38] sm:$0xff] }
 0x452   : > { %v3197_v18 = vsel %vm3184_vm9, %v3022_v15, %v3196_v58  ;;  %v3212_v42 = vsel %vm3186_vm10, %v3073_v51, %v3211_v41 }
 0x453   : > { %2510 = vadd.xlane.f32.xlu2 %v2509_v60  ;;  %2507 = vadd.xlane.f32.xlu1 %v2506_v17 }
 0x456   : > { %v2760_v61 = vpop.xlane.xlu2 %2759  ;;  %v2670_v24 = vpop.xlane.xlu1 %2669 }
 0x457   : > { %v3162_v63 = vperm.slane %v2760_v61, %v5962_v45  ;;  %v3117_v58 = vperm.slane %v2670_v24, %v5962_v45  ;;  %v2676_v50 = vpop.xlane.xlu0 %2675  ;;  %v2800_v24 = vld [vmem:[#allocation3 + $0x18] sm:$0xff] }
 0x459   : > { %v3163_v41 = vsel %vm2991_vm7, %v3162_v63, %v3161_v12  ;;  %v3118_v2 = vsel %vm2991_vm7, %v3117_v58, %v3116_v19 }
 0x45a   : > { %v3238_v36 = vsel %vm3182_vm8, %v3163_v41, %v3160_v57  ;;  %v3225_v44 = vsel %vm3184_vm9, %v3118_v2, %v3224_v49  ;;  %v3120_v49 = vperm.slane %v2676_v50, %v5962_v45 }
 0x45b   : > { %2792 = vadd.xlane.f32.xlu2 %v2791_v47 }
 0x45e   : > { %v2583_v3 = vpop.xlane.xlu2 %2582  ;;  %v2481_v9 = vpop.xlane.xlu1 %2480 }
 0x45f   : > { %v3074_v29 = vperm.slane %v2583_v3, %v5956_v38  ;;  %v2487_v0 = vpop.xlane.xlu0 %2486  ;;  %v3023_v27 = vperm.slane %v2481_v9, %v5956_v38 }
 0x460   : > { %2820 = vperm.xlu0 %4640, %v2799_v7   ;;  %v3026_v9 = vperm.slane %v2487_v0, %v5956_v38 }
 0x461   : > { %v3076_v22 = vsel %vm2991_vm7, %v3075_v4, %v3074_v29 }
 0x462   : > { %v3213_v8 = vsel %vm3188_vm11, %v3076_v22, %v3212_v42 }
 0x466   : > { %v2673_v26 = vpop.xlane.xlu2 %2672  ;;  %v2763_v57 = vpop.xlane.xlu1 %2762 }
 0x467   : > { %v3119_v56 = vperm.slane %v2673_v26, %v5956_v38  ;;  %v2595_v55 = vpop.xlane.xlu0 %2594  ;;  %v3164_v23 = vperm.slane %v2763_v57, %v5956_v38 }
 0x469   : > { %v3121_v53 = vsel %vm2991_vm7, %v3120_v49, %v3119_v56 }
 0x46a   : > { %v3226_v52 = vsel %vm3186_vm10, %v3121_v53, %v3225_v44 }
 0x46c   : > { %2810 = vperm.xlu1 %4641, %v2797_v14   ;;  %v3080_v14 = vperm.slane %v2595_v55, %v5956_v38 }
 0x46e   : > { %v2484_v25 = vpop.xlane.xlu2 %2483  ;;  %v2589_v33 = vpop.xlane.xlu1 %2588 }
 0x46f   : > { %v3024_v28 = vperm.slane %v2484_v25, %v5962_v45  ;;  %v2685_v40 = vpop.xlane.xlu0 %2684  ;;  %v3077_v50 = vperm.slane %v2589_v33, %v5956_v38 }
 0x471   : > { %v3025_v16 = vsel %vm2991_vm7, %v3024_v28, %v3023_v27 }
 0x472   : > { %v3198_v15 = vsel %vm3186_vm10, %v3025_v16, %v3197_v18  ;;  %v2854_v18 = vadd.f32 %v6520_v21, %v5771_v31 }
 0x473   : > { %2845 = vperm.xlu2 %4639, %v2804_v34  }
 0x474   : > { %2840 = vperm.xlu1 %4641, %v2803_v39   ;;  %v3257_v58 = vadd.f32 %v6371_v37, %v2854_v18 }
 0x476   : > { %v2766_v51 = vpop.xlane.xlu2 %2765  ;;  %v2679_v17 = vpop.xlane.xlu1 %2678  ;;  %v3273_v7 = vmul.f32 0.01, %v3257_v58  ;;  %vm3265_vm15 = vcmp.ge.f32.partialorder %v3257_v58, 0.0 }
 0x477   : > { %v3165_v42 = vperm.slane %v2766_v51, %v5962_v45  ;;  %v2775_v60 = vpop.xlane.xlu0 %2774  ;;  %v3122_v37 = vperm.slane %v2679_v17, %v5956_v38  ;;  %v3125_v17 = vperm.slane %v2685_v40, %v5956_v38 }
 0x478   : > { %v6532_v31 = vsel %vm3265_vm15, %v3257_v58, %v3273_v7 }
 0x479   : > { %v3166_v61 = vsel %vm2991_vm7, %v3165_v42, %v3164_v23 }
 0x47a   : > { %v3239_v19 = vsel %vm3184_vm9, %v3166_v61, %v3238_v36 }
 0x47c   : > { %2825 = vperm.xlu1 %4641, %v2800_v24  }
 0x47e   : > { %v2592_v12 = vpop.xlane.xlu2 %2591  ;;  %v2769_v63 = vpop.xlane.xlu1 %2768 }
 0x47f   : > { %v3078_v41 = vperm.slane %v2592_v12, %v5962_v45  ;;  %v6528_v2 = vpop.xlane.xlu0 %2495  ;;  %v3167_v25 = vperm.slane %v2769_v63, %v5956_v38  ;;  %v3170_v12 = vperm.slane %v2775_v60, %v5956_v38 }
 0x481   : > { %v3079_v44 = vsel %vm2991_vm7, %v3078_v41, %v3077_v50 }
 0x482   : > { %v3214_v47 = vsel %vm3190_vm12, %v3079_v44, %v3213_v8  ;;  %v3305_v8 = vsel %vm1631_vm6, %v6532_v31, -inf }
 0x486   : > { %v2682_v36 = vpop.xlane.xlu2 %2681  ;;  %v2490_v3 = vpop.xlane.xlu1 %2489 }
 0x487   : > { %v3123_v4 = vperm.slane %v2682_v36, %v5962_v45  ;;  %v3027_v29 = vperm.slane %v2490_v3, %v5962_v45  ;;  %v2781_v22 = vpop.xlane.xlu0 %2780 }
 0x489   : > { %v3124_v26 = vsel %vm2991_vm7, %v3123_v4, %v3122_v37  ;;  %v3028_v57 = vsel %vm2991_vm7, %v3027_v29, %v3026_v9 }
 0x48a   : > { %v3227_v49 = vsel %vm3188_vm11, %v3124_v26, %v3226_v52  ;;  %v6544_v56 = vsel %vm3188_vm11, %v3028_v57, %v3198_v15  ;;  %3306 = vmax.xlane.f32.xlu0 %v3305_v8  ;;  %v3173_v57 = vperm.slane %v2781_v22, %v5956_v38 }
 0x48e   : > { %v2772_v0 = vpop.xlane.xlu2 %2771  ;;  %v2598_v53 = vpop.xlane.xlu1 %2597 }
 0x48f   : > { %v3168_v33 = vperm.slane %v2772_v0, %v5962_v45  ;;  %v3081_v27 = vperm.slane %v2598_v53, %v5962_v45  ;;  %v2742_v28 = vpop.xlane.xlu0 %2741 }
 0x491   : > { %v3169_v34 = vsel %vm2991_vm7, %v3168_v33, %v3167_v25  ;;  %v3082_v16 = vsel %vm2991_vm7, %v3081_v27, %v3080_v14  ;;  %v3153_v33 = vperm.slane %v2742_v28, %v5962_v45 }
 0x492   : > { %v3240_v52 = vsel %vm3186_vm10, %v3169_v34, %v3239_v19  ;;  %v3215_v39 = vsel %vm3192_vm13, %v3082_v16, %v3214_v47 }
 0x496   : > { %v2493_v15 = vpop.xlane.xlu2 %2492  ;;  %v2688_v51 = vpop.xlane.xlu1 %2687 }
 0x497   : > { %v3126_v55 = vperm.slane %v2688_v51, %v5962_v45  ;;  %v2604_v23 = vpop.xlane.xlu0 %2603 }
 0x498   : > { %v3084_v63 = vperm.slane %v2604_v23, %v5962_v45 }
 0x499   : > { %v3127_v42 = vsel %vm2991_vm7, %v3126_v55, %v3125_v17  ;;  %v3029_v55 = vperm.slane %v2493_v15, %v5956_v38  ;;  %v3042_v15 = vperm.slane %v5834_v35, %v5962_v45 }
 0x49a   : > { %v3228_v61 = vsel %vm3190_vm12, %v3127_v42, %v3227_v49 }
 0x49e   : > { %v2601_v24 = vpop.xlane.xlu2 %2600  ;;  %v2778_v18 = vpop.xlane.xlu1 %2777 }
 0x49f   : > { %v3083_v19 = vperm.slane %v2601_v24, %v5956_v38  ;;  %v3171_v58 = vperm.slane %v2778_v18, %v5962_v45  ;;  %v2694_v41 = vpop.xlane.xlu0 %2693  ;;  %v3041_v18 = vperm.slane %v5809_v11, %v5956_v38 }
 0x4a0   : > { %v3129_v60 = vperm.slane %v2694_v41, %v5962_v45 }
 0x4a1   : > { %v3085_v50 = vsel %vm2991_vm7, %v3084_v63, %v3083_v19  ;;  %v3172_v40 = vsel %vm2991_vm7, %v3171_v58, %v3170_v12  ;;  %v3047_v63 = vperm.slane %v5934_v10, %v5956_v38  ;;  %v3045_v19 = vperm.slane %v5936_v13, %v5962_v45 }
 0x4a2   : > { %v3241_v44 = vsel %vm3188_vm11, %v3172_v40, %v3240_v52  ;;  %v6566_v47 = vsel %vm3194_vm14, %v3085_v50, %v3215_v39  ;;  %v3044_v13 = vperm.slane %v5866_v1, %v5956_v38 }
 0x4a6   : > { %v2691_v7 = vpop.xlane.xlu2 %2690  ;;  %v2499_v36 = vpop.xlane.xlu1 %2498 }
 0x4a7   : > { %v3128_v3 = vperm.slane %v2691_v7, %v5956_v38  ;;  %v2505_v4 = vpop.xlane.xlu0 %2504  ;;  %v3032_v24 = vperm.slane %v2499_v36, %v5956_v38  ;;  %v3043_v7 = vsel %vm2991_vm7, %v3042_v15, %v3041_v18  ;;  %v3132_v18 = vperm.slane %v5884_v20, %v5962_v45 }
 0x4a8   : > { %v3035_v11 = vperm.slane %v2505_v4, %v5956_v38 }
 0x4a9   : > { %v3130_v9 = vsel %vm2991_vm7, %v3129_v60, %v3128_v3 }
 0x4aa   : > { %v6572_v37 = vsel %vm3192_vm13, %v3130_v9, %v3228_v61  ;;  %v3030_v61 = vperm.slane %v6528_v2, %v5962_v45  ;;  %v3048_v2 = vperm.slane %v5941_v6, %v5962_v45  ;;  %v3046_v9 = vsel %vm2991_vm7, %v3045_v19, %v3044_v13 }
 0x4ac   : > { %v3031_v12 = vsel %vm2991_vm7, %v3030_v61, %v3029_v55  ;;  %v3049_v1 = vsel %vm2991_vm7, %v3048_v2, %v3047_v63  ;;  %v3131_v2 = vperm.slane %v5862_v62, %v5956_v38 }
 0x4ad   : > { %v3200_v6 = vsel %vm3190_vm12, %v3031_v12, %v6544_v56 }
 0x4ae   : > { %v2502_v29 = vpop.xlane.xlu2 %2501  ;;  %v2784_v26 = vpop.xlane.xlu1 %2783  ;;  %v3133_v20 = vsel %vm2991_vm7, %v3132_v18, %v3131_v2 }
 0x4af   : > { %v3174_v8 = vperm.slane %v2784_v26, %v5962_v45  ;;  %v6578_v53 = vpop.xlane.xlu0 %2744  ;;  %v3033_v28 = vperm.slane %v2502_v29, %v5962_v45  ;;  %v3230_v62 = vsel %vm3194_vm14, %v3133_v20, %v6572_v37  ;;  %v6733_v20 = vld [vmem:[#allocation5 + $0x38] sm:$0xff] }
 0x4b0   : > { %v3155_v15 = vperm.slane %v6578_v53, %v5956_v38 }
 0x4b1   : > { %v3175_v49 = vsel %vm2991_vm7, %v3174_v8, %v3173_v57  ;;  %v3034_v58 = vsel %vm2991_vm7, %v3033_v28, %v3032_v24 }
 0x4b2   : > { %v3242_v0 = vsel %vm3190_vm12, %v3175_v49, %v3241_v44  ;;  %v3201_v36 = vsel %vm3192_vm13, %v3034_v58, %v3200_v6 }
 0x4b6   : > { %v2739_v14 = vpop.xlane.xlu2 %2738  ;;  %v6580_v25 = vpop.xlane.xlu1 %2747 }
 0x4b7   : > { %v3152_v27 = vperm.slane %v2739_v14, %v5956_v38  ;;  %v2514_v17 = vpop.xlane.xlu0 %2513 }
 0x4b8   : > { %v3039_v41 = vperm.slane %v2514_v17, %v5962_v45 }
 0x4b9   : > { %v3154_v34 = vsel %vm2991_vm7, %v3153_v33, %v3152_v27 }
 0x4ba   : > { %v6587_v22 = vsel %vm3192_vm13, %v3154_v34, %v6318_v30  ;;  %v6599_v30 = vld [vmem:[%s2805_s20] ss:$0 sm:$0xff]  ;;  %s4449_s20 = sshll.u32 %s4817_s28, 4 }
 0x4bb   : > { %v2851_v10 = vadd.f32 %v6599_v30, %v5802_v5  ;;  %s3471_s18 = sshra.s32 %s4449_s20, 3 }
 0x4bc   : > { %s4450_s30 = sshll.u32 %s3471_s18, 2 }
 0x4bd   : > { %s3474_s23 = scalar_lea.vmem [#allocation2], %s4450_s30  ;;  %s7313_s30 = sld [smem:[#allocation25_spill]] (!%p4463_p5) }
 0x4be   : > { %v2790_v16 = vpop.xlane.xlu2 %2789  ;;  %v2787_v52 = vpop.xlane.xlu1 %2786  ;;  %v4500_v63 = vld [vmem:[%s3474_s23 + $0x10] sm:$0xff]  ;;  %v4499_v19 = vld [vmem:[%s3474_s23] sm:$0xff] }
 0x4bf   : > { %v3177_v39 = vperm.slane %v2790_v16, %v5962_v45  ;;  %v3176_v51 = vperm.slane %v2787_v52, %v5956_v38  ;;  %v2796_v4 = vpop.xlane.xlu0 %2795  ;;  %3613 = vmatpush.bf16.msrb.mxu2 %v4500_v63  ;;  %3572 = vmatpush.bf16.msrb.mxu1 %v4499_v19 }
 0x4c0   : > { %v3180_v33 = vperm.slane %v2796_v4, %v5962_v45 }
 0x4c1   : > { %v3178_v23 = vsel %vm2991_vm7, %v3177_v39, %v3176_v51 }
 0x4c2   : > { %v3243_v42 = vsel %vm3192_vm13, %v3178_v23, %v3242_v0 }
 0x4c3   : > { %s7314_s14 = smov (!%p4463_p5), %s7313_s30 }
 0x4c6   : > { %v2511_v50 = vpop.xlane.xlu2 %2510  ;;  %v2508_v40 = vpop.xlane.xlu1 %2507 }
 0x4c7   : > { %v3038_v35 = vperm.slane %v2511_v50, %v5956_v38  ;;  %v3036_v44 = vperm.slane %v2508_v40, %v5962_v45 }
 0x4c9   : > { %v3040_v60 = vsel %vm2991_vm7, %v3039_v41, %v3038_v35  ;;  %v3037_v3 = vsel %vm2991_vm7, %v3036_v44, %v3035_v11 }
 0x4ca   : > { %v3203_v29 = vsel %vm3182_vm8, %v3043_v7, %v3040_v60  ;;  %v3202_v5 = vsel %vm3194_vm14, %v3037_v3, %v3201_v36  ;;  %v6691_v36 = vld [vmem:[#allocation5 + $0x20] sm:$0xff] }
 0x4cb   : > { %v3204_v26 = vsel %vm3184_vm9, %v3046_v9, %v3203_v29  ;;  %v3254_v56 = vadd.f32 %v3202_v5, %v2851_v10 }
 0x4cc   : > { %v3205_v57 = vsel %vm3186_vm10, %v3049_v1, %v3204_v26 }
 0x4cd   : > { %vm3262_vm0 = vcmp.ge.f32.partialorder %v3254_v56, 0.0  ;;  %v3270_v8 = vmul.f32 0.01, %v3254_v56  ;;  %v3206_v49 = vsel %vm3188_vm11, %v6047_v32, %v3205_v57  ;;  %v3286_v57 = vld [vmem:[#allocation5 + $0x8] sm:$0xff] }
 0x4ce   : > { %v2793_v0 = vpop.xlane.xlu2 %2792  ;;  %v3207_v14 = vsel %vm3190_vm12, %v6148_v43, %v3206_v49 }
 0x4cf   : > { %v3179_v27 = vperm.slane %v2793_v0, %v5956_v38  ;;  %v6640_v34 = vsel %vm3262_vm0, %v3254_v56, %v3270_v8  ;;  %v3208_v16 = vsel %vm3192_vm13, %v6178_v54, %v3207_v14  ;;  %v2855_v38 = vadd.f32 %v6520_v21, %v5783_v48  ;;  %v3287_v14 = vld [vmem:[#allocation5 + $0x10] sm:$0xff] }
 0x4d0   : > { %v3296_v52 = vsel %vm1631_vm6, %v6640_v34, -inf  ;;  %v3209_v32 = vsel %vm3194_vm14, %v6266_v59, %v3208_v16 }
 0x4d1   : > { %v3181_v39 = vsel %vm2991_vm7, %v3180_v33, %v3179_v27  ;;  %3297 = vmax.xlane.f32.xlu0 %v3296_v52  ;;  %v3258_v41 = vadd.f32 %v3230_v62, %v2855_v38 }
 0x4d2   : > { %v2821_v51 = vpop.permute.xlu0 %2820  ;;  %v6650_v43 = vsel %vm3194_vm14, %v3181_v39, %v3243_v42  ;;  %v3156_v42 = vperm.slane %v6580_v25, %v5962_v45  ;;  %v3291_v39 = vld [vmem:[#allocation5 + $0x30] sm:$0xff] }
 0x4d3   : > { %v2852_v17 = vadd.f32 %v6599_v30, %v2821_v51  ;;  %vm3266_vm4 = vcmp.ge.f32.partialorder %v3258_v41, 0.0 }
 0x4d4   : > { %v3157_v58 = vsel %vm2991_vm7, %v3156_v42, %v3155_v15  ;;  %vm3461_vm7 = vcmask 7168  }
 0x4d5   : > { %v3255_v55 = vadd.f32 %v3209_v32, %v2852_v17  ;;  %v3237_v53 = vsel %vm3194_vm14, %v3157_v58, %v6587_v22  ;;  %v3274_v22 = vmul.f32 0.01, %v3258_v41  ;;  %v3290_v17 = vld [vmem:[#allocation5 + $0x28] sm:$0xff] }
 0x4d6   : > { %v2846_v4 = vpop.permute.xlu2 %2845 }
 0x4d7   : > { %vm3263_vm1 = vcmp.ge.f32.partialorder %v3255_v55, 0.0  ;;  %v3271_v23 = vmul.f32 0.01, %v3255_v55  ;;  %v6687_v6 = vsel %vm3266_vm4, %v3258_v41, %v3274_v22  ;;  %v2857_v29 = vadd.f32 %v6520_v21, %v2846_v4 }
 0x4d8   : > { %v3308_v48 = vsel %vm1631_vm6, %v6687_v6, -inf }
 0x4d9   : > { %v6654_v54 = vsel %vm3263_vm1, %v3255_v55, %v3271_v23  ;;  %v3260_v5 = vadd.f32 %v6650_v43, %v2857_v29 }
 0x4da   : > { %v3299_v28 = vsel %vm1631_vm6, %v6654_v54, -inf }
 0x4db   : > { %3300 = vmax.xlane.f32.xlu0 %v3299_v28  ;;  %v3276_v1 = vmul.f32 0.01, %v3260_v5  ;;  %vm3268_vm8 = vcmp.ge.f32.partialorder %v3260_v5, 0.0 }
 0x4dd   : > { %v6707_v26 = vsel %vm3268_vm8, %v3260_v5, %v3276_v1 }
 0x4de   : > { %v2811_v59 = vpop.permute.xlu1 %2810  ;;  %v3314_v56 = vsel %vm1631_vm6, %v6707_v26, -inf }
 0x4df   : > { %v2850_v61 = vadd.f32 %v6599_v30, %v2811_v59 }
 0x4e1   : > { %v3253_v24 = vadd.f32 %v6342_v46, %v2850_v61  ;;  %v3288_v61 = vld [vmem:[#allocation5 + $0x18] sm:$0xff] }
 0x4e3   : > { %vm3261_vm2 = vcmp.ge.f32.partialorder %v3253_v24, 0.0  ;;  %v3269_v12 = vmul.f32 0.01, %v3253_v24 }
 0x4e5   : > { %v6669_v50 = vsel %vm3261_vm2, %v3253_v24, %v3269_v12 }
 0x4e6   : > { %v2841_v25 = vpop.permute.xlu1 %2840  ;;  %v3293_v46 = vsel %vm1631_vm6, %v6669_v50, -inf }
 0x4e7   : > { %v2856_v45 = vadd.f32 %v6520_v21, %v2841_v25  ;;  %3294 = vmax.xlane.f32.xlu1 %v3293_v46  ;;  %v6713_v21 = vld [vmem:[#allocation5] sm:$0xff] }
 0x4e9   : > { %v3259_v40 = vadd.f32 %v3237_v53, %v2856_v45 }
 0x4eb   : > { %vm3267_vm3 = vcmp.ge.f32.partialorder %v3259_v40, 0.0  ;;  %v3275_v11 = vmul.f32 0.01, %v3259_v40 }
 0x4ed   : > { %v6681_v35 = vsel %vm3267_vm3, %v3259_v40, %v3275_v11 }
 0x4ee   : > { %v2826_v44 = vpop.permute.xlu1 %2825  ;;  %v3311_v10 = vsel %vm1631_vm6, %v6681_v35, -inf }
 0x4ef   : > { %v2853_v13 = vadd.f32 %v6599_v30, %v2826_v44  ;;  %3312 = vmax.xlane.f32.xlu2 %v3311_v10 }
 0x4f1   : > { %v3256_v37 = vadd.f32 %v6566_v47, %v2853_v13 }
 0x4f3   : > { %v3272_v7 = vmul.f32 0.01, %v3256_v37  ;;  %vm3264_vm5 = vcmp.ge.f32.partialorder %v3256_v37, 0.0 }
 0x4f5   : > { %v6693_v60 = vsel %vm3264_vm5, %v3256_v37, %v3272_v7 }
 0x4f6   : > { %v3302_v47 = vsel %vm1631_vm6, %v6693_v60, -inf }
 0x4f7   : > { %3309 = vmax.xlane.f32.xlu2 %v3308_v48 }
 0x4fd   : > { %v3307_v3 = vpop.xlane.xlu0 %3306 }
 0x4fe   : > { %v6696_v30 = vmax.f32 %v6691_v36, %v3307_v3 }
 0x4ff   : > { %3303 = vmax.xlane.f32.xlu2 %v3302_v47 }
 0x500   : > { %v3329_v9 = vsub.f32 %v6691_v36, %v6696_v30  ;;  %3646 = vst.msk [vmem:[#allocation5 + $0x20] sm:$0xff] %vm3461_vm7, %v6696_v30  ;;  %3371 = vperm.xlu1 %4641, %v6696_v30  }
 0x502   : > { %v3341_v47 = vmul.f32 1.442695, %v3329_v9 }
 0x52a   : > { %3315 = vmax.xlane.f32.xlu1 %v3314_v56 }
 0x544   : > { %v3298_v8 = vpop.xlane.xlu0 %3297 }
 0x545   : > { %v3318_v49 = vmax.f32 %v3286_v57, %v3298_v8 }
 0x547   : > { %v3326_v0 = vsub.f32 %v3286_v57, %v3318_v49  ;;  %3643 = vst.msk [vmem:[#allocation5 + $0x8] sm:$0xff] %vm3461_vm7, %v3318_v49 }
 0x54e   : > { %v3301_v33 = vpop.xlane.xlu0 %3300 }
 0x54f   : > { %v3319_v27 = vmax.f32 %v3287_v14, %v3301_v33 }
 0x551   : > { %3644 = vst.msk [vmem:[#allocation5 + $0x10] sm:$0xff] %vm3461_vm7, %v3319_v27  ;;  %v3327_v12 = vsub.f32 %v3287_v14, %v3319_v27 }
 0x553   : > { %v3337_v63 = vmul.f32 1.442695, %v3327_v12 }
 0x55a   : > { %v3295_v16 = vpop.xlane.xlu1 %3294 }
 0x55b   : > { %v6716_v52 = vmax.f32 %v6713_v21, %v3295_v16 }
 0x55d   : > { %v3325_v32 = vsub.f32 %v6713_v21, %v6716_v52  ;;  %3642 = vst.msk [vmem:[#allocation5] sm:$0xff] %vm3461_vm7, %v6716_v52  ;;  %3351 = vperm.xlu2 %4639, %v6716_v52  }
 0x562   : > { %v3313_v51 = vpop.xlane.xlu2 %3312 }
 0x563   : > { %v3323_v43 = vmax.f32 %v3291_v39, %v3313_v51 }
 0x565   : > { %3648 = vst.msk [vmem:[#allocation5 + $0x30] sm:$0xff] %vm3461_vm7, %v3323_v43  ;;  %3381 = vperm.xlu1 %4641, %v3323_v43   ;;  %v3331_v59 = vsub.f32 %v3291_v39, %v3323_v43 }
 0x567   : > { %v3345_v42 = vmul.f32 1.442695, %v3331_v59 }
 0x569   : > { %4646 = vpow2.f32 %v3345_v42 }
 0x56a   : > { %v3310_v55 = vpop.xlane.xlu2 %3309  ;;  %4648 = vpow2.f32 %v3337_v63 }
 0x56b   : > { %v3322_v23 = vmax.f32 %v3290_v17, %v3310_v55 }
 0x56d   : > { %v3330_v28 = vsub.f32 %v3290_v17, %v3322_v23  ;;  %3647 = vst.msk [vmem:[#allocation5 + $0x28] sm:$0xff] %vm3461_vm7, %v3322_v23  ;;  %3376 = vperm.xlu0 %4640, %v3322_v23  }
 0x56f   : > { %v6726_v19 = vpop.eup %4646  ;;  %v3343_v22 = vmul.f32 1.442695, %v3330_v28 }
 0x570   : > { %v6729_v2 = vpop.eup %4648 }
 0x572   : > { %v3304_v24 = vpop.xlane.xlu2 %3303  ;;  %v3372_v58 = vpop.permute.xlu1 %3371 }
 0x573   : > { %v3320_v18 = vmax.f32 %v3288_v61, %v3304_v24  ;;  %v3393_v25 = vsub.f32 %v6532_v31, %v3372_v58  ;;  %v3335_v31 = vmul.f32 1.442695, %v3326_v0 }
 0x575   : > { %v3328_v15 = vsub.f32 %v3288_v61, %v3320_v18  ;;  %3645 = vst.msk [vmem:[#allocation5 + $0x18] sm:$0xff] %vm3461_vm7, %v3320_v18  ;;  %3366 = vperm.xlu1 %4641, %v3320_v18   ;;  %3356 = vperm.xlu0 %4640, %v3318_v49   ;;  %v3405_v46 = vmul.f32 1.442695, %v3393_v25 }
 0x577   : > { %4650 = vpow2.f32 %v3405_v46  ;;  %v3339_v41 = vmul.f32 1.442695, %v3328_v15 }
 0x578   : > { %4652 = vpow2.f32 %v3335_v31 }
 0x579   : > { %4654 = vpow2.f32 %v3339_v41 }
 0x57d   : > { %3519 = vperm.xlu1 %4641, %v6726_v19   ;;  %3361 = vperm.xlu0 %4640, %v3319_v27   ;;  %v4651_v38 = vpop.eup %4650 }
 0x57e   : > { %v3441_v40 = vsel %vm1631_vm6, %v4651_v38, 0.0  ;;  %v6745_v10 = vpop.eup %4652  ;;  %v3539_v0 = vpack.c.bf16 %v4651_v38, %v4651_v38 }
 0x57f   : > { %v6748_v37 = vpop.eup %4654 }
 0x580   : > { %v3588_v33 = vunpack.c.l.b16 %v3539_v0 }
 0x585   : > { %3499 = vperm.xlu1 %4641, %v6729_v2  }
 0x59d   : > { %v3316_v45 = vpop.xlane.xlu1 %3315 }
 0x59e   : > { %v6736_v53 = vmax.f32 %v6733_v20, %v3316_v45 }
 0x5a0   : > { %v3332_v62 = vsub.f32 %v6733_v20, %v6736_v53  ;;  %3649 = vst.msk [vmem:[#allocation5 + $0x38] sm:$0xff] %vm3461_vm7, %v6736_v53  ;;  %3386 = vperm.xlu2 %4639, %v6736_v53  }
 0x5a7   : > { %3442 = vadd.xlane.f32.xlu0 %v3441_v40 }
 0x5b7   : > { %v3352_v11 = vpop.permute.xlu2 %3351 }
 0x5b8   : > { %v3389_v44 = vsub.f32 %v6669_v50, %v3352_v11  ;;  %v3333_v50 = vmul.f32 1.442695, %v3325_v32 }
 0x5ba   : > { %v3397_v13 = vmul.f32 1.442695, %v3389_v44 }
 0x5bb   : > { %3494 = vperm.xlu0 %4640, %v6745_v10  }
 0x5bc   : > { %4656 = vpow2.f32 %v3397_v13 }
 0x5bd   : > { %4658 = vpow2.f32 %v3343_v22 }
 0x5be   : > { %4660 = vpow2.f32 %v3333_v50 }
 0x5bf   : > { %4662 = vpow2.f32 %v3341_v47 }
 0x5c2   : > { %v4657_v48 = vpop.eup %4656 }
 0x5c3   : > { %3504 = vperm.xlu0 %4640, %v6748_v37   ;;  %v3429_v7 = vsel %vm1631_vm6, %v4657_v48, 0.0  ;;  %v6752_v3 = vpop.eup %4658  ;;  %v3535_v51 = vpack.c.bf16 %v4657_v48, %v4657_v48  ;;  %v3417_v48 = vld [vmem:[#allocation6 + $0x20] sm:$0xff] }
 0x5c4   : > { %v6761_v29 = vpop.eup %4660 }
 0x5c5   : > { %v6765_v8 = vpop.eup %4662  ;;  %v3547_v28 = vunpack.c.l.b16 %v3535_v51 }
 0x5c9   : > { %3430 = vadd.xlane.f32.xlu2 %v3429_v7  ;;  %v3425_v7 = vmul.f32 %v6765_v8, %v3417_v48 }
 0x5cb   : > { %3514 = vperm.xlu0 %4640, %v6752_v3  }
 0x5d7   : > { %v3382_v56 = vpop.permute.xlu1 %3381 }
 0x5d8   : > { %v3395_v9 = vsub.f32 %v6681_v35, %v3382_v56 }
 0x5da   : > { %v3409_v16 = vmul.f32 1.442695, %v3395_v9  ;;  %v3418_v9 = vld [vmem:[#allocation6 + $0x28] sm:$0xff] }
 0x5db   : > { %v3426_v20 = vmul.f32 %v6752_v3, %v3418_v9 }
 0x5df   : > { %v3377_v4 = vpop.permute.xlu0 %3376 }
 0x5e0   : > { %v3394_v5 = vsub.f32 %v6687_v6, %v3377_v4  ;;  %v3347_v4 = vmul.f32 1.442695, %v3332_v62 }
 0x5e1   : > { %3489 = vperm.xlu2 %4639, %v6761_v29  }
 0x5e2   : > { %v3407_v1 = vmul.f32 1.442695, %v3394_v5 }
 0x5e4   : > { %4664 = vpow2.f32 %v3407_v1  ;;  %v3413_v1 = vld [vmem:[#allocation6] sm:$0xff] }
 0x5e5   : > { %v3421_v56 = vmul.f32 %v6761_v29, %v3413_v1 }
 0x5e7   : > { %v3357_v57 = vpop.permute.xlu0 %3356  ;;  %v3367_v21 = vpop.permute.xlu1 %3366 }
 0x5e8   : > { %v3390_v49 = vsub.f32 %v6640_v34, %v3357_v57  ;;  %v3392_v39 = vsub.f32 %v6693_v60, %v3367_v21 }
 0x5e9   : > { %3509 = vperm.xlu2 %4639, %v6765_v8  }
 0x5ea   : > { %v4665_v36 = vpop.eup %4664  ;;  %v3399_v30 = vmul.f32 1.442695, %v3390_v49  ;;  %v3403_v23 = vmul.f32 1.442695, %v3392_v39  ;;  %v3483_v39 = vld [vmem:[#allocation7 + $0x20] sm:$0xff] }
 0x5eb   : > { %v3540_v14 = vpack.c.bf16 %v4665_v36, %v4665_v36  ;;  %v3444_v6 = vsel %vm1631_vm6, %v4665_v36, 0.0 }
 0x5ec   : > { %3445 = vadd.xlane.f32.xlu1 %v3444_v6  ;;  %4666 = vpow2.f32 %v3399_v30  ;;  %v3414_v6 = vld [vmem:[#allocation6 + $0x8] sm:$0xff] }
 0x5ed   : > { %v3589_v27 = vunpack.c.l.b16 %v3540_v14  ;;  %4668 = vpow2.f32 %v3409_v16  ;;  %v3415_v16 = vld [vmem:[#allocation6 + $0x10] sm:$0xff] }
 0x5ef   : > { %v3592_v52 = vpack.c.b16 %v3589_v27, %v3588_v33  ;;  %v3362_v32 = vpop.permute.xlu0 %3361  ;;  %v6790_v8 = vpop.permute.xlu1 %3519  ;;  %v3422_v33 = vmul.f32 %v6745_v10, %v3414_v6 }
 0x5f0   : > { %v3391_v34 = vsub.f32 %v6654_v54, %v3362_v32  ;;  %v3423_v32 = vmul.f32 %v6729_v2, %v3415_v16 }
 0x5f1   : > { %4461 = vmatmul.msk.bf16.vlgmr.msrb.gmra.mxu2 %vm1631_vm6, %v3592_v52  ;;  %v3419_v52 = vld [vmem:[#allocation6 + $0x30] sm:$0xff] }
 0x5f2   : > { %v3401_v43 = vmul.f32 1.442695, %v3391_v34  ;;  %v4667_v35 = vpop.eup %4666  ;;  %v3427_v3 = vmul.f32 %v6726_v19, %v3419_v52  ;;  %v3484_v19 = vld [vmem:[#allocation7 + $0x28] sm:$0xff] }
 0x5f3   : > { %v3536_v17 = vpack.c.bf16 %v4667_v35, %v4667_v35  ;;  %v3432_v55 = vsel %vm1631_vm6, %v4667_v35, 0.0  ;;  %v4669_v42 = vpop.eup %4668 }
 0x5f4   : > { %4670 = vpow2.f32 %v3401_v43  ;;  %v3447_v15 = vsel %vm1631_vm6, %v4669_v42, 0.0  ;;  %v3541_v46 = vpack.c.bf16 %v4669_v42, %v4669_v42 }
 0x5f5   : > { %3433 = vadd.xlane.f32.xlu0 %v3432_v55  ;;  %v3548_v59 = vunpack.c.l.b16 %v3536_v17  ;;  %4672 = vpow2.f32 %v3403_v23  ;;  %v3479_v55 = vld [vmem:[#allocation7] sm:$0xff] }
 0x5f7   : > { %v3551_v61 = vpack.c.b16 %v3548_v59, %v3547_v28  ;;  %v3500_v30 = vpop.permute.xlu1 %3499 }
 0x5f9   : > { %4455 = vmatmul.msk.bf16.vlgmr.msrb.gmra.mxu1 %vm1631_vm6, %v3551_v61  ;;  %v3420_v61 = vld [vmem:[#allocation6 + $0x38] sm:$0xff] }
 0x5fa   : > { %v4671_v54 = vpop.eup %4670  ;;  %v3387_v60 = vpop.permute.xlu2 %3386 }
 0x5fb   : > { %v3396_v24 = vsub.f32 %v6707_v26, %v3387_v60  ;;  %v3435_v18 = vsel %vm1631_vm6, %v4671_v54, 0.0  ;;  %v4673_v63 = vpop.eup %4672  ;;  %v3537_v58 = vpack.c.bf16 %v4671_v54, %v4671_v54  ;;  %v3590_v26 = vunpack.c.l.b16 %v3541_v46 }
 0x5fc   : > { %3436 = vadd.xlane.f32.xlu1 %v3435_v18  ;;  %v3538_v25 = vpack.c.bf16 %v4673_v63, %v4673_v63  ;;  %v3438_v22 = vsel %vm1631_vm6, %v4673_v63, 0.0 }
 0x5fd   : > { %v3411_v12 = vmul.f32 1.442695, %v3396_v24  ;;  %3448 = vadd.xlane.f32.xlu0 %v3447_v15  ;;  %v3549_v45 = vunpack.c.l.b16 %v3537_v58  ;;  %v3480_v24 = vld [vmem:[#allocation7 + $0x8] sm:$0xff] }
 0x5fe   : > { %v3550_v40 = vunpack.c.l.b16 %v3538_v25 }
 0x5ff   : > { %4674 = vpow2.f32 %v3411_v12 }
 0x600   : > { %v3552_v44 = vpack.c.b16 %v3550_v40, %v3549_v45  ;;  %4676 = vpow2.f32 %v3347_v4  ;;  %v3416_v45 = vld [vmem:[#allocation6 + $0x18] sm:$0xff] }
 0x601   : > { %v3424_v40 = vmul.f32 %v6748_v37, %v3416_v45  ;;  %v3486_v37 = vld [vmem:[#allocation7 + $0x38] sm:$0xff] }
 0x605   : > { %v4675_v38 = vpop.eup %4674 }
 0x606   : > { %v3542_v31 = vpack.c.bf16 %v4675_v38, %v4675_v38  ;;  %v3450_v11 = vsel %vm1631_vm6, %v4675_v38, 0.0  ;;  %v4677_v5 = vpop.eup %4676  ;;  %v3481_v38 = vld [vmem:[#allocation7 + $0x10] sm:$0xff] }
 0x607   : > { %3451 = vadd.xlane.f32.xlu1 %v3450_v11  ;;  %v3428_v54 = vmul.f32 %v4677_v5, %v3420_v61  ;;  %v3529_v11 = vmul.f32 %v3500_v30, %v3481_v38 }
 0x608   : > { %v3591_v41 = vunpack.c.l.b16 %v3542_v31 }
 0x609   : > { %4456 = vmatmul.msk.bf16.gmra.mxu1 %vm1631_vm6, %v3552_v44 }
 0x60a   : > { %v3593_v13 = vpack.c.b16 %v3591_v41, %v3590_v26 }
 0x60c   : > { %4462 = vmatmul.msk.bf16.gmra.mxu2 %vm1631_vm6, %v3593_v13  ;;  %vm3633_vm6 = vcmask 261120   ;;  %v3485_v13 = vld [vmem:[#allocation7 + $0x30] sm:$0xff] }
 0x60d   : > { %v3533_v48 = vmul.f32 %v6790_v8, %v3485_v13 }
 0x612   : > { %3439 = vadd.xlane.f32.xlu2 %v3438_v22  ;;  %v3482_v22 = vld [vmem:[#allocation7 + $0x18] sm:$0xff] }
 0x61a   : > { %v3443_v50 = vpop.xlane.xlu0 %3442 }
 0x61b   : > { %v3457_v47 = vadd.f32 %v3443_v50, %v3425_v7 }
 0x61d   : > { %3466 = vst.msk [vmem:[#allocation6 + $0x20] sm:$0xff] %vm3461_vm7, %v3457_v47 }
 0x62a   : > { %3524 = vperm.xlu2 %4639, %v4677_v5  }
 0x62d   : > { %v3495_v0 = vpop.permute.xlu0 %3494 }
 0x62e   : > { %v3528_v58 = vmul.f32 %v3495_v0, %v3480_v24 }
 0x635   : > { %v6792_v36 = vpop.permute.xlu0 %3504 }
 0x636   : > { %v3530_v7 = vmul.f32 %v6792_v36, %v3482_v22 }
 0x63c   : > { %v3431_v57 = vpop.xlane.xlu2 %3430 }
 0x63d   : > { %v3453_v49 = vadd.f32 %v3431_v57, %v3421_v56  ;;  %v3515_v62 = vpop.permute.xlu0 %3514 }
 0x63e   : > { %v3532_v18 = vmul.f32 %v3515_v62, %v3484_v19 }
 0x63f   : > { %3462 = vst.msk [vmem:[#allocation6] sm:$0xff] %vm3461_vm7, %v3453_v49 }
 0x644   : > { %v3490_v29 = vpop.permute.xlu2 %3489 }
 0x645   : > { %v3527_v59 = vmul.f32 %v3490_v29, %v3479_v55 }
 0x64c   : > { %v3510_v51 = vpop.permute.xlu2 %3509 }
 0x64d   : > { %v3531_v10 = vmul.f32 %v3510_v51, %v3483_v39 }
 0x65f   : > { %v3446_v53 = vpop.xlane.xlu1 %3445 }
 0x660   : > { %v3458_v14 = vadd.f32 %v3446_v53, %v3426_v20 }
 0x662   : > { %3467 = vst.msk [vmem:[#allocation6 + $0x28] sm:$0xff] %vm3461_vm7, %v3458_v14 }
 0x668   : > { %v3434_v27 = vpop.xlane.xlu0 %3433 }
 0x669   : > { %v3454_v21 = vadd.f32 %v3434_v27, %v3422_v33 }
 0x66b   : > { %3463 = vst.msk [vmem:[#allocation6 + $0x8] sm:$0xff] %vm3461_vm7, %v3454_v21 }
 0x66f   : > { %v3437_v34 = vpop.xlane.xlu1 %3436 }
 0x670   : > { %v3455_v43 = vadd.f32 %v3437_v34, %v3423_v32  ;;  %v3449_v35 = vpop.xlane.xlu0 %3448 }
 0x671   : > { %v3459_v17 = vadd.f32 %v3449_v35, %v3427_v3 }
 0x672   : > { %3464 = vst.msk [vmem:[#allocation6 + $0x10] sm:$0xff] %vm3461_vm7, %v3455_v43 }
 0x673   : > { %3468 = vst.msk [vmem:[#allocation6 + $0x30] sm:$0xff] %vm3461_vm7, %v3459_v17 }
 0x674   : > { %v3615_v23 = vpop.f32.mrf.mxu2 }
 0x675   : > { %v3629_v28 = vadd.f32 %v3615_v23, %v3531_v10 }
 0x676   : > { %v3574_v2 = vpop.f32.mrf.mxu1 }
 0x677   : > { %3638 = vst.msk [vmem:[#allocation7 + $0x20] sm:$0xff] %vm3633_vm6, %v3629_v28  ;;  %v3625_v42 = vadd.f32 %v3574_v2, %v3527_v59 }
 0x679   : > { %3634 = vst.msk [vmem:[#allocation7] sm:$0xff] %vm3633_vm6, %v3625_v42 }
 0x67a   : > { %v3452_v60 = vpop.xlane.xlu1 %3451 }
 0x67b   : > { %v3460_v15 = vadd.f32 %v3452_v60, %v3428_v54 }
 0x67c   : > { %v3617_v12 = vpop.f32.mrf.mxu2 }
 0x67d   : > { %3469 = vst.msk [vmem:[#allocation6 + $0x38] sm:$0xff] %vm3461_vm7, %v3460_v15  ;;  %v3630_v63 = vadd.f32 %v3617_v12, %v3532_v18 }
 0x67e   : > { %v3576_v25 = vpop.f32.mrf.mxu1 }
 0x67f   : > { %3639 = vst.msk [vmem:[#allocation7 + $0x28] sm:$0xff] %vm3633_vm6, %v3630_v63  ;;  %v3626_v46 = vadd.f32 %v3576_v25, %v3528_v58 }
 0x681   : > { %3635 = vst.msk [vmem:[#allocation7 + $0x8] sm:$0xff] %vm3633_vm6, %v3626_v46 }
 0x685   : > { %v3440_v31 = vpop.xlane.xlu2 %3439 }
 0x686   : > { %v3456_v26 = vadd.f32 %v3440_v31, %v3424_v40  ;;  %v3579_v41 = vpop.f32.mrf.mxu1 }
 0x687   : > { %v3627_v44 = vadd.f32 %v3579_v41, %v3529_v11 }
 0x688   : > { %3465 = vst.msk [vmem:[#allocation6 + $0x18] sm:$0xff] %vm3461_vm7, %v3456_v26 }
 0x689   : > { %3636 = vst.msk [vmem:[#allocation7 + $0x10] sm:$0xff] %vm3633_vm6, %v3627_v44 }
 0x68d   : > { %v3525_v1 = vpop.permute.xlu2 %3524 }
 0x68e   : > { %v3581_v50 = vpop.f32.mrf.mxu1  ;;  %v3534_v56 = vmul.f32 %v3525_v1, %v3486_v37 }
 0x68f   : > { %v3620_v47 = vpop.f32.mrf.mxu2  ;;  %v3628_v4 = vadd.f32 %v3581_v50, %v3530_v7 }
 0x690   : > { %v3631_v5 = vadd.f32 %v3620_v47, %v3533_v48 }
 0x691   : > { %3637 = vst.msk [vmem:[#allocation7 + $0x18] sm:$0xff] %vm3633_vm6, %v3628_v4 }
 0x692   : > { %3640 = vst.msk [vmem:[#allocation7 + $0x30] sm:$0xff] %vm3633_vm6, %v3631_v5 }
 0x696   : > { %3653 = sbr.rel (%p4463_p5) target bundleno = 2414 (0x96e), region = 130 }
 0x697   : > { %v3622_v57 = vpop.f32.mrf.mxu2 }
 0x698   : > { %v3632_v49 = vadd.f32 %v3622_v57, %v3534_v56 }
 0x69a   : > { %3641 = vst.msk [vmem:[#allocation7 + $0x38] sm:$0xff] %vm3633_vm6, %v3632_v49 }
 0x69b   : > { %v3658_v0 = vld [vmem:[#allocation6 + $0x20] sm:$0xff]  ;;  %v6816_v36 = vld [vmem:[#allocation6 + $0x28] sm:$0xff]  ;;  %v4841_v30 = vmov 0   ;;  %v6821_v53 = vld [vmem:[#allocation6 + $0x10] sm:$0xff] }
 0x69c   : > { %v3654_v8 = vld [vmem:[#allocation6] sm:$0xff]  ;;  %4683 = vset.pattern.permute.xlu1 %v4841_v30  ;;  %4682 = vset.pattern.permute.xlu0 %v4841_v30  ;;  %4689 = vrcp.f32 %v3658_v0  ;;  %v6818_v9 = vld [vmem:[#allocation6 + $0x8] sm:$0xff]  ;;  %v3731_v20 = vand.u32 2147483647, %v3658_v0  ;;  %v3733_v62 = vand.u32 2147483648, %v3658_v0  ;;  %v6824_v29 = vld [vmem:[#allocation6 + $0x18] sm:$0xff]  ;;  %vm3727_vm9 = vweird.f32 %v3658_v0 }
 0x69d   : > { %4691 = vrcp.f32 %v3654_v8  ;;  %4684 = vset.pattern.permute.xlu2 %v4841_v30  ;;  %v3671_v14 = vand.u32 2147483647, %v3654_v8  ;;  %v3673_v6 = vand.u32 2147483648, %v3654_v8  ;;  %vm3667_vm11 = vweird.f32 %v3654_v8  ;;  %v6833_v32 = vld [vmem:[#allocation6 + $0x30] sm:$0xff]  ;;  %v3661_v37 = vld [vmem:[#allocation6 + $0x38] sm:$0xff] }
 0x69e   : > { %4693 = vrcp.f32 %v6816_v36  ;;  %vm6827_vm10 = vcmp.eq.f32.partialorder %v3731_v20, 8.507059e+37  ;;  %v3734_v52 = vor.u32 1.1754944e-38, %v3733_v62  ;;  %vm3742_vm12 = vweird.f32 %v6816_v36 }
 0x69f   : > { %4695 = vrcp.f32 %v6818_v9  ;;  %vm6837_vm13 = vcmp.eq.f32.partialorder %v3671_v14, 8.507059e+37  ;;  %v3674_v51 = vor.u32 1.1754944e-38, %v3673_v6  ;;  %v3746_v43 = vand.u32 2147483647, %v6816_v36 }
 0x6a0   : > { %4697 = vrcp.f32 %v6821_v53  ;;  %v3748_v55 = vand.u32 2147483648, %v6816_v36  ;;  %vm3682_vm0 = vweird.f32 %v6818_v9  ;;  %v3686_v19 = vand.u32 2147483647, %v6818_v9 }
 0x6a1   : > { %4699 = vrcp.f32 %v6824_v29  ;;  %vm6859_vm2 = vcmp.eq.f32.partialorder %v3746_v43, 8.507059e+37  ;;  %v3688_v24 = vand.u32 2147483648, %v6818_v9  ;;  %vm3697_vm8 = vweird.f32 %v6821_v53  ;;  %v3805_v4 = vld [vmem:[#allocation7 + $0x38] sm:$0xff] }
 0x6a2   : > { %v4690_v33 = vpop.eup %4689  ;;  %4701 = vrcp.f32 %v6833_v32  ;;  %v3749_v11 = vor.u32 1.1754944e-38, %v3748_v55  ;;  %v3761_v57 = vand.u32 2147483647, %v6833_v32  ;;  %v3701_v30 = vand.u32 2147483647, %v6821_v53 }
 0x6a3   : > { %v4692_v21 = vpop.eup %4691  ;;  %v3723_v16 = vmul.f32 %v4690_v33, %v3658_v0  ;;  %vm3728_vm14 = vweird.f32 %v4690_v33  ;;  %v3689_v1 = vor.u32 1.1754944e-38, %v3688_v24  ;;  %4703 = vrcp.f32 %v3661_v37 }
 0x6a4   : > { %v6835_v34 = vpop.eup %4693  ;;  %v3663_v3 = vmul.f32 %v4692_v21, %v3654_v8  ;;  %vm3668_vm15 = vweird.f32 %v4692_v21  ;;  %vm6855_vm1 = vmor %vm3727_vm9, %vm3728_vm14  ;;  %v3763_v8 = vand.u32 2147483648, %v6833_v32  ;;  %v3703_v20 = vand.u32 2147483648, %v6821_v53 }
 0x6a5   : > { %v3724_v35 = vsub.f32 1.0, %v3723_v16  ;;  %v3738_v17 = vmul.f32 %v6835_v34, %v6816_v36  ;;  %v6845_v10 = vpop.eup %4695  ;;  %vm6870_vm3 = vmor %vm3667_vm11, %vm3668_vm15  ;;  %vm3743_vm4 = vweird.f32 %v6835_v34  ;;  %vm3757_vm11 = vweird.f32 %v6833_v32 }
 0x6a6   : > { %v3664_v23 = vsub.f32 1.0, %v3663_v3  ;;  %v6849_v28 = vpop.eup %4697  ;;  %v3678_v2 = vmul.f32 %v6845_v10, %v6818_v9  ;;  %vm3683_vm5 = vweird.f32 %v6845_v10  ;;  %vm6889_vm7 = vmor %vm3742_vm12, %vm3743_vm4  ;;  %vm3712_vm14 = vweird.f32 %v6824_v29 }
 0x6a7   : > { %v3725_v59 = vmul.f32 %v4690_v33, %v3724_v35  ;;  %v3739_v61 = vsub.f32 1.0, %v3738_v17  ;;  %v3693_v18 = vmul.f32 %v6849_v28, %v6821_v53  ;;  %v6866_v15 = vpop.eup %4699  ;;  %vm6901_vm9 = vmor %vm3682_vm0, %vm3683_vm5  ;;  %v3718_v6 = vand.u32 2147483648, %v6824_v29 }
 0x6a8   : > { %v3665_v54 = vmul.f32 %v4692_v21, %v3664_v23  ;;  %v3679_v25 = vsub.f32 1.0, %v3678_v2  ;;  %v3708_v38 = vmul.f32 %v6866_v15, %v6824_v29  ;;  %v4702_v41 = vpop.eup %4701  ;;  %vm3713_vm15 = vweird.f32 %v6866_v15 }
 0x6a9   : > { %v3726_v12 = vadd.f32 %v4690_v33, %v3725_v59  ;;  %v3740_v58 = vmul.f32 %v6835_v34, %v3739_v61  ;;  %v3694_v45 = vsub.f32 1.0, %v3693_v18  ;;  %v3753_v5 = vmul.f32 %v4702_v41, %v6833_v32  ;;  %v4704_v43 = vpop.eup %4703  ;;  %v4524_v18 = vld [vmem:[#allocation2 + $0x10] sm:$0xff]  }
 0x6aa   : > { %v3666_v46 = vadd.f32 %v4692_v21, %v3665_v54  ;;  %v3680_v26 = vmul.f32 %v6845_v10, %v3679_v25  ;;  %v3709_v48 = vsub.f32 1.0, %v3708_v38  ;;  %vm3758_vm12 = vweird.f32 %v4702_v41  ;;  %v3798_v25 = vld [vmem:[#allocation7] sm:$0xff] }
 0x6ab   : > { %v3730_v40 = vsel %vm6855_vm1, %v4690_v33, %v3726_v12  ;;  %v3741_v31 = vadd.f32 %v6835_v34, %v3740_v58  ;;  %v3695_v56 = vmul.f32 %v6849_v28, %v3694_v45  ;;  %v3754_v0 = vsub.f32 1.0, %v3753_v5  ;;  %vm6931_vm0 = vmor %vm3757_vm11, %vm3758_vm12  ;;  %v3802_v12 = vld [vmem:[#allocation7 + $0x20] sm:$0xff] }
 0x6ac   : > { %v3735_v44 = vsel %vm6827_vm10, %v3734_v52, %v3730_v40  ;;  %v3670_v13 = vsel %vm6870_vm3, %v4692_v21, %v3666_v46  ;;  %v3681_v50 = vadd.f32 %v6845_v10, %v3680_v26  ;;  %vm6905_vm10 = vcmp.eq.f32.partialorder %v3686_v19, 8.507059e+37  ;;  %vm6948_vm3 = vmor %vm3712_vm14, %vm3713_vm15 }
 0x6ad   : > { %3828 = vperm.xlu0 %4682, %v3735_v44   ;;  %v3675_v7 = vsel %vm6837_vm13, %v3674_v51, %v3670_v13  ;;  %v3745_v49 = vsel %vm6889_vm7, %v6835_v34, %v3741_v31  ;;  %v3710_v9 = vmul.f32 %v6866_v15, %v3709_v48  ;;  %vm3698_vm13 = vweird.f32 %v6849_v28  ;;  %v3803_v13 = vld [vmem:[#allocation7 + $0x28] sm:$0xff] }
 0x6ae   : > { %3808 = vperm.xlu1 %4683, %v3675_v7   ;;  %v3685_v36 = vsel %vm6901_vm9, %v6845_v10, %v3681_v50  ;;  %v3755_v62 = vmul.f32 %v4702_v41, %v3754_v0  ;;  %v3750_v14 = vsel %vm6859_vm2, %v3749_v11, %v3745_v49  ;;  %v3764_v27 = vor.u32 1.1754944e-38, %v3763_v8  ;;  %vm6940_vm2 = vmor %vm3697_vm8, %vm3698_vm13  ;;  %v3799_v48 = vld [vmem:[#allocation7 + $0x8] sm:$0xff]  ;;  %v4525_v7 = vld [vmem:[#allocation2 + $0x18] sm:$0xff]  }
 0x6af   : > { %v3690_v21 = vsel %vm6905_vm10, %v3689_v1, %v3685_v36  ;;  %v3696_v16 = vadd.f32 %v6849_v28, %v3695_v56  ;;  %vm3762_vm1 = vcmp.eq.f32.partialorder %v3761_v57, 8.507059e+37  ;;  %v3711_v32 = vadd.f32 %v6866_v15, %v3710_v9 }
 0x6b0   : > { %v3756_v52 = vadd.f32 %v4702_v41, %v3755_v62  ;;  %v3716_v3 = vand.u32 2147483647, %v6824_v29  ;;  %v3704_v53 = vor.u32 1.1754944e-38, %v3703_v20  ;;  %vm3702_vm4 = vcmp.eq.f32.partialorder %v3701_v30, 8.507059e+37  ;;  %v4523_v20 = vld [vmem:[#allocation2 + $0x8] sm:$0xff]  }
 0x6b1   : > { %v3700_v17 = vsel %vm6940_vm2, %v6849_v28, %v3696_v16  ;;  %v3719_v55 = vor.u32 1.1754944e-38, %v3718_v6  ;;  %v3768_v10 = vmul.f32 %v4704_v43, %v3661_v37  ;;  %v3715_v29 = vsel %vm6948_vm3, %v6866_v15, %v3711_v32  ;;  %v4508_v15 = vld [vmem:[#allocation2] sm:$0xff]   ;;  %v3800_v6 = vld [vmem:[#allocation7 + $0x10] sm:$0xff] }
 0x6b2   : > { %v3760_v51 = vsel %vm6931_vm0, %v4702_v41, %v3756_v52  ;;  %vm3717_vm5 = vcmp.eq.f32.partialorder %v3716_v3, 8.507059e+37  ;;  %v3778_v23 = vand.u32 2147483648, %v3661_v37  ;;  %vm3772_vm7 = vweird.f32 %v3661_v37  ;;  %v3801_v32 = vld [vmem:[#allocation7 + $0x18] sm:$0xff] }
 0x6b3   : > { %v3765_v35 = vsel %vm3762_vm1, %v3764_v27, %v3760_v51  ;;  %v3769_v59 = vsub.f32 1.0, %v3768_v10  ;;  %vm3773_vm8 = vweird.f32 %v4704_v43  ;;  %v3776_v61 = vand.u32 2147483647, %v3661_v37  ;;  %v3804_v37 = vld [vmem:[#allocation7 + $0x30] sm:$0xff] }
 0x6b4   : > { %3838 = vperm.xlu2 %4684, %v3765_v35   ;;  %v3705_v2 = vsel %vm3702_vm4, %v3704_v53, %v3700_v17  ;;  %v3720_v19 = vsel %vm3717_vm5, %v3719_v55, %v3715_v29  ;;  %vm3774_vm9 = vmor %vm3772_vm7, %vm3773_vm8  ;;  %v3779_v54 = vor.u32 1.1754944e-38, %v3778_v23  ;;  %v4517_v58 = vunpack.c.l.bf16 %v4524_v18 }
 0x6b5   : > { %3833 = vperm.xlu0 %4682, %v3750_v14   ;;  %v3770_v42 = vmul.f32 %v4704_v43, %v3769_v59  ;;  %vm3777_vm10 = vcmp.eq.f32.partialorder %v3776_v61, 8.507059e+37  ;;  %v4509_v45 = vunpack.c.l.bf16 %v4508_v15  ;;  %v4518_v22 = vunpack.c.h.bf16 %v4524_v18 }
 0x6b6   : > { %3813 = vperm.xlu1 %4683, %v3690_v21   ;;  %v4510_v47 = vunpack.c.h.bf16 %v4508_v15  ;;  %v4522_v0 = vunpack.c.h.bf16 %v4525_v7  ;;  %v4521_v36 = vunpack.c.l.bf16 %v4525_v7  ;;  %v4513_v27 = vunpack.c.l.bf16 %v4523_v20 }
 0x6b7   : > { %v3771_v28 = vadd.f32 %v4704_v43, %v3770_v42  ;;  %v4514_v53 = vunpack.c.h.bf16 %v4523_v20  ;;  %v4842_v10 = vmov 32.0  }
 0x6b8   : > { %4705 = vrcp.f32 %v4842_v10 }
 0x6b9   : > { %v3775_v60 = vsel %vm3774_vm9, %v4704_v43, %v3771_v28 }
 0x6ba   : > { %v3780_v24 = vsel %vm3777_vm10, %v3779_v54, %v3775_v60 }
 0x6bc   : > { %3843 = vperm.xlu2 %4684, %v3780_v24  }
 0x6bd   : > { %3818 = vperm.xlu0 %4682, %v3705_v2  }
 0x6be   : > { %3823 = vperm.xlu1 %4683, %v3720_v19   ;;  %v4706_v29 = vpop.eup %4705 }
 0x6bf   : > { %v3887_v23 = vmul.f32 32.0, %v4706_v29  ;;  %vm3891_vm11 = vweird.f32 %v4706_v29 }
 0x6c1   : > { %v3888_v59 = vsub.f32 1.0, %v3887_v23 }
 0x6c3   : > { %v3889_v61 = vmul.f32 %v4706_v29, %v3888_v59 }
 0x6c5   : > { %v3890_v2 = vadd.f32 %v4706_v29, %v3889_v61 }
 0x6c7   : > { %v6992_v19 = vsel %vm3891_vm11, %v4706_v29, %v3890_v2 }
 0x70e   : > { %v3839_v63 = vpop.permute.xlu2 %3838 }
 0x70f   : > { %v3852_v30 = vmul.f32 %v3839_v63, %v3804_v37 }
 0x711   : > { %v6978_v21 = vadd.f32 %v4521_v36, %v3852_v30 }
 0x713   : > { %v3880_v51 = vsel %vm3633_vm6, %v6978_v21, 0.0 }
 0x716   : > { %v3844_v5 = vpop.permute.xlu2 %3843 }
 0x717   : > { %v3853_v8 = vmul.f32 %v3844_v5, %v3805_v4 }
 0x719   : > { %v6976_v33 = vadd.f32 %v4522_v0, %v3853_v8 }
 0x71b   : > { %v3883_v39 = vsel %vm3633_vm6, %v6976_v33, 0.0 }
 0x71f   : > { %v3829_v46 = vpop.permute.xlu0 %3828 }
 0x720   : > { %v3850_v38 = vmul.f32 %v3829_v46, %v3802_v12  ;;  %v3809_v40 = vpop.permute.xlu1 %3808 }
 0x721   : > { %v3846_v31 = vmul.f32 %v3809_v40, %v3798_v25 }
 0x722   : > { %v6960_v11 = vadd.f32 %v4517_v58, %v3850_v38 }
 0x723   : > { %v6962_v26 = vadd.f32 %v4509_v45, %v3846_v31 }
 0x724   : > { %v3874_v41 = vsel %vm3633_vm6, %v6960_v11, 0.0 }
 0x725   : > { %3875 = vadd.xlane.f32.xlu2 %v3874_v41  ;;  %v3862_v44 = vsel %vm3633_vm6, %v6962_v26, 0.0 }
 0x726   : > { %3863 = vadd.xlane.f32.xlu1 %v3862_v44 }
 0x727   : > { %v3834_v50 = vpop.permute.xlu0 %3833 }
 0x728   : > { %v3851_v1 = vmul.f32 %v3834_v50, %v3803_v13  ;;  %v3814_v56 = vpop.permute.xlu1 %3813 }
 0x729   : > { %v3847_v57 = vmul.f32 %v3814_v56, %v3799_v48 }
 0x72a   : > { %v6968_v49 = vadd.f32 %v4518_v22, %v3851_v1 }
 0x72b   : > { %v6970_v9 = vadd.f32 %v4510_v47, %v3847_v57 }
 0x72c   : > { %v3877_v62 = vsel %vm3633_vm6, %v6968_v49, 0.0 }
 0x72d   : > { %3878 = vadd.xlane.f32.xlu0 %v3877_v62  ;;  %v3865_v14 = vsel %vm3633_vm6, %v6970_v9, 0.0 }
 0x72e   : > { %3866 = vadd.xlane.f32.xlu2 %v3865_v14 }
 0x72f   : > { %v3819_v16 = vpop.permute.xlu0 %3818 }
 0x730   : > { %v3848_v52 = vmul.f32 %v3819_v16, %v3800_v6  ;;  %v3824_v3 = vpop.permute.xlu1 %3823 }
 0x731   : > { %v3849_v35 = vmul.f32 %v3824_v3, %v3801_v32 }
 0x732   : > { %v6980_v34 = vadd.f32 %v4513_v27, %v3848_v52 }
 0x733   : > { %v6988_v17 = vadd.f32 %v4514_v53, %v3849_v35  ;;  %v4501_v35 = vld [vmem:[%s7248_s12] sm:$0xff] }
 0x734   : > { %v3868_v43 = vsel %vm3633_vm6, %v6980_v34, 0.0 }
 0x735   : > { %3884 = vadd.xlane.f32.xlu0 %v3883_v39  ;;  %3869 = vadd.xlane.f32.xlu1 %v3868_v43  ;;  %v3871_v55 = vsel %vm3633_vm6, %v6988_v17, 0.0 }
 0x736   : > { %3881 = vadd.xlane.f32.xlu2 %v3880_v51  ;;  %v4502_v51 = vld [vmem:[%s7248_s12 + $0x8] sm:$0xff] }
 0x737   : > { %4111 = vmatpush.bf16.msra.mxu0 %v4502_v51  ;;  %4535 = vmatpush.bf16.msra.mxu2 %v4502_v51 }
 0x73b   : > { %4112 = vmatpush.bf16.msra.mxu0 %v4501_v35  ;;  %4536 = vmatpush.bf16.msra.mxu2 %v4501_v35 }
 0x73e   : > { %3872 = vadd.xlane.f32.xlu2 %v3871_v55 }
 0x798   : > { %v3876_v42 = vpop.xlane.xlu2 %3875 }
 0x799   : > { %v3897_v54 = vmul.f32 %v6992_v19, %v3876_v42  ;;  %v3864_v28 = vpop.xlane.xlu1 %3863 }
 0x79a   : > { %v3893_v60 = vmul.f32 %v6992_v19, %v3864_v28 }
 0x79b   : > { %v6997_v24 = vsub.f32 %v6960_v11, %v3897_v54 }
 0x79c   : > { %v7000_v18 = vsub.f32 %v6962_v26, %v3893_v60 }
 0x79d   : > { %v3913_v15 = vmul.f32 %v6997_v24, %v6997_v24 }
 0x79e   : > { %v3909_v12 = vmul.f32 %v7000_v18, %v7000_v18 }
 0x79f   : > { %v3929_v63 = vsel %vm3633_vm6, %v3913_v15, 0.0 }
 0x7a0   : > { %3930 = vadd.xlane.f32.xlu0 %v3929_v63  ;;  %v3879_v58 = vpop.xlane.xlu0 %3878  ;;  %v3917_v25 = vsel %vm3633_vm6, %v3909_v12, 0.0 }
 0x7a1   : > { %v3898_v46 = vmul.f32 %v6992_v19, %v3879_v58  ;;  %v3867_v45 = vpop.xlane.xlu2 %3866  ;;  %3918 = vadd.xlane.f32.xlu2 %v3917_v25 }
 0x7a2   : > { %v3894_v38 = vmul.f32 %v6992_v19, %v3867_v45 }
 0x7a3   : > { %v7011_v40 = vsub.f32 %v6968_v49, %v3898_v46 }
 0x7a4   : > { %v7014_v31 = vsub.f32 %v6970_v9, %v3894_v38 }
 0x7a5   : > { %v3914_v41 = vmul.f32 %v7011_v40, %v7011_v40 }
 0x7a6   : > { %v3910_v44 = vmul.f32 %v7014_v31, %v7014_v31 }
 0x7a7   : > { %v3932_v13 = vsel %vm3633_vm6, %v3914_v41, 0.0 }
 0x7a8   : > { %v3885_v22 = vpop.xlane.xlu0 %3884  ;;  %3933 = vadd.xlane.f32.xlu1 %v3932_v13  ;;  %v3920_v48 = vsel %vm3633_vm6, %v3910_v44, 0.0  ;;  %v3870_v7 = vpop.xlane.xlu1 %3869 }
 0x7a9   : > { %v3900_v50 = vmul.f32 %v6992_v19, %v3885_v22  ;;  %3921 = vadd.xlane.f32.xlu0 %v3920_v48  ;;  %v3882_v47 = vpop.xlane.xlu2 %3881  ;;  %v3895_v4 = vmul.f32 %v6992_v19, %v3870_v7 }
 0x7aa   : > { %v3899_v5 = vmul.f32 %v6992_v19, %v3882_v47 }
 0x7ab   : > { %v7026_v37 = vsub.f32 %v6976_v33, %v3900_v50  ;;  %v7029_v1 = vsub.f32 %v6980_v34, %v3895_v4 }
 0x7ac   : > { %v7032_v56 = vsub.f32 %v6978_v21, %v3899_v5 }
 0x7ad   : > { %v3916_v57 = vmul.f32 %v7026_v37, %v7026_v37  ;;  %v3911_v0 = vmul.f32 %v7029_v1, %v7029_v1 }
 0x7ae   : > { %v3915_v8 = vmul.f32 %v7032_v56, %v7032_v56 }
 0x7af   : > { %v3938_v36 = vsel %vm3633_vm6, %v3916_v57, 0.0  ;;  %v3923_v30 = vsel %vm3633_vm6, %v3911_v0, 0.0 }
 0x7b0   : > { %v3935_v20 = vsel %vm3633_vm6, %v3915_v8, 0.0  ;;  %3939 = vadd.xlane.f32.xlu2 %v3938_v36 }
 0x7b1   : > { %3936 = vadd.xlane.f32.xlu1 %v3935_v20  ;;  %v3873_v62 = vpop.xlane.xlu2 %3872  ;;  %3924 = vadd.xlane.f32.xlu0 %v3923_v30 }
 0x7b2   : > { %v3896_v14 = vmul.f32 %v6992_v19, %v3873_v62 }
 0x7b4   : > { %v7045_v6 = vsub.f32 %v6988_v17, %v3896_v14 }
 0x7b6   : > { %v3912_v27 = vmul.f32 %v7045_v6, %v7045_v6 }
 0x7b8   : > { %v3926_v16 = vsel %vm3633_vm6, %v3912_v27, 0.0 }
 0x7b9   : > { %3927 = vadd.xlane.f32.xlu1 %v3926_v16 }
 0x813   : > { %v3931_v52 = vpop.xlane.xlu0 %3930 }
 0x814   : > { %v3945_v32 = vmul.f32 %v3931_v52, %v6992_v19  ;;  %v3919_v3 = vpop.xlane.xlu2 %3918 }
 0x815   : > { %v3941_v39 = vmul.f32 %v3919_v3, %v6992_v19 }
 0x816   : > { %v3953_v43 = vadd.f32 1e-05, %v3945_v32 }
 0x817   : > { %v3949_v53 = vadd.f32 1e-05, %v3941_v39 }
 0x818   : > { %4707 = vrsqrt.f32 %v3953_v43  ;;  %vm4003_vm14 = vweird.f32 %v3953_v43 }
 0x819   : > { %4709 = vrsqrt.f32 %v3949_v53  ;;  %vm3963_vm0 = vweird.f32 %v3949_v53 }
 0x81b   : > { %v3934_v55 = vpop.xlane.xlu1 %3933 }
 0x81c   : > { %v3922_v10 = vpop.xlane.xlu0 %3921  ;;  %v3946_v29 = vmul.f32 %v3934_v55, %v6992_v19 }
 0x81d   : > { %v3942_v23 = vmul.f32 %v3922_v10, %v6992_v19 }
 0x81e   : > { %v4708_v59 = vpop.eup %4707  ;;  %v3954_v61 = vadd.f32 1e-05, %v3946_v29 }
 0x81f   : > { %v4710_v2 = vpop.eup %4709  ;;  %v3998_v42 = vmul.f32 %v4708_v59, %v3953_v43  ;;  %v3950_v54 = vadd.f32 1e-05, %v3942_v23  ;;  %vm4004_vm12 = vweird.f32 %v4708_v59  ;;  %v7090_v43 = vld [vmem:[%s7309_s21] ss:$0 sm:$0xff] }
 0x820   : > { %v3958_v28 = vmul.f32 %v4710_v2, %v3949_v53  ;;  %4711 = vrsqrt.f32 %v3954_v61  ;;  %vm3964_vm13 = vweird.f32 %v4710_v2  ;;  %vm7069_vm15 = vmor %vm4003_vm14, %vm4004_vm12  ;;  %vm4013_vm4 = vweird.f32 %v3954_v61 }
 0x821   : > { %v3999_v60 = vmul.f32 %v4708_v59, %v3998_v42  ;;  %4713 = vrsqrt.f32 %v3950_v54  ;;  %vm7075_vm1 = vmor %vm3963_vm0, %vm3964_vm13  ;;  %vm3973_vm5 = vweird.f32 %v3950_v54 }
 0x822   : > { %v3959_v15 = vmul.f32 %v4710_v2, %v3958_v28 }
 0x823   : > { %v4000_v12 = vmul.f32 0.5, %v3999_v60  ;;  %v3940_v63 = vpop.xlane.xlu2 %3939 }
 0x824   : > { %v3960_v58 = vmul.f32 0.5, %v3959_v15  ;;  %v3948_v25 = vmul.f32 %v3940_v63, %v6992_v19  ;;  %v3925_v46 = vpop.xlane.xlu0 %3924  ;;  %v3937_v45 = vpop.xlane.xlu1 %3936 }
 0x825   : > { %v4001_v38 = vsub.f32 1.5, %v4000_v12  ;;  %v3943_v41 = vmul.f32 %v3925_v46, %v6992_v19  ;;  %v3947_v48 = vmul.f32 %v3937_v45, %v6992_v19 }
 0x826   : > { %v4712_v44 = vpop.eup %4711  ;;  %v3961_v13 = vsub.f32 1.5, %v3960_v58  ;;  %v7062_v22 = vadd.f32 1e-05, %v3948_v25 }
 0x827   : > { %v4714_v7 = vpop.eup %4713  ;;  %v4002_v50 = vmul.f32 %v4708_v59, %v4001_v38  ;;  %v4008_v47 = vmul.f32 %v4712_v44, %v3954_v61  ;;  %v7065_v4 = vadd.f32 1e-05, %v3943_v41  ;;  %v7073_v30 = vadd.f32 1e-05, %v3947_v48 }
 0x828   : > { %v3962_v5 = vmul.f32 %v4710_v2, %v3961_v13  ;;  %v3968_v57 = vmul.f32 %v4714_v7, %v3950_v54  ;;  %4715 = vrsqrt.f32 %v7062_v22  ;;  %vm4014_vm2 = vweird.f32 %v4712_v44 }
 0x829   : > { %v4009_v0 = vmul.f32 %v4712_v44, %v4008_v47  ;;  %4717 = vrsqrt.f32 %v7065_v4  ;;  %v4006_v14 = vsel %vm7069_vm15, %v4708_v59, %v4002_v50  ;;  %vm3974_vm3 = vweird.f32 %v4714_v7  ;;  %vm4015_vm7 = vmor %vm4013_vm4, %vm4014_vm2 }
 0x82a   : > { %v3969_v36 = vmul.f32 %v4714_v7, %v3968_v57  ;;  %4719 = vrsqrt.f32 %v7073_v30  ;;  %v3966_v52 = vsel %vm7075_vm1, %v4710_v2, %v3962_v5  ;;  %v4041_v53 = vmul.f32 %v4006_v14, %v6997_v24  ;;  %vm3975_vm8 = vmor %vm3973_vm5, %vm3974_vm3 }
 0x82b   : > { %v4010_v62 = vmul.f32 0.5, %v4009_v0  ;;  %vm4033_vm10 = vweird.f32 %v7062_v22  ;;  %vm3983_vm14 = vweird.f32 %v7065_v4  ;;  %vm4023_vm0 = vweird.f32 %v7073_v30 }
 0x82c   : > { %v3970_v27 = vmul.f32 0.5, %v3969_v36  ;;  %v3928_v16 = vpop.xlane.xlu1 %3927  ;;  %v4053_v60 = vmul.f32 %v7090_v43, %v4041_v53 }
 0x82d   : > { %v4011_v32 = vsub.f32 1.5, %v4010_v62  ;;  %v3944_v3 = vmul.f32 %v3928_v16, %v6992_v19  ;;  %v4037_v19 = vmul.f32 %v3966_v52, %v7000_v18  ;;  %v4686_v18 = vld [vmem:[%s7310_s11] ss:$0 sm:$0xff] }
 0x82e   : > { %v7085_v39 = vpop.eup %4715  ;;  %v3971_v51 = vsub.f32 1.5, %v3970_v27 }
 0x82f   : > { %v7093_v35 = vpop.eup %4717  ;;  %v4012_v55 = vmul.f32 %v4712_v44, %v4011_v32  ;;  %v4028_v10 = vmul.f32 %v7085_v39, %v7062_v22  ;;  %v7097_v29 = vadd.f32 1e-05, %v3944_v3  ;;  %v4049_v58 = vmul.f32 %v7090_v43, %v4037_v19 }
 0x830   : > { %v3972_v23 = vmul.f32 %v4714_v7, %v3971_v51  ;;  %v3978_v59 = vmul.f32 %v7093_v35, %v7065_v4  ;;  %v4720_v2 = vpop.eup %4719  ;;  %vm4034_vm9 = vweird.f32 %v7085_v39  ;;  %vm3984_vm12 = vweird.f32 %v7093_v35 }
 0x831   : > { %v4029_v24 = vmul.f32 %v7085_v39, %v4028_v10  ;;  %4721 = vrsqrt.f32 %v7097_v29  ;;  %v4016_v61 = vsel %vm4015_vm7, %v4712_v44, %v4012_v55  ;;  %v4018_v12 = vmul.f32 %v4720_v2, %v7073_v30  ;;  %vm7119_vm11 = vmor %vm4033_vm10, %vm4034_vm9 }
 0x832   : > { %v3979_v42 = vmul.f32 %v7093_v35, %v3978_v59  ;;  %v3976_v28 = vsel %vm3975_vm8, %v4714_v7, %v3972_v23  ;;  %v4042_v54 = vmul.f32 %v4016_v61, %v7011_v40  ;;  %v4065_v44 = vadd.f32 %v4686_v18, %v4053_v60  ;;  %vm3985_vm15 = vmor %vm3983_vm14, %vm3984_vm12  ;;  %v4687_v61 = vld [vmem:[%s7315_s22] ss:$0 sm:$0xff] }
 0x833   : > { %v4030_v15 = vmul.f32 0.5, %v4029_v24  ;;  %v4038_v63 = vmul.f32 %v3976_v28, %v7014_v31  ;;  %v4019_v38 = vmul.f32 %v4720_v2, %v4018_v12  ;;  %v4061_v50 = vadd.f32 %v4686_v18, %v4049_v58 }
 0x834   : > { %v3980_v25 = vmul.f32 0.5, %v3979_v42  ;;  %v4054_v46 = vmul.f32 %v7090_v43, %v4042_v54  ;;  %vm4024_vm13 = vweird.f32 %v4720_v2  ;;  %vm3993_vm3 = vweird.f32 %v7097_v29 }
 0x835   : > { %v4031_v45 = vsub.f32 1.5, %v4030_v15  ;;  %v4050_v41 = vmul.f32 %v7090_v43, %v4038_v63  ;;  %v4020_v31 = vmul.f32 0.5, %v4019_v38  ;;  %vm4025_vm1 = vmor %vm4023_vm0, %vm4024_vm13 }
 0x836   : > { %v3981_v40 = vsub.f32 1.5, %v3980_v25  ;;  %v4066_v13 = vadd.f32 %v4686_v18, %v4054_v46 }
 0x837   : > { %v4722_v48 = vpop.eup %4721  ;;  %v4032_v7 = vmul.f32 %v7085_v39, %v4031_v45  ;;  %v4062_v47 = vadd.f32 %v4686_v18, %v4050_v41  ;;  %v4021_v8 = vsub.f32 1.5, %v4020_v31 }
 0x838   : > { %v3982_v57 = vmul.f32 %v7093_v35, %v3981_v40  ;;  %v3988_v0 = vmul.f32 %v4722_v48, %v7097_v29  ;;  %v4071_v22 = vpack.c.bf16 %v4066_v13, %v4065_v44  ;;  %vm3994_vm2 = vweird.f32 %v4722_v48  ;;  %v4504_v29 = vld [vmem:[%s7313_s30 + $0x8] sm:$0xff] }
 0x839   : > { %v4069_v36 = vpack.c.bf16 %v4062_v47, %v4061_v50  ;;  %v4036_v20 = vsel %vm7119_vm11, %v7085_v39, %v4032_v7  ;;  %v4022_v14 = vmul.f32 %v4720_v2, %v4021_v8  ;;  %vm3995_vm4 = vmor %vm3993_vm3, %vm3994_vm2  ;;  %4200 = vmatpush.bf16.msra.mxu1 %v4504_v29  ;;  %4537 = vmatpush.bf16.msra.mxu3 %v4504_v29 }
 0x83a   : > { %v3989_v62 = vmul.f32 %v4722_v48, %v3988_v0  ;;  %4474 = vmatmul.msk.bf16.vlgmr.msra.gmra.mxu2 %vm3633_vm6, %v4071_v22  ;;  %v3986_v16 = vsel %vm3985_vm15, %v7093_v35, %v3982_v57  ;;  %v4044_v52 = vmul.f32 %v4036_v20, %v7026_v37 }
 0x83b   : > { %4472 = vmatmul.msk.bf16.vlgmr.msra.gmra.mxu0 %vm3633_vm6, %v4069_v36  ;;  %v4026_v32 = vsel %vm4025_vm1, %v4720_v2, %v4022_v14  ;;  %v4039_v39 = vmul.f32 %v3986_v16, %v7029_v1 }
 0x83c   : > { %v3990_v27 = vmul.f32 0.5, %v3989_v62  ;;  %v4043_v4 = vmul.f32 %v4026_v32, %v7032_v56  ;;  %v4056_v53 = vmul.f32 %v7090_v43, %v4044_v52  ;;  %v4688_v32 = vld [vmem:[%s7316_s16] ss:$0 sm:$0xff] }
 0x83d   : > { %v4051_v37 = vmul.f32 %v7090_v43, %v4039_v39 }
 0x83e   : > { %v3991_v3 = vsub.f32 1.5, %v3990_v27  ;;  %v4055_v30 = vmul.f32 %v7090_v43, %v4043_v4  ;;  %v4068_v19 = vadd.f32 %v4686_v18, %v4056_v53 }
 0x83f   : > { %v4063_v56 = vadd.f32 %v4686_v18, %v4051_v37 }
 0x840   : > { %v3992_v51 = vmul.f32 %v4722_v48, %v3991_v3  ;;  %v4067_v10 = vadd.f32 %v4686_v18, %v4055_v30 }
 0x842   : > { %v3996_v55 = vsel %vm3995_vm4, %v4722_v48, %v3992_v51  ;;  %v4072_v1 = vpack.c.bf16 %v4068_v19, %v4067_v10 }
 0x843   : > { %v4040_v35 = vmul.f32 %v3996_v55, %v7045_v6  ;;  %v4503_v6 = vld [vmem:[%s7314_s14] sm:$0xff] }
 0x844   : > { %4201 = vmatpush.bf16.msra.mxu1 %v4503_v6  ;;  %4538 = vmatpush.bf16.msra.mxu3 %v4503_v6 }
 0x845   : > { %v4052_v23 = vmul.f32 %v7090_v43, %v4040_v35 }
 0x847   : > { %v4064_v59 = vadd.f32 %v4686_v18, %v4052_v23 }
 0x849   : > { %v4070_v24 = vpack.c.bf16 %v4064_v59, %v4063_v56 }
 0x84a   : > { %4475 = vmatmul.msk.bf16.gmra.mxu2 %vm3633_vm6, %v4072_v1 }
 0x84b   : > { %4473 = vmatmul.msk.bf16.gmra.mxu0 %vm3633_vm6, %v4070_v24 }
 0x8b8   : > { %v4114_v43 = vpop.f32.mrf.mxu0 }
 0x8b9   : > { %v4115_v2 = vadd.f32 %v4687_v61, %v4114_v43 }
 0x8bb   : > { %v4142_v18 = vmul.f32 0.01, %v4115_v2  ;;  %vm4134_vm5 = vcmp.ge.f32.partialorder %v4115_v2, 0.0 }
 0x8bd   : > { %v4124_v42 = vpop.f32.mrf.mxu2  ;;  %v4150_v63 = vsel %vm4134_vm5, %v4115_v2, %v4142_v18 }
 0x8be   : > { %v4125_v60 = vadd.f32 %v4687_v61, %v4124_v42 }
 0x8c0   : > { %v4116_v28 = vpop.f32.mrf.mxu0  ;;  %v4146_v25 = vmul.f32 0.01, %v4125_v60  ;;  %vm4138_vm8 = vcmp.ge.f32.partialorder %v4125_v60, 0.0 }
 0x8c1   : > { %v4117_v54 = vadd.f32 %v4687_v61, %v4116_v28 }
 0x8c2   : > { %v4154_v40 = vsel %vm4138_vm8, %v4125_v60, %v4146_v25 }
 0x8c3   : > { %v4143_v15 = vmul.f32 0.01, %v4117_v54  ;;  %vm4135_vm7 = vcmp.ge.f32.partialorder %v4117_v54, 0.0 }
 0x8c5   : > { %v4126_v12 = vpop.f32.mrf.mxu2  ;;  %v4151_v58 = vsel %vm4135_vm7, %v4117_v54, %v4143_v15 }
 0x8c6   : > { %v4127_v46 = vadd.f32 %v4687_v61, %v4126_v12  ;;  %v4158_v45 = vpack.c.bf16 %v4151_v58, %v4150_v63 }
 0x8c8   : > { %v4147_v38 = vmul.f32 0.01, %v4127_v46  ;;  %v4119_v41 = vpop.f32.mrf.mxu0  ;;  %4484 = vmatmul.msk.bf16.vlgmr.msra.gmra.mxu1 %vm3633_vm6, %v4158_v45  ;;  %vm4139_vm9 = vcmp.ge.f32.partialorder %v4127_v46, 0.0 }
 0x8c9   : > { %v4120_v48 = vadd.f32 %v4687_v61, %v4119_v41 }
 0x8ca   : > { %v4155_v44 = vsel %vm4139_vm9, %v4127_v46, %v4147_v38 }
 0x8cb   : > { %v4160_v13 = vpack.c.bf16 %v4155_v44, %v4154_v40  ;;  %v4144_v50 = vmul.f32 0.01, %v4120_v48  ;;  %vm4136_vm10 = vcmp.ge.f32.partialorder %v4120_v48, 0.0 }
 0x8cd   : > { %v4129_v7 = vpop.f32.mrf.mxu2  ;;  %4486 = vmatmul.msk.bf16.vlgmr.msra.gmra.mxu3 %vm3633_vm6, %v4160_v13  ;;  %v4152_v22 = vsel %vm4136_vm10, %v4120_v48, %v4144_v50 }
 0x8ce   : > { %v4130_v5 = vadd.f32 %v4687_v61, %v4129_v7 }
 0x8d0   : > { %v4121_v31 = vpop.f32.mrf.mxu0  ;;  %v4148_v36 = vmul.f32 0.01, %v4130_v5  ;;  %vm4140_vm12 = vcmp.ge.f32.partialorder %v4130_v5, 0.0 }
 0x8d1   : > { %v4122_v47 = vadd.f32 %v4687_v61, %v4121_v31 }
 0x8d2   : > { %v4156_v27 = vsel %vm4140_vm12, %v4130_v5, %v4148_v36 }
 0x8d3   : > { %v4145_v57 = vmul.f32 0.01, %v4122_v47  ;;  %vm4137_vm11 = vcmp.ge.f32.partialorder %v4122_v47, 0.0 }
 0x8d5   : > { %v4131_v0 = vpop.f32.mrf.mxu2  ;;  %v4153_v8 = vsel %vm4137_vm11, %v4122_v47, %v4145_v57 }
 0x8d6   : > { %v4132_v20 = vadd.f32 %v4687_v61, %v4131_v0  ;;  %v4159_v62 = vpack.c.bf16 %v4153_v8, %v4152_v22 }
 0x8d8   : > { %v4149_v14 = vmul.f32 0.01, %v4132_v20  ;;  %4485 = vmatmul.msk.bf16.gmra.mxu1 %vm3633_vm6, %v4159_v62  ;;  %vm4141_vm13 = vcmp.ge.f32.partialorder %v4132_v20, 0.0 }
 0x8da   : > { %v4157_v16 = vsel %vm4141_vm13, %v4132_v20, %v4149_v14 }
 0x8db   : > { %v4161_v52 = vpack.c.bf16 %v4157_v16, %v4156_v27 }
 0x8dd   : > { %4487 = vmatmul.msk.bf16.gmra.mxu3 %vm3633_vm6, %v4161_v52 }
 0x945   : > { %v4203_v3 = vpop.f32.mrf.mxu1 }
 0x946   : > { %v4204_v4 = vadd.f32 %v4688_v32, %v4203_v3 }
 0x948   : > { %v4223_v39 = vadd.f32 %v4204_v4, %v6962_v26 }
 0x94a   : > { %4231 = vst.msk [vmem:[%s5304_s0] sm:$0xff] %vm3633_vm6, %v4223_v39 }
 0x94d   : > { %v4205_v51 = vpop.f32.mrf.mxu1 }
 0x94e   : > { %v4206_v30 = vadd.f32 %v4688_v32, %v4205_v51 }
 0x950   : > { %v4224_v53 = vadd.f32 %v4206_v30, %v6970_v9  ;;  %v4213_v55 = vpop.f32.mrf.mxu3 }
 0x951   : > { %v4214_v35 = vadd.f32 %v4688_v32, %v4213_v55 }
 0x952   : > { %4232 = vst.msk [vmem:[%s5304_s0 + $0x8] sm:$0xff] %vm3633_vm6, %v4224_v53 }
 0x953   : > { %v4227_v37 = vadd.f32 %v4214_v35, %v6960_v11 }
 0x955   : > { %4235 = vst.msk [vmem:[%s5304_s0 + $0x20] sm:$0xff] %vm3633_vm6, %v4227_v37  ;;  %v4208_v10 = vpop.f32.mrf.mxu1 }
 0x956   : > { %v4209_v19 = vadd.f32 %v4688_v32, %v4208_v10 }
 0x958   : > { %v4225_v26 = vadd.f32 %v4209_v19, %v6980_v34  ;;  %v4215_v23 = vpop.f32.mrf.mxu3 }
 0x959   : > { %v4216_v56 = vadd.f32 %v4688_v32, %v4215_v23 }
 0x95a   : > { %4233 = vst.msk [vmem:[%s5304_s0 + $0x10] sm:$0xff] %vm3633_vm6, %v4225_v26 }
 0x95b   : > { %v4228_v9 = vadd.f32 %v4216_v56, %v6968_v49 }
 0x95d   : > { %4236 = vst.msk [vmem:[%s5304_s0 + $0x28] sm:$0xff] %vm3633_vm6, %v4228_v9  ;;  %v4210_v59 = vpop.f32.mrf.mxu1 }
 0x95e   : > { %v4211_v1 = vadd.f32 %v4688_v32, %v4210_v59 }
 0x960   : > { %v4226_v11 = vadd.f32 %v4211_v1, %v6988_v17  ;;  %v4218_v24 = vpop.f32.mrf.mxu3 }
 0x961   : > { %v4219_v29 = vadd.f32 %v4688_v32, %v4218_v24 }
 0x962   : > { %4234 = vst.msk [vmem:[%s5304_s0 + $0x18] sm:$0xff] %vm3633_vm6, %v4226_v11 }
 0x963   : > { %v4229_v6 = vadd.f32 %v4219_v29, %v6978_v21 }
 0x965   : > { %4237 = vst.msk [vmem:[%s5304_s0 + $0x30] sm:$0xff] %vm3633_vm6, %v4229_v6 }
 0x968   : > { %v4220_v34 = vpop.f32.mrf.mxu3 }
 0x969   : > { %v4221_v43 = vadd.f32 %v4688_v32, %v4220_v34 }
 0x96b   : > { %v4230_v61 = vadd.f32 %v4221_v43, %v6976_v33 }
 0x96d   : > { %4238 = vst.msk [vmem:[%s5304_s0 + $0x38] sm:$0xff] %vm3633_vm6, %v4230_v61 }
 0x96e PF: > { %s4506_s26 = sshll.u32 %s4821_s29, 6  ;;  %s7317_s18 = sld [smem:[#allocation27_spill]] }
 0x96f   : > { %s4253_s23 = sshll.u32 %s5304_s0, 4  ;;  %s7318_s1 = sand.u32 1, %s4801_s24   ;;  %s4254_s23 = int_to_ptr.vmem [resolvable:$true] %s4253_s23 }
 0x970   : > { %s4240_s19 = scalar_lea.sflag [#allocation11], %s7318_s1 }
 0x974   : > { %s4252_s30 = scalar_lea.hbm %s7317_s18, %s4506_s26  ;;  %s4743_s29 = scalar_lea.hbm %s7317_s18, 128 }
 0x975   : > { %s4255_s28 = sshll.u32 %s4252_s30, 4  ;;  %s4256_s28 = int_to_ptr.hbm [resolvable:$true] %s4255_s28 }
 0x976   : > { %s4737_s22 = sshra.s32 %s4256_s28, 4  ;;  %s4738_s22 = int_to_ptr.hbm [resolvable:$true] %s4737_s22 }
 0x977   : > { %s4739_s15 = scalar_lea.hbm %s4738_s22, 64  ;;  %p4744_p10 = scmp.lt.s32.totalorder %s4738_s22, %s7317_s18 }
 0x978   : > { %p4740_p6 = scmp.ne.s32.totalorder %s4738_s22, %s4739_s15  ;;  %p4745_p11 = scmp.lt.s32.totalorder %s4743_s29, %s4739_s15 }
 0x97a   : > { %p4741_p8 = pnand %p4740_p6, %p5005_p7  ;;  %p4746_p13 = por %p4745_p11, %p4744_p10 }
 0x97c   : > { %p4742_p9 = pneg %p4741_p8 }
 0x97e   : > { %p4747_p0 = pnand %p4746_p13, %p4742_p9 }
 0x980   : > { %4750 = shalt.err (!%p4747_p0)
}
 0x981   : > { %s4843_s0 = smov 128   ;;  %s4844_s26 = smov 8  }
 0x982   : > { %4539 = dma.vmem_to_hbm [thread:$0]  (%p5005_p7), %s4254_s23, 1024, %s4256_s28, %s4240_s19, %s4843_s0, %s4843_s0, %s4844_s26  }
 0x983 PF: > { %s7319_s20 = sld [smem:[#allocation13_spill]]  ;;  %p4545_p1 = scmp.ge.s32.totalorder %s4833_s9, 2 }
 0x985   : > { %p4542_p2 = pnand %p4545_p1, %p5013_p12 }
 0x987   : > { %p4543_p3 = pneg %p4542_p2 }
 0x989   : > { %s4270_s1 = sand.u32 1, %s7319_s20  }
 0x98a   : > { %s4271_s2 = scalar_lea.sflag [#allocation11], %s4270_s1 }
 0x98b   : > { %4792 = dma.done.wait (%p4543_p3), %s4271_s2, 1024  }
 0x98c   : > { %4794 = vsyncadd (%p4543_p3), %s4271_s2, 4294966272  ;;  %s30_s9 = sadd.s32 1, %s4833_s9   ;;  %s7321_s28 = sld [smem:[#allocation14_spill]] }
 0x98d   : > { %p27_p4 = scmp.ge.s32.totalorder %s30_s9, 6   ;;  %s7322_s29 = sld [smem:[#allocation15_spill]] }
 0x98e   : > { %s7323_s30 = sld [smem:[#allocation16_spill]]  ;;  %s7325_s23 = smov %s4801_s24 }
 0x98f   : > { %s7324_s0 = sld [smem:[#allocation17_spill]]  ;;  %s7326_s24 = smov %s4805_s25 }
 0x990   : > { %s7327_s25 = smov %s5018_s10  ;;  %s7328_s26 = smov %s4813_s27 }
 0x991   : > { %s7329_s27 = smov %s5021_s17  ;;  %29 = sbr.rel (!%p27_p4) target bundleno = 17 (0x11), region = 175 }
 0x996   :  { %4277 = vsyncpa [#allocation11], 1 }
 0x997   :  { %4279 = vsyncpa [#allocation11 + $0x1], 1 }

</bundles_post_ra>
